<compile_context>
chip_gen: v7x
topology: tpu7x:2x2x1
jax: 0.10.0
libtpu: 0.0.40
codegen_flags: <defaults>
</compile_context>

<pallas_src>
import jax
import jax.numpy as jnp
from jax.experimental import pallas as pl
from jax.experimental.pallas import tpu as pltpu

_HIDDEN = 512
_LANE = 128


def _round_up(x, m):
    return (x + m - 1) // m * m


# ----------------------------- Pallas kernel ------------------------------- #
def _explicit_decoder_kernel(x_ref, w0_ref, b0_ref, wmid_ref, bmid_ref,
                             w4_ref, b4_ref, o_ref):
    """One batch tile through the whole MLP (5 matmuls, MXU f32 accumulation).

    x_ref    : (TB, in_dim)        bf16
    w0_ref   : (in_dim, 512)       bf16,  b0_ref  : (1, 512)    f32
    wmid_ref : (512, 3*512)        bf16,  bmid_ref: (1, 3*512)  f32   (3 hidden layers packed)
    w4_ref   : (512, out_pad)      bf16,  b4_ref  : (1, out_pad) f32  (zero-padded to lane mult.)
    o_ref    : (TB, out_pad)       f32
    """
    # Layer 0: Linear(in_dim, 512) + ReLU.
    h = jnp.dot(x_ref[...], w0_ref[...], preferred_element_type=jnp.float32)
    h = jnp.maximum(h + b0_ref[...], 0.0).astype(jnp.bfloat16)

    # Three packed hidden layers: Linear(512, 512) + ReLU each (static slices
    # of the packed weight slab; 512 is a multiple of 128 so slices are aligned).
    for li in range(3):
        w = wmid_ref[:, li * _HIDDEN:(li + 1) * _HIDDEN]
        b = bmid_ref[:, li * _HIDDEN:(li + 1) * _HIDDEN]
        h = jnp.dot(h, w, preferred_element_type=jnp.float32)
        h = jnp.maximum(h + b, 0.0).astype(jnp.bfloat16)

    # Output layer: Linear(512, out_dim) (lane-padded), no activation.
    out = jnp.dot(h, w4_ref[...], preferred_element_type=jnp.float32) + b4_ref[...]
    o_ref[...] = out.astype(o_ref.dtype)


# --------------------------- Param packing (host) --------------------------- #
def pack_params(params):
    """Pack f32 (W, b) pairs into the bf16 streaming layout used by the kernel."""
    (w0, b0), (w1, b1), (w2, b2), (w3, b3), (w4, b4) = params
    out_dim = w4.shape[1]
    out_pad = _round_up(out_dim, _LANE)
    wmid = jnp.concatenate([w1, w2, w3], axis=1)               # (512, 1536)
    bmid = jnp.concatenate([b1, b2, b3], axis=1)               # (1, 1536)
    w4p = jnp.pad(w4, ((0, 0), (0, out_pad - out_dim)))        # (512, out_pad)
    b4p = jnp.pad(b4, ((0, 0), (0, out_pad - out_dim)))        # (1, out_pad)
    return dict(
        w0=w0.astype(jnp.bfloat16), b0=b0.astype(jnp.float32),
        wmid=wmid.astype(jnp.bfloat16), bmid=bmid.astype(jnp.float32),
        w4=w4p.astype(jnp.bfloat16), b4=b4p.astype(jnp.float32),
        out_dim=out_dim, out_pad=out_pad,
    )


# ------------------------------ Host wrapper -------------------------------- #
def explicit_decoder_forward(x, packed, *, batch_tile=256):
    """x: (B, C, H, W) f32; packed: output of pack_params. Returns (B, out_dim) f32."""
    B = x.shape[0]
    xf = x.reshape(B, -1).astype(jnp.bfloat16)                 # (B, in_dim), NCHW row-major flatten
    in_dim = xf.shape[1]
    out_dim, out_pad = packed["out_dim"], packed["out_pad"]

    # Batch tiling: pad batch to a sublane multiple, tile up to `batch_tile` rows,
    # and run the tiles on a "parallel" grid axis (weights stay VMEM-resident).
    tb = min(batch_tile, _round_up(B, 8))
    Bp = _round_up(B, tb)
    if Bp != B:
        xf = jnp.pad(xf, ((0, Bp - B), (0, 0)))
    grid = (Bp // tb,)

    const = lambda i: (0, 0)                                    # weights: fetched once
    out = pl.pallas_call(
        _explicit_decoder_kernel,
        grid=grid,
        in_specs=[
            pl.BlockSpec((tb, in_dim), lambda i: (i, 0)),       # activations: tiled over batch
            pl.BlockSpec(packed["w0"].shape, const),
            pl.BlockSpec(packed["b0"].shape, const),
            pl.BlockSpec(packed["wmid"].shape, const),
            pl.BlockSpec(packed["bmid"].shape, const),
            pl.BlockSpec(packed["w4"].shape, const),
            pl.BlockSpec(packed["b4"].shape, const),
        ],
        out_specs=pl.BlockSpec((tb, out_pad), lambda i: (i, 0)),
        out_shape=jax.ShapeDtypeStruct((Bp, out_pad), jnp.float32),
        compiler_params=pltpu.CompilerParams(
            dimension_semantics=("parallel",),
            vmem_limit_bytes=32 << 20,
        ),
    )(xf, packed["w0"], packed["b0"], packed["wmid"], packed["bmid"],
      packed["w4"], packed["b4"])
    return out[:B, :out_dim]


# --------------------------- Deterministic params --------------------------- #
def init_params(key, in_dim, hidden_channels, out_dim):
    """Mimic PyTorch nn.Linear default init: U(-1/sqrt(fan_in), 1/sqrt(fan_in))."""
    sizes = [in_dim] + list(hidden_channels) + [out_dim]
    params = []
    for li in range(len(sizes) - 1):
        fan_in, fan_out = sizes[li], sizes[li + 1]
        key, kw, kb = jax.random.split(key, 3)
        bound = 1.0 / jnp.sqrt(jnp.float32(fan_in))
        w = jax.random.uniform(kw, (fan_in, fan_out), jnp.float32, -bound, bound)
        b = jax.random.uniform(kb, (1, fan_out), jnp.float32, -bound, bound)
        params.append((w, b))
    return params


# ------------------------------- References --------------------------------- #
def reference_forward_f32(x, params):
    """Pure-JAX f32 reference of the PyTorch forward pass."""
    B = x.shape[0]
    h = x.reshape(B, -1).astype(jnp.float32)
    for i, (w, b) in enumerate(params):
        h = h @ w + b
        if i < len(params) - 1:
            h = jnp.maximum(h, 0.0)
    return h


def reference_forward_bf16(x, params):
    """Reference with the same bf16 weight/activation quantization as the kernel."""
    B = x.shape[0]
    h = x.reshape(B, -1).astype(jnp.bfloat16)
    for i, (w, b) in enumerate(params):
        h = jnp.dot(h, w.astype(jnp.bfloat16), preferred_element_type=jnp.float32) + b
        if i < len(params) - 1:
            h = jnp.maximum(h, 0.0).astype(jnp.bfloat16)
    return h.astype(jnp.float32)


# ----------------------------------- Main ----------------------------------- #
if __name__ == "__main__":
    # Module defaults: in_dim=1024, out_dim=300, hidden_channels=4*[512].
    IN_DIM, OUT_DIM = 1024, 300
    HIDDEN = [512, 512, 512, 512]
    B, C, H, W = 2, 4, 16, 16          # C*H*W == IN_DIM (flattened in forward)

    key = jax.random.PRNGKey(0)
    key, kx = jax.random.split(key)
    x = jax.random.normal(kx, (B, C, H, W), jnp.float32)

    params = init_params(key, IN_DIM, HIDDEN, OUT_DIM)
    packed = pack_params(params)

    y = explicit_decoder_forward(x, packed)
    y = jax.block_until_ready(y)
    assert y.shape == (B, OUT_DIM), y.shape

    # Tight check against a reference using the same bf16 quantization.
    y_bf16 = reference_forward_bf16(x, params)
    if not jnp.allclose(y, y_bf16, atol=2e-2, rtol=2e-2):
        raise AssertionError("Pallas kernel mismatch vs bf16-quantized reference")

    # Loose check against the exact f32 PyTorch-equivalent reference.
    y_f32 = reference_forward_f32(x, params)
    if not jnp.allclose(y, y_f32, atol=6e-2, rtol=6e-2):
        raise AssertionError("Pallas kernel mismatch vs f32 reference")

    print("KERNEL_OK")
</pallas_src>

<mosaic_0001>
module attributes {stable_mosaic.version = 11 : i64} {
  func.func @_explicit_decoder_kernel(%arg0: i32, %arg1: memref<8x1024xbf16, #tpu.memory_space<vmem>>, %arg2: memref<1024x512xbf16, #tpu.memory_space<vmem>>, %arg3: memref<1x512xf32, #tpu.memory_space<vmem>>, %arg4: memref<512x1536xbf16, #tpu.memory_space<vmem>>, %arg5: memref<1x1536xf32, #tpu.memory_space<vmem>>, %arg6: memref<512x384xbf16, #tpu.memory_space<vmem>>, %arg7: memref<1x384xf32, #tpu.memory_space<vmem>>, %arg8: memref<8x384xf32, #tpu.memory_space<vmem>>) attributes {dimension_semantics = [#tpu.dimension_semantics<parallel>], iteration_bounds = array<i64: 1>, scalar_prefetch = 0 : i64, scratch_operands = 0 : i64, tpu.core_type = #tpu.core_type<tc>, window_params = [{transform_indices = @transform_0, window_bounds = array<i64: 8, 1024>}, {pipeline_mode = #tpu.pipeline_mode<synchronous>, transform_indices = @transform_1, window_bounds = array<i64: 1024, 512>}, {pipeline_mode = #tpu.pipeline_mode<synchronous>, transform_indices = @transform_2, window_bounds = array<i64: 1, 512>}, {pipeline_mode = #tpu.pipeline_mode<synchronous>, transform_indices = @transform_3, window_bounds = array<i64: 512, 1536>}, {pipeline_mode = #tpu.pipeline_mode<synchronous>, transform_indices = @transform_4, window_bounds = array<i64: 1, 1536>}, {pipeline_mode = #tpu.pipeline_mode<synchronous>, transform_indices = @transform_5, window_bounds = array<i64: 512, 384>}, {pipeline_mode = #tpu.pipeline_mode<synchronous>, transform_indices = @transform_6, window_bounds = array<i64: 1, 384>}, {transform_indices = @transform_7, window_bounds = array<i64: 8, 384>}]} {
    %c0 = arith.constant 0 : index
    %c0_0 = arith.constant 0 : index
    %0 = vector.load %arg1[%c0, %c0_0] : memref<8x1024xbf16, #tpu.memory_space<vmem>>, vector<8x1024xbf16>
    %c0_1 = arith.constant 0 : index
    %c0_2 = arith.constant 0 : index
    %1 = vector.load %arg2[%c0_1, %c0_2] : memref<1024x512xbf16, #tpu.memory_space<vmem>>, vector<1024x512xbf16>
    %cst = arith.constant dense<0.000000e+00> : vector<8x512xf32>
    %2 = tpu.matmul %0, %1, %cst {dimension_numbers = #tpu.dot_dimension_numbers<[1], [0], [0], [1], [0, 0, 1, 1], [], []>} : vector<8x1024xbf16>, vector<1024x512xbf16>, vector<8x512xf32> -> vector<8x512xf32>
    %c0_3 = arith.constant 0 : index
    %c0_4 = arith.constant 0 : index
    %3 = vector.load %arg3[%c0_3, %c0_4] : memref<1x512xf32, #tpu.memory_space<vmem>>, vector<1x512xf32>
    %4 = vector.broadcast %3 : vector<1x512xf32> to vector<8x512xf32>
    %5 = arith.addf %2, %4 : vector<8x512xf32>
    %cst_5 = arith.constant 0.000000e+00 : f32
    %6 = vector.broadcast %cst_5 : f32 to vector<8x512xf32>
    %7 = arith.maximumf %5, %6 : vector<8x512xf32>
    %8 = arith.truncf %7 : vector<8x512xf32> to vector<8x512xbf16>
    %c0_6 = arith.constant 0 : index
    %c0_7 = arith.constant 0 : index
    %9 = vector.load %arg4[%c0_6, %c0_7] : memref<512x1536xbf16, #tpu.memory_space<vmem>>, vector<512x512xbf16>
    %c0_8 = arith.constant 0 : index
    %c0_9 = arith.constant 0 : index
    %10 = vector.load %arg5[%c0_8, %c0_9] : memref<1x1536xf32, #tpu.memory_space<vmem>>, vector<1x512xf32>
    %cst_10 = arith.constant dense<0.000000e+00> : vector<8x512xf32>
    %11 = tpu.matmul %8, %9, %cst_10 {dimension_numbers = #tpu.dot_dimension_numbers<[1], [0], [0], [1], [0, 0, 1, 1], [], []>} : vector<8x512xbf16>, vector<512x512xbf16>, vector<8x512xf32> -> vector<8x512xf32>
    %12 = vector.broadcast %10 : vector<1x512xf32> to vector<8x512xf32>
    %13 = arith.addf %11, %12 : vector<8x512xf32>
    %cst_11 = arith.constant 0.000000e+00 : f32
    %14 = vector.broadcast %cst_11 : f32 to vector<8x512xf32>
    %15 = arith.maximumf %13, %14 : vector<8x512xf32>
    %16 = arith.truncf %15 : vector<8x512xf32> to vector<8x512xbf16>
    %c0_12 = arith.constant 0 : index
    %c512 = arith.constant 512 : index
    %17 = vector.load %arg4[%c0_12, %c512] : memref<512x1536xbf16, #tpu.memory_space<vmem>>, vector<512x512xbf16>
    %c0_13 = arith.constant 0 : index
    %c512_14 = arith.constant 512 : index
    %18 = vector.load %arg5[%c0_13, %c512_14] : memref<1x1536xf32, #tpu.memory_space<vmem>>, vector<1x512xf32>
    %cst_15 = arith.constant dense<0.000000e+00> : vector<8x512xf32>
    %19 = tpu.matmul %16, %17, %cst_15 {dimension_numbers = #tpu.dot_dimension_numbers<[1], [0], [0], [1], [0, 0, 1, 1], [], []>} : vector<8x512xbf16>, vector<512x512xbf16>, vector<8x512xf32> -> vector<8x512xf32>
    %20 = vector.broadcast %18 : vector<1x512xf32> to vector<8x512xf32>
    %21 = arith.addf %19, %20 : vector<8x512xf32>
    %cst_16 = arith.constant 0.000000e+00 : f32
    %22 = vector.broadcast %cst_16 : f32 to vector<8x512xf32>
    %23 = arith.maximumf %21, %22 : vector<8x512xf32>
    %24 = arith.truncf %23 : vector<8x512xf32> to vector<8x512xbf16>
    %c0_17 = arith.constant 0 : index
    %c1024 = arith.constant 1024 : index
    %25 = vector.load %arg4[%c0_17, %c1024] : memref<512x1536xbf16, #tpu.memory_space<vmem>>, vector<512x512xbf16>
    %c0_18 = arith.constant 0 : index
    %c1024_19 = arith.constant 1024 : index
    %26 = vector.load %arg5[%c0_18, %c1024_19] : memref<1x1536xf32, #tpu.memory_space<vmem>>, vector<1x512xf32>
    %cst_20 = arith.constant dense<0.000000e+00> : vector<8x512xf32>
    %27 = tpu.matmul %24, %25, %cst_20 {dimension_numbers = #tpu.dot_dimension_numbers<[1], [0], [0], [1], [0, 0, 1, 1], [], []>} : vector<8x512xbf16>, vector<512x512xbf16>, vector<8x512xf32> -> vector<8x512xf32>
    %28 = vector.broadcast %26 : vector<1x512xf32> to vector<8x512xf32>
    %29 = arith.addf %27, %28 : vector<8x512xf32>
    %cst_21 = arith.constant 0.000000e+00 : f32
    %30 = vector.broadcast %cst_21 : f32 to vector<8x512xf32>
    %31 = arith.maximumf %29, %30 : vector<8x512xf32>
    %32 = arith.truncf %31 : vector<8x512xf32> to vector<8x512xbf16>
    %c0_22 = arith.constant 0 : index
    %c0_23 = arith.constant 0 : index
    %33 = vector.load %arg6[%c0_22, %c0_23] : memref<512x384xbf16, #tpu.memory_space<vmem>>, vector<512x384xbf16>
    %cst_24 = arith.constant dense<0.000000e+00> : vector<8x384xf32>
    %34 = tpu.matmul %32, %33, %cst_24 {dimension_numbers = #tpu.dot_dimension_numbers<[1], [0], [0], [1], [0, 0, 1, 1], [], []>} : vector<8x512xbf16>, vector<512x384xbf16>, vector<8x384xf32> -> vector<8x384xf32>
    %c0_25 = arith.constant 0 : index
    %c0_26 = arith.constant 0 : index
    %35 = vector.load %arg7[%c0_25, %c0_26] : memref<1x384xf32, #tpu.memory_space<vmem>>, vector<1x384xf32>
    %36 = vector.broadcast %35 : vector<1x384xf32> to vector<8x384xf32>
    %37 = arith.addf %34, %36 : vector<8x384xf32>
    %c0_27 = arith.constant 0 : index
    %c0_28 = arith.constant 0 : index
    %38 = vector.load %arg8[%c0_27, %c0_28] : memref<8x384xf32, #tpu.memory_space<vmem>>, vector<8x384xf32>
    tpu.vector_store %arg8[%c0_27, %c0_28], %37 {strides = array<i32>} : memref<8x384xf32, #tpu.memory_space<vmem>>, vector<8x384xf32>,
    return
  }
  func.func @transform_0(%arg0: i32) -> (i32, i32) {
    %c0_i32 = arith.constant 0 : i32
    %c0_i32_0 = arith.constant 0 : i32
    return %arg0, %c0_i32 : i32, i32
  }
  func.func @transform_1(%arg0: i32) -> (i32, i32) {
    %c0_i32 = arith.constant 0 : i32
    %c0_i32_0 = arith.constant 0 : i32
    %c0_i32_1 = arith.constant 0 : i32
    return %c0_i32, %c0_i32_0 : i32, i32
  }
  func.func @transform_2(%arg0: i32) -> (i32, i32) {
    %c0_i32 = arith.constant 0 : i32
    %c0_i32_0 = arith.constant 0 : i32
    %c0_i32_1 = arith.constant 0 : i32
    return %c0_i32, %c0_i32_0 : i32, i32
  }
  func.func @transform_3(%arg0: i32) -> (i32, i32) {
    %c0_i32 = arith.constant 0 : i32
    %c0_i32_0 = arith.constant 0 : i32
    %c0_i32_1 = arith.constant 0 : i32
    return %c0_i32, %c0_i32_0 : i32, i32
  }
  func.func @transform_4(%arg0: i32) -> (i32, i32) {
    %c0_i32 = arith.constant 0 : i32
    %c0_i32_0 = arith.constant 0 : i32
    %c0_i32_1 = arith.constant 0 : i32
    return %c0_i32, %c0_i32_0 : i32, i32
  }
  func.func @transform_5(%arg0: i32) -> (i32, i32) {
    %c0_i32 = arith.constant 0 : i32
    %c0_i32_0 = arith.constant 0 : i32
    %c0_i32_1 = arith.constant 0 : i32
    return %c0_i32, %c0_i32_0 : i32, i32
  }
  func.func @transform_6(%arg0: i32) -> (i32, i32) {
    %c0_i32 = arith.constant 0 : i32
    %c0_i32_0 = arith.constant 0 : i32
    %c0_i32_1 = arith.constant 0 : i32
    return %c0_i32, %c0_i32_0 : i32, i32
  }
  func.func @transform_7(%arg0: i32) -> (i32, i32) {
    %c0_i32 = arith.constant 0 : i32
    %c0_i32_0 = arith.constant 0 : i32
    return %arg0, %c0_i32 : i32, i32
  }
}

</mosaic_0001>

<bundles_post_ra>
// kernel: tpu_custom_call.1
= control target key start
LH: loop header
LB: loop body
LE: loop exit
PB: predicated region body
PF: predicated region fallthrough
CT: control target
= control target key end

     0   :  { %12 = vsyncpa [#allocation3], 0  ;;  %s8158_s0 = inlined_call_operand.hbm [shape: bf16[8,1024], index: 0, kind: input, shape index: {}]   ;;  %s8159_s1 = inlined_call_operand.hbm [shape: bf16[1024,512], index: 1, kind: input, shape index: {}]   ;;  %s8160_s2 = inlined_call_operand.hbm [shape: f32[1,512], index: 2, kind: input, shape index: {}]   ;;  %s8161_s3 = inlined_call_operand.hbm [shape: bf16[512,1536], index: 3, kind: input, shape index: {}]   ;;  %s8162_s4 = inlined_call_operand.hbm [shape: f32[1,1536], index: 4, kind: input, shape index: {}]   ;;  %s8163_s5 = inlined_call_operand.hbm [shape: bf16[512,384], index: 5, kind: input, shape index: {}]   ;;  %s8164_s6 = inlined_call_operand.hbm [shape: f32[1,384], index: 6, kind: input, shape index: {}]   ;;  %s8165_s7 = inlined_call_operand.hbm [shape: f32[8,384], index: 7, kind: output, shape index: {}]  }
   0x1   :  { %13 = vsyncpa [#allocation6], 0 }
   0x2   :  { %14 = vsyncpa [#allocation9], 0 }
   0x3   :  { %15 = vsyncpa [#allocation12], 0 }
   0x4   :  { %16 = vsyncpa [#allocation4], 0  ;;  %s7921_s24 = smov [#allocation5]   ;;  %s7735_s28 = scalar_lea.hbm %s8159_s1, 32768 }
   0x5   :  { %s32_s25 = sshll.u32 %s7921_s24, 4  ;;  %p7736_p0 = scmp.ne.s32.totalorder %s8159_s1, %s7735_s28  ;;  %s33_s25 = int_to_ptr.vmem [resolvable:$true] %s32_s25 }
   0x6   :  { %p7739_p1 = scmp.lt.u32.totalorder %s7735_s28, %s8159_s1 }
   0x8   :  { %p7741_p2 = pnand %p7739_p1, %p7736_p0 }
   0xa   :  { %7744 = shalt.err (!%p7741_p2)
}
   0xb   :  { %s7745_s10 = scalar_lea.vmem %s33_s25, 32768  ;;  %p7750_p4 = scmp.lt.s32.totalorder %s33_s25, %s33_s25 }
   0xc   :  { %p7746_p3 = scmp.ne.s32.totalorder %s33_s25, %s7745_s10  ;;  %p7751_p5 = scmp.lt.s32.totalorder %s7745_s10, %s7745_s10 }
   0xe   :  { %p7752_p6 = por %p7751_p5, %p7750_p4 }
  0x10   :  { %p7753_p7 = pnand %p7752_p6, %p7746_p3 }
  0x12   :  { %7756 = shalt.err (!%p7753_p7)
}
  0x13   :  { %s7922_s11 = smov 256   ;;  %s7923_s12 = smov 16  }
  0x14   :  { %38 = dma.hbm_to_vmem [thread:$0]  %s8159_s1, 32768, %s33_s25, [#allocation6], %s7922_s11, %s7922_s11, %s7923_s12  }
  0x15   :  { %s7924_s15 = smov [#allocation8]   ;;  %s7757_s19 = scalar_lea.hbm %s8161_s3, 49152 }
  0x16   :  { %s54_s16 = sshll.u32 %s7924_s15, 4  ;;  %p7758_p8 = scmp.ne.s32.totalorder %s8161_s3, %s7757_s19  ;;  %s55_s16 = int_to_ptr.vmem [resolvable:$true] %s54_s16 }
  0x17   :  { %p7761_p9 = scmp.lt.u32.totalorder %s7757_s19, %s8161_s3 }
  0x19   :  { %p7763_p10 = pnand %p7761_p9, %p7758_p8 }
  0x1b   :  { %7766 = shalt.err (!%p7763_p10)
}
  0x1c   :  { %s7767_s24 = scalar_lea.vmem %s55_s16, 49152  ;;  %p7772_p12 = scmp.lt.s32.totalorder %s55_s16, %s55_s16 }
  0x1d   :  { %p7768_p11 = scmp.ne.s32.totalorder %s55_s16, %s7767_s24  ;;  %p7773_p13 = scmp.lt.s32.totalorder %s7767_s24, %s7767_s24 }
  0x1f   :  { %p7774_p0 = por %p7773_p13, %p7772_p12 }
  0x21   :  { %p7775_p1 = pnand %p7774_p0, %p7768_p11 }
  0x23   :  { %7778 = shalt.err (!%p7775_p1)
}
  0x24   :  { %s7925_s1 = smov 768   ;;  %s7926_s25 = smov 48  }
  0x25   :  { %60 = dma.hbm_to_vmem [thread:$0]  %s8161_s3, 49152, %s55_s16, [#allocation9], %s7925_s1, %s7925_s1, %s7926_s25  }
  0x26   :  { %s7927_s28 = smov [#allocation11]   ;;  %s7779_s9 = scalar_lea.hbm %s8163_s5, 12288 }
  0x27   :  { %s76_s29 = sshll.u32 %s7927_s28, 4  ;;  %p7780_p2 = scmp.ne.s32.totalorder %s8163_s5, %s7779_s9  ;;  %s77_s29 = int_to_ptr.vmem [resolvable:$true] %s76_s29 }
  0x28   :  { %p7783_p3 = scmp.lt.u32.totalorder %s7779_s9, %s8163_s5 }
  0x2a   :  { %p7785_p4 = pnand %p7783_p3, %p7780_p2 }
  0x2c   :  { %7788 = shalt.err (!%p7785_p4)
}
  0x2d   :  { %s7789_s14 = scalar_lea.vmem %s77_s29, 12288  ;;  %p7794_p6 = scmp.lt.s32.totalorder %s77_s29, %s77_s29 }
  0x2e   :  { %p7790_p5 = scmp.ne.s32.totalorder %s77_s29, %s7789_s14  ;;  %p7795_p7 = scmp.lt.s32.totalorder %s7789_s14, %s7789_s14 }
  0x30   :  { %p7796_p8 = por %p7795_p7, %p7794_p6 }
  0x32   :  { %p7797_p9 = pnand %p7796_p8, %p7790_p5 }
  0x34   :  { %7800 = shalt.err (!%p7797_p9)
}
  0x35   :  { %s7928_s3 = smov 192   ;;  %s7929_s15 = smov 12  }
  0x36   :  { %82 = dma.hbm_to_vmem [thread:$0]  %s8163_s5, 12288, %s77_s29, [#allocation12], %s7928_s3, %s7928_s3, %s7929_s15  }
  0x37   :  { %s7930_s18 = smov [#allocation2]   ;;  %s7931_s20 = smov [#allocation7]  }
  0x38   :  { %s23_s19 = sshll.u32 %s7930_s18, 4  ;;  %s45_s21 = sshll.u32 %s7931_s20, 4  ;;  %s24_s19 = int_to_ptr.vmem [resolvable:$true] %s23_s19  ;;  %s46_s21 = int_to_ptr.vmem [resolvable:$true] %s45_s21 }
  0x39   :  { %s7801_s24 = scalar_lea.hbm %s8158_s0, 512 }
  0x3a   :  { %p7802_p10 = scmp.ne.s32.totalorder %s8158_s0, %s7801_s24  ;;  %p7805_p11 = scmp.lt.u32.totalorder %s7801_s24, %s8158_s0 }
  0x3c   :  { %p7807_p12 = pnand %p7805_p11, %p7802_p10 }
  0x3e   :  { %7810 = shalt.err (!%p7807_p12)
}
  0x3f   :  { %s7811_s5 = scalar_lea.vmem %s24_s19, 512  ;;  %p7816_p0 = scmp.lt.s32.totalorder %s24_s19, %s24_s19 }
  0x40   :  { %p7812_p13 = scmp.ne.s32.totalorder %s24_s19, %s7811_s5  ;;  %p7817_p1 = scmp.lt.s32.totalorder %s7811_s5, %s7811_s5 }
  0x42   :  { %p7818_p2 = por %p7817_p1, %p7816_p0 }
  0x44   :  { %p7819_p3 = pnand %p7818_p2, %p7812_p13 }
  0x46   :  { %7822 = shalt.err (!%p7819_p3)
}
  0x47   :  { %26 = dma.hbm_to_vmem [thread:$0]  %s8158_s0, 512, %s24_s19, [#allocation3]  }
  0x48   :  { %s7823_s9 = scalar_lea.hbm %s8160_s2, 64 }
  0x49   :  { %p7824_p4 = scmp.ne.s32.totalorder %s8160_s2, %s7823_s9  ;;  %p7827_p5 = scmp.lt.u32.totalorder %s7823_s9, %s8160_s2 }
  0x4b   :  { %p7829_p6 = pnand %p7827_p5, %p7824_p4 }
  0x4d   :  { %7832 = shalt.err (!%p7829_p6)
}
  0x4e   :  { %s7833_s14 = scalar_lea.vmem %s46_s21, 64  ;;  %p7838_p8 = scmp.lt.s32.totalorder %s46_s21, %s46_s21 }
  0x4f   :  { %p7834_p7 = scmp.ne.s32.totalorder %s46_s21, %s7833_s14  ;;  %p7839_p9 = scmp.lt.s32.totalorder %s7833_s14, %s7833_s14 }
  0x51   :  { %p7840_p10 = por %p7839_p9, %p7838_p8 }
  0x53   :  { %p7841_p11 = pnand %p7840_p10, %p7834_p7 }
  0x55   :  { %7844 = shalt.err (!%p7841_p11)
}
  0x56   :  { %48 = dma.hbm_to_vmem [thread:$0]  %s8160_s2, 64, %s46_s21, [#allocation6]  }
  0x57   :  { %s7932_s15 = smov [#allocation10]   ;;  %s7933_s17 = smov [#allocation13]  }
  0x58   :  { %s67_s16 = sshll.u32 %s7932_s15, 4  ;;  %s89_s18 = sshll.u32 %s7933_s17, 4  ;;  %s68_s16 = int_to_ptr.vmem [resolvable:$true] %s67_s16  ;;  %s90_s18 = int_to_ptr.vmem [resolvable:$true] %s89_s18 }
  0x59   :  { %s7845_s22 = scalar_lea.hbm %s8162_s4, 192 }
  0x5a   :  { %p7846_p12 = scmp.ne.s32.totalorder %s8162_s4, %s7845_s22  ;;  %p7849_p13 = scmp.lt.u32.totalorder %s7845_s22, %s8162_s4 }
  0x5c   :  { %p7851_p0 = pnand %p7849_p13, %p7846_p12 }
  0x5e   :  { %7854 = shalt.err (!%p7851_p0)
}
  0x5f   :  { %s7855_s2 = scalar_lea.vmem %s68_s16, 192  ;;  %p7860_p2 = scmp.lt.s32.totalorder %s68_s16, %s68_s16 }
  0x60   :  { %p7856_p1 = scmp.ne.s32.totalorder %s68_s16, %s7855_s2  ;;  %p7861_p3 = scmp.lt.s32.totalorder %s7855_s2, %s7855_s2 }
  0x62   :  { %p7862_p4 = por %p7861_p3, %p7860_p2 }
  0x64   :  { %p7863_p5 = pnand %p7862_p4, %p7856_p1 }
  0x66   :  { %7866 = shalt.err (!%p7863_p5)
}
  0x67   :  { %70 = dma.hbm_to_vmem [thread:$0]  %s8162_s4, 192, %s68_s16, [#allocation9]  }
  0x68   :  { %s7867_s28 = scalar_lea.hbm %s8164_s6, 48 }
  0x69   :  { %p7868_p6 = scmp.ne.s32.totalorder %s8164_s6, %s7867_s28  ;;  %p7871_p7 = scmp.lt.u32.totalorder %s7867_s28, %s8164_s6 }
  0x6b   :  { %p7873_p8 = pnand %p7871_p7, %p7868_p6 }
  0x6d   :  { %7876 = shalt.err (!%p7873_p8)
}
  0x6e   :  { %s7877_s10 = scalar_lea.vmem %s90_s18, 48  ;;  %s7881_s11 = scalar_lea.vmem %s90_s18, 64 }
  0x6f   :  { %p7878_p9 = scmp.ne.s32.totalorder %s90_s18, %s7877_s10  ;;  %p7882_p10 = scmp.lt.s32.totalorder %s90_s18, %s90_s18 }
  0x70   :  { %p7883_p11 = scmp.lt.s32.totalorder %s7881_s11, %s7877_s10 }
  0x72   :  { %p7884_p12 = por %p7883_p11, %p7882_p10 }
  0x74   :  { %p7885_p13 = pnand %p7884_p12, %p7878_p9 }
  0x76   :  { %7888 = shalt.err (!%p7885_p13)
}
  0x77   :  { %92 = dma.hbm_to_vmem [thread:$0]  %s8164_s6, 48, %s90_s18, [#allocation12]  }
  0x78   :  { %7911 = dma.done.wait [#allocation3], 512  }
  0x79   :  { %7912 = vsyncadd [#allocation3], 4294966784 }
  0x7a   :  { %7913 = dma.done.wait [#allocation6], 32832  }
  0x7b   :  { %7914 = vsyncadd [#allocation6], 4294934464 }
  0x7c   :  { %7915 = dma.done.wait [#allocation9], 49344  }
  0x7d   :  { %7916 = vsyncadd [#allocation9], 4294917952 }
  0x7e   :  { %7917 = dma.done.wait [#allocation12], 12336  }
  0x7f   :  { %7918 = vsyncadd [#allocation12], 4294954960  ;;  %v6639_v0 = vld [vmem:[#allocation5 + $0x4] ss:$16 sps:$4 sm:$0xff]   ;;  %v6641_v1 = vld [vmem:[#allocation5 + $0xc] ss:$16 sps:$4 sm:$0xff]  }
  0x80   :  { %1705 = vmatprep.subr.bf16.mxu0 %v6639_v0  ;;  %v6643_v2 = vld [vmem:[#allocation5] ss:$16 sps:$4 sm:$0xff]   ;;  %v6644_v3 = vld [vmem:[#allocation5 + $0x8] ss:$16 sps:$4 sm:$0xff]   ;;  %1869 = vmatprep.subr.bf16.mxu1 %v6641_v1  ;;  %v6645_v4 = vld [vmem:[#allocation5 + $0x24] ss:$16 sps:$4 sm:$0xff]  }
  0x81   :  { %1706 = vmatpush1.bf16.msra.mxu0 %v6643_v2  ;;  %1870 = vmatpush1.bf16.msra.mxu1 %v6644_v3  ;;  %v6647_v5 = vld [vmem:[#allocation5 + $0x2c] ss:$16 sps:$4 sm:$0xff]   ;;  %v6649_v6 = vld [vmem:[#allocation5 + $0x20] ss:$16 sps:$4 sm:$0xff]   ;;  %v6650_v7 = vld [vmem:[#allocation5 + $0x28] ss:$16 sps:$4 sm:$0xff]  }
  0x82   :  { %1707 = vmatprep.subr.bf16.mxu0 %v6645_v4  ;;  %1871 = vmatprep.subr.bf16.mxu1 %v6647_v5  ;;  %v6651_v8 = vld [vmem:[#allocation5 + $0x44] ss:$16 sps:$4 sm:$0xff]   ;;  %v6653_v9 = vld [vmem:[#allocation5 + $0x4c] ss:$16 sps:$4 sm:$0xff]   ;;  %v6655_v10 = vld [vmem:[#allocation5 + $0x40] ss:$16 sps:$4 sm:$0xff]  }
  0x83   :  { %v6656_v11 = vld [vmem:[#allocation5 + $0x48] ss:$16 sps:$4 sm:$0xff]   ;;  %v6657_v12 = vld [vmem:[#allocation5 + $0x64] ss:$16 sps:$4 sm:$0xff]   ;;  %v6659_v13 = vld [vmem:[#allocation5 + $0x6c] ss:$16 sps:$4 sm:$0xff]  }
  0x84   :  { %v6661_v14 = vld [vmem:[#allocation5 + $0x60] ss:$16 sps:$4 sm:$0xff]   ;;  %v6662_v15 = vld [vmem:[#allocation5 + $0x68] ss:$16 sps:$4 sm:$0xff]   ;;  %v6663_v16 = vld [vmem:[#allocation5 + $0x84] ss:$16 sps:$4 sm:$0xff]  }
  0x85   :  { %1708 = vmatpush1.bf16.msra.mxu0 %v6649_v6  ;;  %1872 = vmatpush1.bf16.msra.mxu1 %v6650_v7  ;;  %v6665_v17 = vld [vmem:[#allocation5 + $0x8c] ss:$16 sps:$4 sm:$0xff]   ;;  %v6667_v18 = vld [vmem:[#allocation5 + $0x80] ss:$16 sps:$4 sm:$0xff]   ;;  %v6668_v19 = vld [vmem:[#allocation5 + $0x88] ss:$16 sps:$4 sm:$0xff]  }
  0x86   :  { %1709 = vmatprep.subr.bf16.mxu0 %v6651_v8  ;;  %1873 = vmatprep.subr.bf16.mxu1 %v6653_v9  ;;  %v6669_v20 = vld [vmem:[#allocation5 + $0xa4] ss:$16 sps:$4 sm:$0xff]   ;;  %v6671_v21 = vld [vmem:[#allocation5 + $0xac] ss:$16 sps:$4 sm:$0xff]   ;;  %v6673_v22 = vld [vmem:[#allocation5 + $0xa0] ss:$16 sps:$4 sm:$0xff]  }
  0x87   :  { %v6674_v23 = vld [vmem:[#allocation5 + $0xa8] ss:$16 sps:$4 sm:$0xff]   ;;  %v6675_v24 = vld [vmem:[#allocation5 + $0xc4] ss:$16 sps:$4 sm:$0xff]   ;;  %v6677_v25 = vld [vmem:[#allocation5 + $0xcc] ss:$16 sps:$4 sm:$0xff]  }
  0x88   :  { %v6679_v26 = vld [vmem:[#allocation5 + $0xc0] ss:$16 sps:$4 sm:$0xff]   ;;  %v6680_v27 = vld [vmem:[#allocation5 + $0xc8] ss:$16 sps:$4 sm:$0xff]   ;;  %v6681_v28 = vld [vmem:[#allocation5 + $0xe4] ss:$16 sps:$4 sm:$0xff]  }
  0x89   :  { %1710 = vmatpush1.bf16.msra.mxu0 %v6655_v10  ;;  %1874 = vmatpush1.bf16.msra.mxu1 %v6656_v11  ;;  %v6683_v29 = vld [vmem:[#allocation5 + $0xec] ss:$16 sps:$4 sm:$0xff]   ;;  %v6685_v30 = vld [vmem:[#allocation5 + $0xe0] ss:$16 sps:$4 sm:$0xff]   ;;  %v6686_v31 = vld [vmem:[#allocation5 + $0xe8] ss:$16 sps:$4 sm:$0xff]  }
  0x8a   :  { %1711 = vmatprep.subr.bf16.mxu0 %v6657_v12  ;;  %1875 = vmatprep.subr.bf16.mxu1 %v6659_v13  ;;  %v6687_v32 = vld [vmem:[#allocation5 + $0x104] ss:$16 sps:$4 sm:$0xff]   ;;  %v6689_v33 = vld [vmem:[#allocation5 + $0x10c] ss:$16 sps:$4 sm:$0xff]   ;;  %v6691_v34 = vld [vmem:[#allocation5 + $0x100] ss:$16 sps:$4 sm:$0xff]  }
  0x8b   :  { %v6692_v35 = vld [vmem:[#allocation5 + $0x108] ss:$16 sps:$4 sm:$0xff]   ;;  %v6693_v36 = vld [vmem:[#allocation5 + $0x124] ss:$16 sps:$4 sm:$0xff]   ;;  %v6695_v37 = vld [vmem:[#allocation5 + $0x12c] ss:$16 sps:$4 sm:$0xff]  }
  0x8c   :  { %v6697_v38 = vld [vmem:[#allocation5 + $0x120] ss:$16 sps:$4 sm:$0xff]   ;;  %v6698_v39 = vld [vmem:[#allocation5 + $0x128] ss:$16 sps:$4 sm:$0xff]   ;;  %v6699_v40 = vld [vmem:[#allocation5 + $0x144] ss:$16 sps:$4 sm:$0xff]  }
  0x8d   :  { %1712 = vmatpush1.bf16.msra.mxu0 %v6661_v14  ;;  %1876 = vmatpush1.bf16.msra.mxu1 %v6662_v15  ;;  %v6701_v41 = vld [vmem:[#allocation5 + $0x14c] ss:$16 sps:$4 sm:$0xff]   ;;  %v6703_v42 = vld [vmem:[#allocation5 + $0x140] ss:$16 sps:$4 sm:$0xff]   ;;  %v6704_v43 = vld [vmem:[#allocation5 + $0x148] ss:$16 sps:$4 sm:$0xff]  }
  0x8e   :  { %1713 = vmatprep.subr.bf16.mxu0 %v6663_v16  ;;  %1877 = vmatprep.subr.bf16.mxu1 %v6665_v17  ;;  %v6705_v44 = vld [vmem:[#allocation5 + $0x164] ss:$16 sps:$4 sm:$0xff]   ;;  %v6707_v45 = vld [vmem:[#allocation5 + $0x16c] ss:$16 sps:$4 sm:$0xff]   ;;  %v6709_v47 = vld [vmem:[#allocation5 + $0x160] ss:$16 sps:$4 sm:$0xff]  }
  0x8f   :  { %v115_v46 = vld [vmem:[#allocation2] sm:$0xff]  ;;  %v6710_v49 = vld [vmem:[#allocation5 + $0x168] ss:$16 sps:$4 sm:$0xff]   ;;  %v6713_v51 = vld [vmem:[#allocation5 + $0x18c] ss:$16 sps:$4 sm:$0xff]   ;;  %s7934_s6 = smov [#allocation14]  }
  0x90   :  { %v5768_v48 = vcombine.high %v115_v46, %v115_v46  ;;  %v6711_v50 = vld [vmem:[#allocation5 + $0x184] ss:$16 sps:$4 sm:$0xff]   ;;  %v6715_v52 = vld [vmem:[#allocation5 + $0x180] ss:$16 sps:$4 sm:$0xff]   ;;  %v6716_v53 = vld [vmem:[#allocation5 + $0x188] ss:$16 sps:$4 sm:$0xff]   ;;  %v5767_v4 = vcombine.low %v115_v46, %v115_v46 }
  0x91   :  { %1714 = vmatpush1.bf16.msra.mxu0 %v6667_v18  ;;  %1878 = vmatpush1.bf16.msra.mxu1 %v6668_v19  ;;  %v6717_v54 = vld [vmem:[#allocation5 + $0x1a4] ss:$16 sps:$4 sm:$0xff]   ;;  %v6719_v55 = vld [vmem:[#allocation5 + $0x1ac] ss:$16 sps:$4 sm:$0xff]   ;;  %v6721_v56 = vld [vmem:[#allocation5 + $0x1a0] ss:$16 sps:$4 sm:$0xff]  }
  0x92   :  { %1715 = vmatprep.subr.bf16.mxu0 %v6669_v20  ;;  %1879 = vmatprep.subr.bf16.mxu1 %v6671_v21  ;;  %v6722_v57 = vld [vmem:[#allocation5 + $0x1a8] ss:$16 sps:$4 sm:$0xff]   ;;  %v6723_v58 = vld [vmem:[#allocation5 + $0x1c4] ss:$16 sps:$4 sm:$0xff]   ;;  %v6725_v59 = vld [vmem:[#allocation5 + $0x1cc] ss:$16 sps:$4 sm:$0xff]  }
  0x93   :  { %1737 = vmatprep.mubr.bf16.mxu0 %v5768_v48  ;;  %1901 = vmatprep.mubr.bf16.mxu1 %v5768_v48  ;;  %v6727_v60 = vld [vmem:[#allocation5 + $0x1c0] ss:$16 sps:$4 sm:$0xff]   ;;  %v6728_v61 = vld [vmem:[#allocation5 + $0x1c8] ss:$16 sps:$4 sm:$0xff]   ;;  %v6729_v62 = vld [vmem:[#allocation5 + $0x1e4] ss:$16 sps:$4 sm:$0xff]  }
  0x94   :  { %v6731_v63 = vld [vmem:[#allocation5 + $0x1ec] ss:$16 sps:$4 sm:$0xff]   ;;  %v6733_v0 = vld [vmem:[#allocation5 + $0x1e0] ss:$16 sps:$4 sm:$0xff]   ;;  %v6734_v1 = vld [vmem:[#allocation5 + $0x1e8] ss:$16 sps:$4 sm:$0xff]  }
  0x95   :  { %1716 = vmatpush1.bf16.msra.mxu0 %v6673_v22  ;;  %1880 = vmatpush1.bf16.msra.mxu1 %v6674_v23  ;;  %v6739_v2 = vld [vmem:[#allocation5 + $0x204] ss:$16 sps:$4 sm:$0xff]   ;;  %v6742_v3 = vld [vmem:[#allocation5 + $0x20c] ss:$16 sps:$4 sm:$0xff]   ;;  %v6737_v5 = vld [vmem:[#allocation5 + $0x200] ss:$16 sps:$4 sm:$0xff]  }
  0x96   :  { %1717 = vmatprep.subr.bf16.mxu0 %v6675_v24  ;;  %1881 = vmatprep.subr.bf16.mxu1 %v6677_v25  ;;  %v6740_v6 = vld [vmem:[#allocation5 + $0x208] ss:$16 sps:$4 sm:$0xff]   ;;  %v6745_v7 = vld [vmem:[#allocation5 + $0x224] ss:$16 sps:$4 sm:$0xff]   ;;  %v6748_v8 = vld [vmem:[#allocation5 + $0x22c] ss:$16 sps:$4 sm:$0xff]  }
  0x97   :  { %v6743_v9 = vld [vmem:[#allocation5 + $0x220] ss:$16 sps:$4 sm:$0xff]   ;;  %v6746_v10 = vld [vmem:[#allocation5 + $0x228] ss:$16 sps:$4 sm:$0xff]   ;;  %v6751_v11 = vld [vmem:[#allocation5 + $0x244] ss:$16 sps:$4 sm:$0xff]  }
  0x98   :  { %v6754_v12 = vld [vmem:[#allocation5 + $0x24c] ss:$16 sps:$4 sm:$0xff]   ;;  %v6749_v13 = vld [vmem:[#allocation5 + $0x240] ss:$16 sps:$4 sm:$0xff]   ;;  %v6752_v14 = vld [vmem:[#allocation5 + $0x248] ss:$16 sps:$4 sm:$0xff]  }
  0x99   :  { %1718 = vmatpush1.bf16.msra.mxu0 %v6679_v26  ;;  %1882 = vmatpush1.bf16.msra.mxu1 %v6680_v27  ;;  %v6757_v15 = vld [vmem:[#allocation5 + $0x264] ss:$16 sps:$4 sm:$0xff]   ;;  %v6760_v16 = vld [vmem:[#allocation5 + $0x26c] ss:$16 sps:$4 sm:$0xff]   ;;  %v6755_v17 = vld [vmem:[#allocation5 + $0x260] ss:$16 sps:$4 sm:$0xff]  }
  0x9a   :  { %1719 = vmatprep.subr.bf16.mxu0 %v6681_v28  ;;  %1883 = vmatprep.subr.bf16.mxu1 %v6683_v29  ;;  %v6758_v18 = vld [vmem:[#allocation5 + $0x268] ss:$16 sps:$4 sm:$0xff]   ;;  %v6763_v19 = vld [vmem:[#allocation5 + $0x284] ss:$16 sps:$4 sm:$0xff]   ;;  %v6766_v20 = vld [vmem:[#allocation5 + $0x28c] ss:$16 sps:$4 sm:$0xff]  }
  0x9b   :  { %v6761_v21 = vld [vmem:[#allocation5 + $0x280] ss:$16 sps:$4 sm:$0xff]   ;;  %v6764_v22 = vld [vmem:[#allocation5 + $0x288] ss:$16 sps:$4 sm:$0xff]   ;;  %v6769_v23 = vld [vmem:[#allocation5 + $0x2a4] ss:$16 sps:$4 sm:$0xff]  }
  0x9c   :  { %v6772_v24 = vld [vmem:[#allocation5 + $0x2ac] ss:$16 sps:$4 sm:$0xff]   ;;  %v6767_v25 = vld [vmem:[#allocation5 + $0x2a0] ss:$16 sps:$4 sm:$0xff]   ;;  %v6770_v26 = vld [vmem:[#allocation5 + $0x2a8] ss:$16 sps:$4 sm:$0xff]  }
  0x9d   :  { %1720 = vmatpush1.bf16.msra.mxu0 %v6685_v30  ;;  %1884 = vmatpush1.bf16.msra.mxu1 %v6686_v31  ;;  %v6775_v27 = vld [vmem:[#allocation5 + $0x2c4] ss:$16 sps:$4 sm:$0xff]   ;;  %v6778_v28 = vld [vmem:[#allocation5 + $0x2cc] ss:$16 sps:$4 sm:$0xff]   ;;  %v6773_v31 = vld [vmem:[#allocation5 + $0x2c0] ss:$16 sps:$4 sm:$0xff]  }
  0x9e   :  { %1721 = vmatprep.subr.bf16.mxu0 %v6687_v32  ;;  %1885 = vmatprep.subr.bf16.mxu1 %v6689_v33  ;;  %v8059_v29 = vld [vmem:[#allocation2 + $0x8] sm:$0xff]  ;;  %v6781_v33 = vld [vmem:[#allocation5 + $0x2e4] ss:$16 sps:$4 sm:$0xff]   ;;  %s5755_s13 = sshll.u32 %s7934_s6, 4  ;;  %s5756_s13 = int_to_ptr.vmem [resolvable:$true] %s5755_s13 }
  0x9f   :  { %v5770_v30 = vcombine.high %v8059_v29, %v8059_v29  ;;  %v6776_v32 = vld [vmem:[#allocation5 + $0x2c8] ss:$16 sps:$4 sm:$0xff]   ;;  %v6802_v46 = vld [vmem:[#allocation5 + $0x34c] ss:$16 sps:$4 sm:$0xff]   ;;  %s7889_s14 = scalar_lea.vmem %s5756_s13, 384  ;;  %p7894_p1 = scmp.lt.s32.totalorder %s5756_s13, %s5756_s13 }
  0xa0   :  { %v6800_v48 = vld [vmem:[#allocation5 + $0x348] ss:$16 sps:$4 sm:$0xff]   ;;  %p7890_p0 = scmp.ne.s32.totalorder %s5756_s13, %s7889_s14  ;;  %p7895_p2 = scmp.lt.s32.totalorder %s7889_s14, %s7889_s14 }
  0xa1   :  { %1722 = vmatpush1.bf16.msra.mxu0 %v6691_v34  ;;  %1886 = vmatpush1.bf16.msra.mxu1 %v6692_v35  ;;  %v6784_v34 = vld [vmem:[#allocation5 + $0x2ec] ss:$16 sps:$4 sm:$0xff]   ;;  %v6779_v35 = vld [vmem:[#allocation5 + $0x2e0] ss:$16 sps:$4 sm:$0xff]  }
  0xa2   :  { %1723 = vmatprep.subr.bf16.mxu0 %v6693_v36  ;;  %1887 = vmatprep.subr.bf16.mxu1 %v6695_v37  ;;  %v6782_v36 = vld [vmem:[#allocation5 + $0x2e8] ss:$16 sps:$4 sm:$0xff]   ;;  %v6787_v37 = vld [vmem:[#allocation5 + $0x304] ss:$16 sps:$4 sm:$0xff]   ;;  %p7896_p3 = por %p7895_p2, %p7894_p1 }
  0xa4   :  { %p7897_p4 = pnand %p7896_p3, %p7890_p0 }
  0xa5   :  { %1724 = vmatpush1.bf16.msra.mxu0 %v6697_v38  ;;  %1888 = vmatpush1.bf16.msra.mxu1 %v6698_v39  ;;  %v6790_v38 = vld [vmem:[#allocation5 + $0x30c] ss:$16 sps:$4 sm:$0xff]   ;;  %v6785_v39 = vld [vmem:[#allocation5 + $0x300] ss:$16 sps:$4 sm:$0xff]  }
  0xa6   :  { %1725 = vmatprep.subr.bf16.mxu0 %v6699_v40  ;;  %1889 = vmatprep.subr.bf16.mxu1 %v6701_v41  ;;  %v6788_v40 = vld [vmem:[#allocation5 + $0x308] ss:$16 sps:$4 sm:$0xff]   ;;  %v6793_v41 = vld [vmem:[#allocation5 + $0x324] ss:$16 sps:$4 sm:$0xff]  }
  0xa9   :  { %1726 = vmatpush1.bf16.msra.mxu0 %v6703_v42  ;;  %1890 = vmatpush1.bf16.msra.mxu1 %v6704_v43  ;;  %v6796_v42 = vld [vmem:[#allocation5 + $0x32c] ss:$16 sps:$4 sm:$0xff]   ;;  %v6791_v43 = vld [vmem:[#allocation5 + $0x320] ss:$16 sps:$4 sm:$0xff]  }
  0xaa   :  { %1727 = vmatprep.subr.bf16.mxu0 %v6705_v44  ;;  %1891 = vmatprep.subr.bf16.mxu1 %v6707_v45  ;;  %v6794_v44 = vld [vmem:[#allocation5 + $0x328] ss:$16 sps:$4 sm:$0xff]   ;;  %v6799_v45 = vld [vmem:[#allocation5 + $0x344] ss:$16 sps:$4 sm:$0xff]  }
  0xad   :  { %1728 = vmatpush1.bf16.msra.mxu0 %v6709_v47  ;;  %1892 = vmatpush1.bf16.msra.mxu1 %v6710_v49  ;;  %v6797_v47 = vld [vmem:[#allocation5 + $0x340] ss:$16 sps:$4 sm:$0xff]   ;;  %v6805_v49 = vld [vmem:[#allocation5 + $0x364] ss:$16 sps:$4 sm:$0xff]  }
  0xae   :  { %1729 = vmatprep.subr.bf16.mxu0 %v6711_v50  ;;  %1893 = vmatprep.subr.bf16.mxu1 %v6713_v51  ;;  %v6808_v50 = vld [vmem:[#allocation5 + $0x36c] ss:$16 sps:$4 sm:$0xff]   ;;  %v6803_v51 = vld [vmem:[#allocation5 + $0x360] ss:$16 sps:$4 sm:$0xff]  }
  0xb1   :  { %1730 = vmatpush1.bf16.msra.mxu0 %v6715_v52  ;;  %1894 = vmatpush1.bf16.msra.mxu1 %v6716_v53  ;;  %v6806_v52 = vld [vmem:[#allocation5 + $0x368] ss:$16 sps:$4 sm:$0xff]   ;;  %v6811_v53 = vld [vmem:[#allocation5 + $0x384] ss:$16 sps:$4 sm:$0xff]  }
  0xb2   :  { %1731 = vmatprep.subr.bf16.mxu0 %v6717_v54  ;;  %1895 = vmatprep.subr.bf16.mxu1 %v6719_v55  ;;  %v6814_v54 = vld [vmem:[#allocation5 + $0x38c] ss:$16 sps:$4 sm:$0xff]   ;;  %v6809_v55 = vld [vmem:[#allocation5 + $0x380] ss:$16 sps:$4 sm:$0xff]  }
  0xb5   :  { %1732 = vmatpush1.bf16.msra.mxu0 %v6721_v56  ;;  %1896 = vmatpush1.bf16.msra.mxu1 %v6722_v57  ;;  %v6812_v56 = vld [vmem:[#allocation5 + $0x388] ss:$16 sps:$4 sm:$0xff]   ;;  %v6817_v57 = vld [vmem:[#allocation5 + $0x3a4] ss:$16 sps:$4 sm:$0xff]  }
  0xb6   :  { %1733 = vmatprep.subr.bf16.mxu0 %v6723_v58  ;;  %1897 = vmatprep.subr.bf16.mxu1 %v6725_v59  ;;  %v6820_v58 = vld [vmem:[#allocation5 + $0x3ac] ss:$16 sps:$4 sm:$0xff]   ;;  %v6815_v59 = vld [vmem:[#allocation5 + $0x3a0] ss:$16 sps:$4 sm:$0xff]  }
  0xb9   :  { %1734 = vmatpush1.bf16.msra.mxu0 %v6727_v60  ;;  %1898 = vmatpush1.bf16.msra.mxu1 %v6728_v61  ;;  %v6818_v60 = vld [vmem:[#allocation5 + $0x3a8] ss:$16 sps:$4 sm:$0xff]   ;;  %v6823_v61 = vld [vmem:[#allocation5 + $0x3c4] ss:$16 sps:$4 sm:$0xff]  }
  0xba   :  { %1735 = vmatprep.subr.bf16.mxu0 %v6729_v62  ;;  %1899 = vmatprep.subr.bf16.mxu1 %v6731_v63  ;;  %v6826_v62 = vld [vmem:[#allocation5 + $0x3cc] ss:$16 sps:$4 sm:$0xff]   ;;  %v6821_v63 = vld [vmem:[#allocation5 + $0x3c0] ss:$16 sps:$4 sm:$0xff]  }
  0xbd   :  { %1736 = vmatpush1.bf16.msra.mxu0 %v6733_v0  ;;  %1900 = vmatpush1.bf16.msra.mxu1 %v6734_v1  ;;  %v6824_v0 = vld [vmem:[#allocation5 + $0x3c8] ss:$16 sps:$4 sm:$0xff]   ;;  %v6829_v1 = vld [vmem:[#allocation5 + $0x3e4] ss:$16 sps:$4 sm:$0xff]  }
  0xbe   :  { %1746 = vmatprep.subr.bf16.mxu0 %v6739_v2  ;;  %1910 = vmatprep.subr.bf16.mxu1 %v6742_v3  ;;  %v6832_v2 = vld [vmem:[#allocation5 + $0x3ec] ss:$16 sps:$4 sm:$0xff]   ;;  %v6827_v3 = vld [vmem:[#allocation5 + $0x3e0] ss:$16 sps:$4 sm:$0xff]  }
  0xc0   :  { %1738 = vmatmul.mubr.bf16.vlgmr.msra.gmra.mrb[0].mxu0 %v5767_v4  ;;  %1902 = vmatmul.mubr.bf16.vlgmr.msra.gmra.mrb[0].mxu1 %v5767_v4  ;;  %v6830_v4 = vld [vmem:[#allocation5 + $0x3e8] ss:$16 sps:$4 sm:$0xff]  }
  0xc1   :  { %1747 = vmatpush1.bf16.msra.mxu0 %v6737_v5  ;;  %1911 = vmatpush1.bf16.msra.mxu1 %v6740_v6  ;;  %v6837_v5 = vld [vmem:[#allocation5 + $0x404] ss:$16 sps:$4 sm:$0xff]   ;;  %v6840_v6 = vld [vmem:[#allocation5 + $0x40c] ss:$16 sps:$4 sm:$0xff]  }
  0xc2   :  { %1748 = vmatprep.subr.bf16.mxu0 %v6745_v7  ;;  %1912 = vmatprep.subr.bf16.mxu1 %v6748_v8  ;;  %v5769_v7 = vcombine.low %v8059_v29, %v8059_v29  ;;  %v6835_v8 = vld [vmem:[#allocation5 + $0x400] ss:$16 sps:$4 sm:$0xff]   ;;  %v6870_v29 = vld [vmem:[#allocation5 + $0x4ac] ss:$16 sps:$4 sm:$0xff]  }
  0xc3   :  { %1778 = vmatprep.mubr.bf16.mxu0 %v5770_v30  ;;  %1942 = vmatprep.mubr.bf16.mxu1 %v5770_v30  ;;  %v6865_v30 = vld [vmem:[#allocation5 + $0x4a0] ss:$16 sps:$4 sm:$0xff]  }
  0xc5   :  { %1749 = vmatpush1.bf16.msra.mxu0 %v6743_v9  ;;  %1913 = vmatpush1.bf16.msra.mxu1 %v6746_v10  ;;  %v6838_v9 = vld [vmem:[#allocation5 + $0x408] ss:$16 sps:$4 sm:$0xff]   ;;  %v6843_v10 = vld [vmem:[#allocation5 + $0x424] ss:$16 sps:$4 sm:$0xff]  }
  0xc6   :  { %1750 = vmatprep.subr.bf16.mxu0 %v6751_v11  ;;  %1914 = vmatprep.subr.bf16.mxu1 %v6754_v12  ;;  %v8065_v11 = vld [vmem:[#allocation2 + $0x10] sm:$0xff]  ;;  %v6846_v12 = vld [vmem:[#allocation5 + $0x42c] ss:$16 sps:$4 sm:$0xff]  }
  0xc9   :  { %1751 = vmatpush1.bf16.msra.mxu0 %v6749_v13  ;;  %1915 = vmatpush1.bf16.msra.mxu1 %v6752_v14  ;;  %v5772_v13 = vcombine.high %v8065_v11, %v8065_v11  ;;  %v6841_v14 = vld [vmem:[#allocation5 + $0x420] ss:$16 sps:$4 sm:$0xff]  }
  0xca   :  { %1752 = vmatprep.subr.bf16.mxu0 %v6757_v15  ;;  %1916 = vmatprep.subr.bf16.mxu1 %v6760_v16  ;;  %v6844_v15 = vld [vmem:[#allocation5 + $0x428] ss:$16 sps:$4 sm:$0xff]   ;;  %v6849_v16 = vld [vmem:[#allocation5 + $0x444] ss:$16 sps:$4 sm:$0xff]  }
  0xcd   :  { %1753 = vmatpush1.bf16.msra.mxu0 %v6755_v17  ;;  %1917 = vmatpush1.bf16.msra.mxu1 %v6758_v18  ;;  %v6852_v17 = vld [vmem:[#allocation5 + $0x44c] ss:$16 sps:$4 sm:$0xff]   ;;  %v6847_v18 = vld [vmem:[#allocation5 + $0x440] ss:$16 sps:$4 sm:$0xff]  }
  0xce   :  { %1754 = vmatprep.subr.bf16.mxu0 %v6763_v19  ;;  %1918 = vmatprep.subr.bf16.mxu1 %v6766_v20  ;;  %v6850_v19 = vld [vmem:[#allocation5 + $0x448] ss:$16 sps:$4 sm:$0xff]   ;;  %v6855_v20 = vld [vmem:[#allocation5 + $0x464] ss:$16 sps:$4 sm:$0xff]  }
  0xd1   :  { %1755 = vmatpush1.bf16.msra.mxu0 %v6761_v21  ;;  %1919 = vmatpush1.bf16.msra.mxu1 %v6764_v22  ;;  %v6858_v21 = vld [vmem:[#allocation5 + $0x46c] ss:$16 sps:$4 sm:$0xff]   ;;  %v6853_v22 = vld [vmem:[#allocation5 + $0x460] ss:$16 sps:$4 sm:$0xff]  }
  0xd2   :  { %1756 = vmatprep.subr.bf16.mxu0 %v6769_v23  ;;  %1920 = vmatprep.subr.bf16.mxu1 %v6772_v24  ;;  %v6856_v23 = vld [vmem:[#allocation5 + $0x468] ss:$16 sps:$4 sm:$0xff]   ;;  %v6861_v24 = vld [vmem:[#allocation5 + $0x484] ss:$16 sps:$4 sm:$0xff]  }
  0xd5   :  { %1757 = vmatpush1.bf16.msra.mxu0 %v6767_v25  ;;  %1921 = vmatpush1.bf16.msra.mxu1 %v6770_v26  ;;  %v6864_v25 = vld [vmem:[#allocation5 + $0x48c] ss:$16 sps:$4 sm:$0xff]   ;;  %v6859_v26 = vld [vmem:[#allocation5 + $0x480] ss:$16 sps:$4 sm:$0xff]  }
  0xd6   :  { %1758 = vmatprep.subr.bf16.mxu0 %v6775_v27  ;;  %1922 = vmatprep.subr.bf16.mxu1 %v6778_v28  ;;  %v6862_v27 = vld [vmem:[#allocation5 + $0x488] ss:$16 sps:$4 sm:$0xff]   ;;  %v6867_v28 = vld [vmem:[#allocation5 + $0x4a4] ss:$16 sps:$4 sm:$0xff]  }
  0xd9   :  { %1759 = vmatpush1.bf16.msra.mxu0 %v6773_v31  ;;  %1923 = vmatpush1.bf16.msra.mxu1 %v6776_v32  ;;  %v6868_v31 = vld [vmem:[#allocation5 + $0x4a8] ss:$16 sps:$4 sm:$0xff]   ;;  %v6873_v32 = vld [vmem:[#allocation5 + $0x4c4] ss:$16 sps:$4 sm:$0xff]  }
  0xda   :  { %1760 = vmatprep.subr.bf16.mxu0 %v6781_v33  ;;  %1924 = vmatprep.subr.bf16.mxu1 %v6784_v34  ;;  %v6876_v33 = vld [vmem:[#allocation5 + $0x4cc] ss:$16 sps:$4 sm:$0xff]   ;;  %v6871_v34 = vld [vmem:[#allocation5 + $0x4c0] ss:$16 sps:$4 sm:$0xff]  }
  0xdd   :  { %1761 = vmatpush1.bf16.msra.mxu0 %v6779_v35  ;;  %1925 = vmatpush1.bf16.msra.mxu1 %v6782_v36  ;;  %v6874_v35 = vld [vmem:[#allocation5 + $0x4c8] ss:$16 sps:$4 sm:$0xff]   ;;  %v6879_v36 = vld [vmem:[#allocation5 + $0x4e4] ss:$16 sps:$4 sm:$0xff]  }
  0xde   :  { %1762 = vmatprep.subr.bf16.mxu0 %v6787_v37  ;;  %1926 = vmatprep.subr.bf16.mxu1 %v6790_v38  ;;  %v6882_v37 = vld [vmem:[#allocation5 + $0x4ec] ss:$16 sps:$4 sm:$0xff]   ;;  %v6877_v38 = vld [vmem:[#allocation5 + $0x4e0] ss:$16 sps:$4 sm:$0xff]  }
  0xe1   :  { %1763 = vmatpush1.bf16.msra.mxu0 %v6785_v39  ;;  %1927 = vmatpush1.bf16.msra.mxu1 %v6788_v40  ;;  %v6880_v39 = vld [vmem:[#allocation5 + $0x4e8] ss:$16 sps:$4 sm:$0xff]   ;;  %v6885_v40 = vld [vmem:[#allocation5 + $0x504] ss:$16 sps:$4 sm:$0xff]  }
  0xe2   :  { %1764 = vmatprep.subr.bf16.mxu0 %v6793_v41  ;;  %1928 = vmatprep.subr.bf16.mxu1 %v6796_v42  ;;  %v6888_v41 = vld [vmem:[#allocation5 + $0x50c] ss:$16 sps:$4 sm:$0xff]   ;;  %v6883_v42 = vld [vmem:[#allocation5 + $0x500] ss:$16 sps:$4 sm:$0xff]  }
  0xe5   :  { %1765 = vmatpush1.bf16.msra.mxu0 %v6791_v43  ;;  %1929 = vmatpush1.bf16.msra.mxu1 %v6794_v44  ;;  %v6886_v43 = vld [vmem:[#allocation5 + $0x508] ss:$16 sps:$4 sm:$0xff]   ;;  %v6891_v44 = vld [vmem:[#allocation5 + $0x524] ss:$16 sps:$4 sm:$0xff]  }
  0xe6   :  { %1766 = vmatprep.subr.bf16.mxu0 %v6799_v45  ;;  %1930 = vmatprep.subr.bf16.mxu1 %v6802_v46  ;;  %v6894_v45 = vld [vmem:[#allocation5 + $0x52c] ss:$16 sps:$4 sm:$0xff]   ;;  %v6889_v46 = vld [vmem:[#allocation5 + $0x520] ss:$16 sps:$4 sm:$0xff]  }
  0xe9   :  { %1767 = vmatpush1.bf16.msra.mxu0 %v6797_v47  ;;  %1931 = vmatpush1.bf16.msra.mxu1 %v6800_v48  ;;  %v6892_v47 = vld [vmem:[#allocation5 + $0x528] ss:$16 sps:$4 sm:$0xff]   ;;  %v6897_v48 = vld [vmem:[#allocation5 + $0x544] ss:$16 sps:$4 sm:$0xff]  }
  0xea   :  { %1768 = vmatprep.subr.bf16.mxu0 %v6805_v49  ;;  %1932 = vmatprep.subr.bf16.mxu1 %v6808_v50  ;;  %v6900_v49 = vld [vmem:[#allocation5 + $0x54c] ss:$16 sps:$4 sm:$0xff]   ;;  %v6895_v50 = vld [vmem:[#allocation5 + $0x540] ss:$16 sps:$4 sm:$0xff]  }
  0xed   :  { %1769 = vmatpush1.bf16.msra.mxu0 %v6803_v51  ;;  %1933 = vmatpush1.bf16.msra.mxu1 %v6806_v52  ;;  %v6898_v51 = vld [vmem:[#allocation5 + $0x548] ss:$16 sps:$4 sm:$0xff]   ;;  %v6903_v52 = vld [vmem:[#allocation5 + $0x564] ss:$16 sps:$4 sm:$0xff]  }
  0xee   :  { %1770 = vmatprep.subr.bf16.mxu0 %v6811_v53  ;;  %1934 = vmatprep.subr.bf16.mxu1 %v6814_v54  ;;  %v6906_v53 = vld [vmem:[#allocation5 + $0x56c] ss:$16 sps:$4 sm:$0xff]   ;;  %v6901_v54 = vld [vmem:[#allocation5 + $0x560] ss:$16 sps:$4 sm:$0xff]  }
  0xf1   :  { %1771 = vmatpush1.bf16.msra.mxu0 %v6809_v55  ;;  %1935 = vmatpush1.bf16.msra.mxu1 %v6812_v56  ;;  %v6904_v55 = vld [vmem:[#allocation5 + $0x568] ss:$16 sps:$4 sm:$0xff]   ;;  %v6909_v56 = vld [vmem:[#allocation5 + $0x584] ss:$16 sps:$4 sm:$0xff]  }
  0xf2   :  { %1772 = vmatprep.subr.bf16.mxu0 %v6817_v57  ;;  %1936 = vmatprep.subr.bf16.mxu1 %v6820_v58  ;;  %v6912_v57 = vld [vmem:[#allocation5 + $0x58c] ss:$16 sps:$4 sm:$0xff]   ;;  %v6907_v58 = vld [vmem:[#allocation5 + $0x580] ss:$16 sps:$4 sm:$0xff]  }
  0xf5   :  { %1773 = vmatpush1.bf16.msra.mxu0 %v6815_v59  ;;  %1937 = vmatpush1.bf16.msra.mxu1 %v6818_v60  ;;  %v6910_v59 = vld [vmem:[#allocation5 + $0x588] ss:$16 sps:$4 sm:$0xff]   ;;  %v6915_v60 = vld [vmem:[#allocation5 + $0x5a4] ss:$16 sps:$4 sm:$0xff]  }
  0xf6   :  { %1774 = vmatprep.subr.bf16.mxu0 %v6823_v61  ;;  %1938 = vmatprep.subr.bf16.mxu1 %v6826_v62  ;;  %v6918_v61 = vld [vmem:[#allocation5 + $0x5ac] ss:$16 sps:$4 sm:$0xff]   ;;  %v6913_v62 = vld [vmem:[#allocation5 + $0x5a0] ss:$16 sps:$4 sm:$0xff]  }
  0xf9   :  { %1775 = vmatpush1.bf16.msra.mxu0 %v6821_v63  ;;  %1939 = vmatpush1.bf16.msra.mxu1 %v6824_v0  ;;  %v6916_v63 = vld [vmem:[#allocation5 + $0x5a8] ss:$16 sps:$4 sm:$0xff]   ;;  %v6921_v0 = vld [vmem:[#allocation5 + $0x5c4] ss:$16 sps:$4 sm:$0xff]  }
  0xfa   :  { %1776 = vmatprep.subr.bf16.mxu0 %v6829_v1  ;;  %1940 = vmatprep.subr.bf16.mxu1 %v6832_v2  ;;  %v6924_v1 = vld [vmem:[#allocation5 + $0x5cc] ss:$16 sps:$4 sm:$0xff]   ;;  %v6919_v2 = vld [vmem:[#allocation5 + $0x5c0] ss:$16 sps:$4 sm:$0xff]  }
  0xfd   :  { %1777 = vmatpush1.bf16.msra.mxu0 %v6827_v3  ;;  %1941 = vmatpush1.bf16.msra.mxu1 %v6830_v4  ;;  %v6922_v3 = vld [vmem:[#allocation5 + $0x5c8] ss:$16 sps:$4 sm:$0xff]   ;;  %v6927_v4 = vld [vmem:[#allocation5 + $0x5e4] ss:$16 sps:$4 sm:$0xff]  }
  0xfe   :  { %1787 = vmatprep.subr.bf16.mxu0 %v6837_v5  ;;  %1951 = vmatprep.subr.bf16.mxu1 %v6840_v6  ;;  %v6930_v5 = vld [vmem:[#allocation5 + $0x5ec] ss:$16 sps:$4 sm:$0xff]   ;;  %v6925_v6 = vld [vmem:[#allocation5 + $0x5e0] ss:$16 sps:$4 sm:$0xff]  }
 0x100   :  { %1779 = vmatmul.mubr.bf16.vlgmr.msra.gmra.mrb[0].mxu0 %v5769_v7  ;;  %1943 = vmatmul.mubr.bf16.vlgmr.msra.gmra.mrb[0].mxu1 %v5769_v7  ;;  %v6928_v7 = vld [vmem:[#allocation5 + $0x5e8] ss:$16 sps:$4 sm:$0xff]  }
 0x101   :  { %1788 = vmatpush1.bf16.msra.mxu0 %v6835_v8  ;;  %1952 = vmatpush1.bf16.msra.mxu1 %v6838_v9  ;;  %v6935_v8 = vld [vmem:[#allocation5 + $0x604] ss:$16 sps:$4 sm:$0xff]   ;;  %v6938_v9 = vld [vmem:[#allocation5 + $0x60c] ss:$16 sps:$4 sm:$0xff]  }
 0x102   :  { %1789 = vmatprep.subr.bf16.mxu0 %v6843_v10  ;;  %1953 = vmatprep.subr.bf16.mxu1 %v6846_v12  ;;  %v6933_v10 = vld [vmem:[#allocation5 + $0x600] ss:$16 sps:$4 sm:$0xff]   ;;  %v5771_v12 = vcombine.low %v8065_v11, %v8065_v11  ;;  %v6950_v11 = vld [vmem:[#allocation5 + $0x64c] ss:$16 sps:$4 sm:$0xff]  }
 0x103   :  { %1819 = vmatprep.mubr.bf16.mxu0 %v5772_v13  ;;  %1983 = vmatprep.mubr.bf16.mxu1 %v5772_v13  ;;  %v6936_v13 = vld [vmem:[#allocation5 + $0x608] ss:$16 sps:$4 sm:$0xff]  }
 0x105   :  { %1790 = vmatpush1.bf16.msra.mxu0 %v6841_v14  ;;  %1954 = vmatpush1.bf16.msra.mxu1 %v6844_v15  ;;  %v8071_v14 = vld [vmem:[#allocation2 + $0x18] sm:$0xff]  ;;  %v6941_v15 = vld [vmem:[#allocation5 + $0x624] ss:$16 sps:$4 sm:$0xff]  }
 0x106   :  { %1791 = vmatprep.subr.bf16.mxu0 %v6849_v16  ;;  %1955 = vmatprep.subr.bf16.mxu1 %v6852_v17  ;;  %v6944_v16 = vld [vmem:[#allocation5 + $0x62c] ss:$16 sps:$4 sm:$0xff]   ;;  %v5774_v17 = vcombine.high %v8071_v14, %v8071_v14 }
 0x109   :  { %1792 = vmatpush1.bf16.msra.mxu0 %v6847_v18  ;;  %1956 = vmatpush1.bf16.msra.mxu1 %v6850_v19  ;;  %v6939_v18 = vld [vmem:[#allocation5 + $0x620] ss:$16 sps:$4 sm:$0xff]   ;;  %v6942_v19 = vld [vmem:[#allocation5 + $0x628] ss:$16 sps:$4 sm:$0xff]  }
 0x10a   :  { %1793 = vmatprep.subr.bf16.mxu0 %v6855_v20  ;;  %1957 = vmatprep.subr.bf16.mxu1 %v6858_v21  ;;  %v6947_v20 = vld [vmem:[#allocation5 + $0x644] ss:$16 sps:$4 sm:$0xff]   ;;  %v6945_v21 = vld [vmem:[#allocation5 + $0x640] ss:$16 sps:$4 sm:$0xff]  }
 0x10d   :  { %1794 = vmatpush1.bf16.msra.mxu0 %v6853_v22  ;;  %1958 = vmatpush1.bf16.msra.mxu1 %v6856_v23  ;;  %v6948_v22 = vld [vmem:[#allocation5 + $0x648] ss:$16 sps:$4 sm:$0xff]   ;;  %v6953_v23 = vld [vmem:[#allocation5 + $0x664] ss:$16 sps:$4 sm:$0xff]  }
 0x10e   :  { %1795 = vmatprep.subr.bf16.mxu0 %v6861_v24  ;;  %1959 = vmatprep.subr.bf16.mxu1 %v6864_v25  ;;  %v6956_v24 = vld [vmem:[#allocation5 + $0x66c] ss:$16 sps:$4 sm:$0xff]   ;;  %v6951_v25 = vld [vmem:[#allocation5 + $0x660] ss:$16 sps:$4 sm:$0xff]  }
 0x111   :  { %1796 = vmatpush1.bf16.msra.mxu0 %v6859_v26  ;;  %1960 = vmatpush1.bf16.msra.mxu1 %v6862_v27  ;;  %v6954_v26 = vld [vmem:[#allocation5 + $0x668] ss:$16 sps:$4 sm:$0xff]   ;;  %v6959_v27 = vld [vmem:[#allocation5 + $0x684] ss:$16 sps:$4 sm:$0xff]  }
 0x112   :  { %1797 = vmatprep.subr.bf16.mxu0 %v6867_v28  ;;  %1961 = vmatprep.subr.bf16.mxu1 %v6870_v29  ;;  %v6962_v28 = vld [vmem:[#allocation5 + $0x68c] ss:$16 sps:$4 sm:$0xff]   ;;  %v6957_v29 = vld [vmem:[#allocation5 + $0x680] ss:$16 sps:$4 sm:$0xff]  }
 0x115   :  { %1798 = vmatpush1.bf16.msra.mxu0 %v6865_v30  ;;  %1962 = vmatpush1.bf16.msra.mxu1 %v6868_v31  ;;  %v6960_v30 = vld [vmem:[#allocation5 + $0x688] ss:$16 sps:$4 sm:$0xff]   ;;  %v6965_v31 = vld [vmem:[#allocation5 + $0x6a4] ss:$16 sps:$4 sm:$0xff]  }
 0x116   :  { %1799 = vmatprep.subr.bf16.mxu0 %v6873_v32  ;;  %1963 = vmatprep.subr.bf16.mxu1 %v6876_v33  ;;  %v6968_v32 = vld [vmem:[#allocation5 + $0x6ac] ss:$16 sps:$4 sm:$0xff]   ;;  %v6963_v33 = vld [vmem:[#allocation5 + $0x6a0] ss:$16 sps:$4 sm:$0xff]  }
 0x119   :  { %1800 = vmatpush1.bf16.msra.mxu0 %v6871_v34  ;;  %1964 = vmatpush1.bf16.msra.mxu1 %v6874_v35  ;;  %v6966_v34 = vld [vmem:[#allocation5 + $0x6a8] ss:$16 sps:$4 sm:$0xff]   ;;  %v6971_v35 = vld [vmem:[#allocation5 + $0x6c4] ss:$16 sps:$4 sm:$0xff]  }
 0x11a   :  { %1801 = vmatprep.subr.bf16.mxu0 %v6879_v36  ;;  %1965 = vmatprep.subr.bf16.mxu1 %v6882_v37  ;;  %v6974_v36 = vld [vmem:[#allocation5 + $0x6cc] ss:$16 sps:$4 sm:$0xff]   ;;  %v6969_v37 = vld [vmem:[#allocation5 + $0x6c0] ss:$16 sps:$4 sm:$0xff]  }
 0x11d   :  { %1802 = vmatpush1.bf16.msra.mxu0 %v6877_v38  ;;  %1966 = vmatpush1.bf16.msra.mxu1 %v6880_v39  ;;  %v6972_v38 = vld [vmem:[#allocation5 + $0x6c8] ss:$16 sps:$4 sm:$0xff]   ;;  %v6977_v39 = vld [vmem:[#allocation5 + $0x6e4] ss:$16 sps:$4 sm:$0xff]  }
 0x11e   :  { %1803 = vmatprep.subr.bf16.mxu0 %v6885_v40  ;;  %1967 = vmatprep.subr.bf16.mxu1 %v6888_v41  ;;  %v6980_v40 = vld [vmem:[#allocation5 + $0x6ec] ss:$16 sps:$4 sm:$0xff]   ;;  %v6975_v41 = vld [vmem:[#allocation5 + $0x6e0] ss:$16 sps:$4 sm:$0xff]  }
 0x121   :  { %1804 = vmatpush1.bf16.msra.mxu0 %v6883_v42  ;;  %1968 = vmatpush1.bf16.msra.mxu1 %v6886_v43  ;;  %v6978_v42 = vld [vmem:[#allocation5 + $0x6e8] ss:$16 sps:$4 sm:$0xff]   ;;  %v6983_v43 = vld [vmem:[#allocation5 + $0x704] ss:$16 sps:$4 sm:$0xff]  }
 0x122   :  { %1805 = vmatprep.subr.bf16.mxu0 %v6891_v44  ;;  %1969 = vmatprep.subr.bf16.mxu1 %v6894_v45  ;;  %v6986_v44 = vld [vmem:[#allocation5 + $0x70c] ss:$16 sps:$4 sm:$0xff]   ;;  %v6981_v45 = vld [vmem:[#allocation5 + $0x700] ss:$16 sps:$4 sm:$0xff]  }
 0x125   :  { %1806 = vmatpush1.bf16.msra.mxu0 %v6889_v46  ;;  %1970 = vmatpush1.bf16.msra.mxu1 %v6892_v47  ;;  %v6984_v46 = vld [vmem:[#allocation5 + $0x708] ss:$16 sps:$4 sm:$0xff]   ;;  %v6989_v47 = vld [vmem:[#allocation5 + $0x724] ss:$16 sps:$4 sm:$0xff]  }
 0x126   :  { %1807 = vmatprep.subr.bf16.mxu0 %v6897_v48  ;;  %1971 = vmatprep.subr.bf16.mxu1 %v6900_v49  ;;  %v6992_v48 = vld [vmem:[#allocation5 + $0x72c] ss:$16 sps:$4 sm:$0xff]   ;;  %v6987_v49 = vld [vmem:[#allocation5 + $0x720] ss:$16 sps:$4 sm:$0xff]  }
 0x129   :  { %1808 = vmatpush1.bf16.msra.mxu0 %v6895_v50  ;;  %1972 = vmatpush1.bf16.msra.mxu1 %v6898_v51  ;;  %v6990_v50 = vld [vmem:[#allocation5 + $0x728] ss:$16 sps:$4 sm:$0xff]   ;;  %v6995_v51 = vld [vmem:[#allocation5 + $0x744] ss:$16 sps:$4 sm:$0xff]  }
 0x12a   :  { %1809 = vmatprep.subr.bf16.mxu0 %v6903_v52  ;;  %1973 = vmatprep.subr.bf16.mxu1 %v6906_v53  ;;  %v6998_v52 = vld [vmem:[#allocation5 + $0x74c] ss:$16 sps:$4 sm:$0xff]   ;;  %v6993_v53 = vld [vmem:[#allocation5 + $0x740] ss:$16 sps:$4 sm:$0xff]  }
 0x12d   :  { %1810 = vmatpush1.bf16.msra.mxu0 %v6901_v54  ;;  %1974 = vmatpush1.bf16.msra.mxu1 %v6904_v55  ;;  %v6996_v54 = vld [vmem:[#allocation5 + $0x748] ss:$16 sps:$4 sm:$0xff]   ;;  %v7001_v55 = vld [vmem:[#allocation5 + $0x764] ss:$16 sps:$4 sm:$0xff]  }
 0x12e   :  { %1811 = vmatprep.subr.bf16.mxu0 %v6909_v56  ;;  %1975 = vmatprep.subr.bf16.mxu1 %v6912_v57  ;;  %v7004_v56 = vld [vmem:[#allocation5 + $0x76c] ss:$16 sps:$4 sm:$0xff]   ;;  %v6999_v57 = vld [vmem:[#allocation5 + $0x760] ss:$16 sps:$4 sm:$0xff]  }
 0x131   :  { %1812 = vmatpush1.bf16.msra.mxu0 %v6907_v58  ;;  %1976 = vmatpush1.bf16.msra.mxu1 %v6910_v59  ;;  %v7002_v58 = vld [vmem:[#allocation5 + $0x768] ss:$16 sps:$4 sm:$0xff]   ;;  %v7007_v59 = vld [vmem:[#allocation5 + $0x784] ss:$16 sps:$4 sm:$0xff]  }
 0x132   :  { %1813 = vmatprep.subr.bf16.mxu0 %v6915_v60  ;;  %1977 = vmatprep.subr.bf16.mxu1 %v6918_v61  ;;  %v7010_v60 = vld [vmem:[#allocation5 + $0x78c] ss:$16 sps:$4 sm:$0xff]   ;;  %v7005_v61 = vld [vmem:[#allocation5 + $0x780] ss:$16 sps:$4 sm:$0xff]  }
 0x135   :  { %1814 = vmatpush1.bf16.msra.mxu0 %v6913_v62  ;;  %1978 = vmatpush1.bf16.msra.mxu1 %v6916_v63  ;;  %v7008_v62 = vld [vmem:[#allocation5 + $0x788] ss:$16 sps:$4 sm:$0xff]   ;;  %v7013_v63 = vld [vmem:[#allocation5 + $0x7a4] ss:$16 sps:$4 sm:$0xff]  }
 0x136   :  { %1815 = vmatprep.subr.bf16.mxu0 %v6921_v0  ;;  %1979 = vmatprep.subr.bf16.mxu1 %v6924_v1  ;;  %v7016_v0 = vld [vmem:[#allocation5 + $0x7ac] ss:$16 sps:$4 sm:$0xff]   ;;  %v7011_v1 = vld [vmem:[#allocation5 + $0x7a0] ss:$16 sps:$4 sm:$0xff]  }
 0x139   :  { %1816 = vmatpush1.bf16.msra.mxu0 %v6919_v2  ;;  %1980 = vmatpush1.bf16.msra.mxu1 %v6922_v3  ;;  %v7014_v2 = vld [vmem:[#allocation5 + $0x7a8] ss:$16 sps:$4 sm:$0xff]   ;;  %v7019_v3 = vld [vmem:[#allocation5 + $0x7c4] ss:$16 sps:$4 sm:$0xff]  }
 0x13a   :  { %1817 = vmatprep.subr.bf16.mxu0 %v6927_v4  ;;  %1981 = vmatprep.subr.bf16.mxu1 %v6930_v5  ;;  %v7022_v4 = vld [vmem:[#allocation5 + $0x7cc] ss:$16 sps:$4 sm:$0xff]   ;;  %v7017_v5 = vld [vmem:[#allocation5 + $0x7c0] ss:$16 sps:$4 sm:$0xff]  }
 0x13d   :  { %1818 = vmatpush1.bf16.msra.mxu0 %v6925_v6  ;;  %1982 = vmatpush1.bf16.msra.mxu1 %v6928_v7  ;;  %v7020_v6 = vld [vmem:[#allocation5 + $0x7c8] ss:$16 sps:$4 sm:$0xff]   ;;  %v7025_v7 = vld [vmem:[#allocation5 + $0x7e4] ss:$16 sps:$4 sm:$0xff]  }
 0x13e   :  { %1828 = vmatprep.subr.bf16.mxu0 %v6935_v8  ;;  %1992 = vmatprep.subr.bf16.mxu1 %v6938_v9  ;;  %v7028_v8 = vld [vmem:[#allocation5 + $0x7ec] ss:$16 sps:$4 sm:$0xff]   ;;  %v7023_v9 = vld [vmem:[#allocation5 + $0x7e0] ss:$16 sps:$4 sm:$0xff]  }
 0x140   :  { %1820 = vmatmul.mubr.bf16.vlgmr.msra.gmra.mrb[0].mxu0 %v5771_v12  ;;  %1984 = vmatmul.mubr.bf16.vlgmr.msra.gmra.mrb[0].mxu1 %v5771_v12  ;;  %v7033_v12 = vld [vmem:[#allocation8 + $0x4] ss:$48 sps:$4 sm:$0xff]  }
 0x141   :  { %1829 = vmatpush1.bf16.msra.mxu0 %v6933_v10  ;;  %1993 = vmatpush1.bf16.msra.mxu1 %v6936_v13  ;;  %v7026_v10 = vld [vmem:[#allocation5 + $0x7e8] ss:$16 sps:$4 sm:$0xff]   ;;  %v7036_v13 = vld [vmem:[#allocation8 + $0xc] ss:$48 sps:$4 sm:$0xff]  }
 0x142   :  { %1830 = vmatprep.subr.bf16.mxu0 %v6941_v15  ;;  %1994 = vmatprep.subr.bf16.mxu1 %v6944_v16  ;;  %v7031_v15 = vld [vmem:[#allocation8] ss:$48 sps:$4 sm:$0xff]   ;;  %v7034_v16 = vld [vmem:[#allocation8 + $0x8] ss:$48 sps:$4 sm:$0xff]  }
 0x143   :  { %1860 = vmatprep.mubr.bf16.mxu0 %v5774_v17  ;;  %2024 = vmatprep.mubr.bf16.mxu1 %v5774_v17  ;;  %v5773_v17 = vcombine.low %v8071_v14, %v8071_v14  ;;  %v7054_v14 = vld [vmem:[#allocation8 + $0x12c] ss:$48 sps:$4 sm:$0xff]  }
 0x145   :  { %1831 = vmatpush1.bf16.msra.mxu0 %v6939_v18  ;;  %1995 = vmatpush1.bf16.msra.mxu1 %v6942_v19  ;;  %v7039_v18 = vld [vmem:[#allocation8 + $0x64] ss:$48 sps:$4 sm:$0xff]   ;;  %v7042_v19 = vld [vmem:[#allocation8 + $0x6c] ss:$48 sps:$4 sm:$0xff]  }
 0x146   :  { %1832 = vmatprep.subr.bf16.mxu0 %v6947_v20  ;;  %1996 = vmatprep.subr.bf16.mxu1 %v6950_v11  ;;  %v7037_v20 = vld [vmem:[#allocation8 + $0x60] ss:$48 sps:$4 sm:$0xff]   ;;  %v7040_v11 = vld [vmem:[#allocation8 + $0x68] ss:$48 sps:$4 sm:$0xff]  }
 0x149   :  { %1833 = vmatpush1.bf16.msra.mxu0 %v6945_v21  ;;  %1997 = vmatpush1.bf16.msra.mxu1 %v6948_v22  ;;  %v7045_v21 = vld [vmem:[#allocation8 + $0xc4] ss:$48 sps:$4 sm:$0xff]   ;;  %v7048_v22 = vld [vmem:[#allocation8 + $0xcc] ss:$48 sps:$4 sm:$0xff]  }
 0x14a   :  { %1834 = vmatprep.subr.bf16.mxu0 %v6953_v23  ;;  %1998 = vmatprep.subr.bf16.mxu1 %v6956_v24  ;;  %v7043_v23 = vld [vmem:[#allocation8 + $0xc0] ss:$48 sps:$4 sm:$0xff]   ;;  %v7046_v24 = vld [vmem:[#allocation8 + $0xc8] ss:$48 sps:$4 sm:$0xff]  }
 0x14d   :  { %1835 = vmatpush1.bf16.msra.mxu0 %v6951_v25  ;;  %1999 = vmatpush1.bf16.msra.mxu1 %v6954_v26  ;;  %v7051_v25 = vld [vmem:[#allocation8 + $0x124] ss:$48 sps:$4 sm:$0xff]   ;;  %v7049_v26 = vld [vmem:[#allocation8 + $0x120] ss:$48 sps:$4 sm:$0xff]  }
 0x14e   :  { %1836 = vmatprep.subr.bf16.mxu0 %v6959_v27  ;;  %2000 = vmatprep.subr.bf16.mxu1 %v6962_v28  ;;  %v7052_v27 = vld [vmem:[#allocation8 + $0x128] ss:$48 sps:$4 sm:$0xff]   ;;  %v7057_v28 = vld [vmem:[#allocation8 + $0x184] ss:$48 sps:$4 sm:$0xff]  }
 0x151   :  { %1837 = vmatpush1.bf16.msra.mxu0 %v6957_v29  ;;  %2001 = vmatpush1.bf16.msra.mxu1 %v6960_v30  ;;  %v7060_v29 = vld [vmem:[#allocation8 + $0x18c] ss:$48 sps:$4 sm:$0xff]   ;;  %v7055_v30 = vld [vmem:[#allocation8 + $0x180] ss:$48 sps:$4 sm:$0xff]  }
 0x152   :  { %1838 = vmatprep.subr.bf16.mxu0 %v6965_v31  ;;  %2002 = vmatprep.subr.bf16.mxu1 %v6968_v32  ;;  %v7058_v31 = vld [vmem:[#allocation8 + $0x188] ss:$48 sps:$4 sm:$0xff]   ;;  %v7063_v32 = vld [vmem:[#allocation8 + $0x1e4] ss:$48 sps:$4 sm:$0xff]  }
 0x155   :  { %1839 = vmatpush1.bf16.msra.mxu0 %v6963_v33  ;;  %2003 = vmatpush1.bf16.msra.mxu1 %v6966_v34  ;;  %v7066_v33 = vld [vmem:[#allocation8 + $0x1ec] ss:$48 sps:$4 sm:$0xff]   ;;  %v7061_v34 = vld [vmem:[#allocation8 + $0x1e0] ss:$48 sps:$4 sm:$0xff]  }
 0x156   :  { %1840 = vmatprep.subr.bf16.mxu0 %v6971_v35  ;;  %2004 = vmatprep.subr.bf16.mxu1 %v6974_v36  ;;  %v7064_v35 = vld [vmem:[#allocation8 + $0x1e8] ss:$48 sps:$4 sm:$0xff]   ;;  %v7069_v36 = vld [vmem:[#allocation8 + $0x244] ss:$48 sps:$4 sm:$0xff]  }
 0x159   :  { %1841 = vmatpush1.bf16.msra.mxu0 %v6969_v37  ;;  %2005 = vmatpush1.bf16.msra.mxu1 %v6972_v38  ;;  %v7072_v37 = vld [vmem:[#allocation8 + $0x24c] ss:$48 sps:$4 sm:$0xff]   ;;  %v7067_v38 = vld [vmem:[#allocation8 + $0x240] ss:$48 sps:$4 sm:$0xff]  }
 0x15a   :  { %1842 = vmatprep.subr.bf16.mxu0 %v6977_v39  ;;  %2006 = vmatprep.subr.bf16.mxu1 %v6980_v40  ;;  %v7070_v39 = vld [vmem:[#allocation8 + $0x248] ss:$48 sps:$4 sm:$0xff]   ;;  %v7075_v40 = vld [vmem:[#allocation8 + $0x2a4] ss:$48 sps:$4 sm:$0xff]  }
 0x15d   :  { %1843 = vmatpush1.bf16.msra.mxu0 %v6975_v41  ;;  %2007 = vmatpush1.bf16.msra.mxu1 %v6978_v42  ;;  %v7078_v41 = vld [vmem:[#allocation8 + $0x2ac] ss:$48 sps:$4 sm:$0xff]   ;;  %v7073_v42 = vld [vmem:[#allocation8 + $0x2a0] ss:$48 sps:$4 sm:$0xff]  }
 0x15e   :  { %1844 = vmatprep.subr.bf16.mxu0 %v6983_v43  ;;  %2008 = vmatprep.subr.bf16.mxu1 %v6986_v44  ;;  %v7076_v43 = vld [vmem:[#allocation8 + $0x2a8] ss:$48 sps:$4 sm:$0xff]   ;;  %v7081_v44 = vld [vmem:[#allocation8 + $0x304] ss:$48 sps:$4 sm:$0xff]  }
 0x161   :  { %1845 = vmatpush1.bf16.msra.mxu0 %v6981_v45  ;;  %2009 = vmatpush1.bf16.msra.mxu1 %v6984_v46  ;;  %v7084_v45 = vld [vmem:[#allocation8 + $0x30c] ss:$48 sps:$4 sm:$0xff]   ;;  %v7079_v46 = vld [vmem:[#allocation8 + $0x300] ss:$48 sps:$4 sm:$0xff]  }
 0x162   :  { %1846 = vmatprep.subr.bf16.mxu0 %v6989_v47  ;;  %2010 = vmatprep.subr.bf16.mxu1 %v6992_v48  ;;  %v7082_v47 = vld [vmem:[#allocation8 + $0x308] ss:$48 sps:$4 sm:$0xff]   ;;  %v7087_v48 = vld [vmem:[#allocation8 + $0x364] ss:$48 sps:$4 sm:$0xff]  }
 0x165   :  { %1847 = vmatpush1.bf16.msra.mxu0 %v6987_v49  ;;  %2011 = vmatpush1.bf16.msra.mxu1 %v6990_v50  ;;  %v7090_v49 = vld [vmem:[#allocation8 + $0x36c] ss:$48 sps:$4 sm:$0xff]   ;;  %v7085_v50 = vld [vmem:[#allocation8 + $0x360] ss:$48 sps:$4 sm:$0xff]  }
 0x166   :  { %1848 = vmatprep.subr.bf16.mxu0 %v6995_v51  ;;  %2012 = vmatprep.subr.bf16.mxu1 %v6998_v52  ;;  %v7088_v51 = vld [vmem:[#allocation8 + $0x368] ss:$48 sps:$4 sm:$0xff]   ;;  %v7093_v52 = vld [vmem:[#allocation8 + $0x3c4] ss:$48 sps:$4 sm:$0xff]  }
 0x169   :  { %1849 = vmatpush1.bf16.msra.mxu0 %v6993_v53  ;;  %2013 = vmatpush1.bf16.msra.mxu1 %v6996_v54  ;;  %v7096_v53 = vld [vmem:[#allocation8 + $0x3cc] ss:$48 sps:$4 sm:$0xff]   ;;  %v7091_v54 = vld [vmem:[#allocation8 + $0x3c0] ss:$48 sps:$4 sm:$0xff]  }
 0x16a   :  { %1850 = vmatprep.subr.bf16.mxu0 %v7001_v55  ;;  %2014 = vmatprep.subr.bf16.mxu1 %v7004_v56  ;;  %v7094_v55 = vld [vmem:[#allocation8 + $0x3c8] ss:$48 sps:$4 sm:$0xff]   ;;  %v7099_v56 = vld [vmem:[#allocation8 + $0x424] ss:$48 sps:$4 sm:$0xff]  }
 0x16d   :  { %1851 = vmatpush1.bf16.msra.mxu0 %v6999_v57  ;;  %2015 = vmatpush1.bf16.msra.mxu1 %v7002_v58  ;;  %v7102_v57 = vld [vmem:[#allocation8 + $0x42c] ss:$48 sps:$4 sm:$0xff]   ;;  %v7097_v58 = vld [vmem:[#allocation8 + $0x420] ss:$48 sps:$4 sm:$0xff]  }
 0x16e   :  { %1852 = vmatprep.subr.bf16.mxu0 %v7007_v59  ;;  %2016 = vmatprep.subr.bf16.mxu1 %v7010_v60  ;;  %v7100_v59 = vld [vmem:[#allocation8 + $0x428] ss:$48 sps:$4 sm:$0xff]   ;;  %v7105_v60 = vld [vmem:[#allocation8 + $0x484] ss:$48 sps:$4 sm:$0xff]  }
 0x171   :  { %1853 = vmatpush1.bf16.msra.mxu0 %v7005_v61  ;;  %2017 = vmatpush1.bf16.msra.mxu1 %v7008_v62  ;;  %v7108_v61 = vld [vmem:[#allocation8 + $0x48c] ss:$48 sps:$4 sm:$0xff]   ;;  %v7103_v62 = vld [vmem:[#allocation8 + $0x480] ss:$48 sps:$4 sm:$0xff]  }
 0x172   :  { %1854 = vmatprep.subr.bf16.mxu0 %v7013_v63  ;;  %2018 = vmatprep.subr.bf16.mxu1 %v7016_v0  ;;  %v7106_v63 = vld [vmem:[#allocation8 + $0x488] ss:$48 sps:$4 sm:$0xff]   ;;  %v7111_v0 = vld [vmem:[#allocation8 + $0x4e4] ss:$48 sps:$4 sm:$0xff]  }
 0x175   :  { %1855 = vmatpush1.bf16.msra.mxu0 %v7011_v1  ;;  %2019 = vmatpush1.bf16.msra.mxu1 %v7014_v2  ;;  %v7114_v1 = vld [vmem:[#allocation8 + $0x4ec] ss:$48 sps:$4 sm:$0xff]   ;;  %v7109_v2 = vld [vmem:[#allocation8 + $0x4e0] ss:$48 sps:$4 sm:$0xff]  }
 0x176   :  { %1856 = vmatprep.subr.bf16.mxu0 %v7019_v3  ;;  %2020 = vmatprep.subr.bf16.mxu1 %v7022_v4  ;;  %v7112_v3 = vld [vmem:[#allocation8 + $0x4e8] ss:$48 sps:$4 sm:$0xff]   ;;  %v7117_v4 = vld [vmem:[#allocation8 + $0x544] ss:$48 sps:$4 sm:$0xff]  }
 0x179   :  { %1857 = vmatpush1.bf16.msra.mxu0 %v7017_v5  ;;  %2021 = vmatpush1.bf16.msra.mxu1 %v7020_v6  ;;  %v7120_v5 = vld [vmem:[#allocation8 + $0x54c] ss:$48 sps:$4 sm:$0xff]   ;;  %v7115_v6 = vld [vmem:[#allocation8 + $0x540] ss:$48 sps:$4 sm:$0xff]  }
 0x17a   :  { %1858 = vmatprep.subr.bf16.mxu0 %v7025_v7  ;;  %2022 = vmatprep.subr.bf16.mxu1 %v7028_v8  ;;  %v7118_v7 = vld [vmem:[#allocation8 + $0x548] ss:$48 sps:$4 sm:$0xff]   ;;  %v7123_v8 = vld [vmem:[#allocation8 + $0x5a4] ss:$48 sps:$4 sm:$0xff]  }
 0x17d   :  { %1859 = vmatpush1.bf16.msra.mxu0 %v7023_v9  ;;  %2023 = vmatpush1.bf16.msra.mxu1 %v7026_v10  ;;  %v7126_v9 = vld [vmem:[#allocation8 + $0x5ac] ss:$48 sps:$4 sm:$0xff]   ;;  %v7121_v10 = vld [vmem:[#allocation8 + $0x5a0] ss:$48 sps:$4 sm:$0xff]  }
 0x17e   :  { %2831 = vmatprep.subr.bf16.mxu0 %v7033_v12  ;;  %2913 = vmatprep.subr.bf16.mxu1 %v7036_v13  ;;  %v7124_v12 = vld [vmem:[#allocation8 + $0x5a8] ss:$48 sps:$4 sm:$0xff]   ;;  %v7129_v13 = vld [vmem:[#allocation8 + $0x604] ss:$48 sps:$4 sm:$0xff]  }
 0x180   :  { %1861 = vmatmul.mubr.bf16.vlgmr.msra.gmra.mrb[0].mxu0 %v5773_v17  ;;  %2025 = vmatmul.mubr.bf16.vlgmr.msra.gmra.mrb[0].mxu1 %v5773_v17 }
 0x181   :  { %2832 = vmatpush1.bf16.msra.mxu0 %v7031_v15  ;;  %2914 = vmatpush1.bf16.msra.mxu1 %v7034_v16  ;;  %v7132_v15 = vld [vmem:[#allocation8 + $0x60c] ss:$48 sps:$4 sm:$0xff]   ;;  %v377_v16 = vlaneseq }
 0x182   :  { %2833 = vmatprep.subr.bf16.mxu0 %v7039_v18  ;;  %2915 = vmatprep.subr.bf16.mxu1 %v7042_v19  ;;  %v8082_v19 = vld [vmem:[#allocation7] sm:$0xf] }
 0x183   :  { %v8077_v17 = vshrl.u32 %v377_v16, 7  ;;  %v7189_v16 = vld [vmem:[#allocation8 + $0x9c4] ss:$48 sps:$4 sm:$0xff]  }
 0x185   :  { %2834 = vmatpush1.bf16.msra.mxu0 %v7037_v20  ;;  %2916 = vmatpush1.bf16.msra.mxu1 %v7040_v11  ;;  %v8080_v18 = vsub.s32 0, %v8077_v17  ;;  %v8085_v20 = vsub.s32 1, %v8077_v17  ;;  %v8088_v11 = vsub.s32 3, %v8077_v17 }
 0x186   :  { %2835 = vmatprep.subr.bf16.mxu0 %v7045_v21  ;;  %2917 = vmatprep.subr.bf16.mxu1 %v7048_v22 }
 0x187   :  { %v380_v21 = vrot.slane %v8082_v19, %v8080_v18  ;;  %v384_v22 = vrot.slane %v8082_v19, %v8085_v20 }
 0x189   :  { %2836 = vmatpush1.bf16.msra.mxu0 %v7043_v23  ;;  %2918 = vmatpush1.bf16.msra.mxu1 %v7046_v24  ;;  %v392_v23 = vrot.slane %v8082_v19, %v8088_v11 }
 0x18a   :  { %2837 = vmatprep.subr.bf16.mxu0 %v7051_v25  ;;  %2919 = vmatprep.subr.bf16.mxu1 %v7054_v14 }
 0x18d   :  { %2838 = vmatpush1.bf16.msra.mxu0 %v7049_v26  ;;  %2920 = vmatpush1.bf16.msra.mxu1 %v7052_v27 }
 0x18e   :  { %2839 = vmatprep.subr.bf16.mxu0 %v7057_v28  ;;  %2921 = vmatprep.subr.bf16.mxu1 %v7060_v29 }
 0x191   :  { %2840 = vmatpush1.bf16.msra.mxu0 %v7055_v30  ;;  %2922 = vmatpush1.bf16.msra.mxu1 %v7058_v31 }
 0x192   :  { %2841 = vmatprep.subr.bf16.mxu0 %v7063_v32  ;;  %2923 = vmatprep.subr.bf16.mxu1 %v7066_v33 }
 0x195   :  { %2842 = vmatpush1.bf16.msra.mxu0 %v7061_v34  ;;  %2924 = vmatpush1.bf16.msra.mxu1 %v7064_v35 }
 0x196   :  { %2843 = vmatprep.subr.bf16.mxu0 %v7069_v36  ;;  %2925 = vmatprep.subr.bf16.mxu1 %v7072_v37 }
 0x199   :  { %2844 = vmatpush1.bf16.msra.mxu0 %v7067_v38  ;;  %2926 = vmatpush1.bf16.msra.mxu1 %v7070_v39  ;;  %v7127_v38 = vld [vmem:[#allocation8 + $0x600] ss:$48 sps:$4 sm:$0xff]   ;;  %v7130_v39 = vld [vmem:[#allocation8 + $0x608] ss:$48 sps:$4 sm:$0xff]  }
 0x19a   :  { %2845 = vmatprep.subr.bf16.mxu0 %v7075_v40  ;;  %2927 = vmatprep.subr.bf16.mxu1 %v7078_v41  ;;  %v7135_v41 = vld [vmem:[#allocation8 + $0x664] ss:$48 sps:$4 sm:$0xff]  }
 0x19d   :  { %2846 = vmatpush1.bf16.msra.mxu0 %v7073_v42  ;;  %2928 = vmatpush1.bf16.msra.mxu1 %v7076_v43  ;;  %v7138_v42 = vld [vmem:[#allocation8 + $0x66c] ss:$48 sps:$4 sm:$0xff]  }
 0x19e   :  { %2847 = vmatprep.subr.bf16.mxu0 %v7081_v44  ;;  %2929 = vmatprep.subr.bf16.mxu1 %v7084_v45  ;;  %v7133_v44 = vld [vmem:[#allocation8 + $0x660] ss:$48 sps:$4 sm:$0xff]   ;;  %v7136_v45 = vld [vmem:[#allocation8 + $0x668] ss:$48 sps:$4 sm:$0xff]  }
 0x1a1   :  { %2848 = vmatpush1.bf16.msra.mxu0 %v7079_v46  ;;  %2930 = vmatpush1.bf16.msra.mxu1 %v7082_v47  ;;  %v7141_v46 = vld [vmem:[#allocation8 + $0x6c4] ss:$48 sps:$4 sm:$0xff]   ;;  %v7144_v47 = vld [vmem:[#allocation8 + $0x6cc] ss:$48 sps:$4 sm:$0xff]  }
 0x1a2   :  { %2849 = vmatprep.subr.bf16.mxu0 %v7087_v48  ;;  %2931 = vmatprep.subr.bf16.mxu1 %v7090_v49  ;;  %v7139_v48 = vld [vmem:[#allocation8 + $0x6c0] ss:$48 sps:$4 sm:$0xff]   ;;  %v7142_v49 = vld [vmem:[#allocation8 + $0x6c8] ss:$48 sps:$4 sm:$0xff]  }
 0x1a5   :  { %2850 = vmatpush1.bf16.msra.mxu0 %v7085_v50  ;;  %2932 = vmatpush1.bf16.msra.mxu1 %v7088_v51  ;;  %v7147_v50 = vld [vmem:[#allocation8 + $0x724] ss:$48 sps:$4 sm:$0xff]   ;;  %v7150_v51 = vld [vmem:[#allocation8 + $0x72c] ss:$48 sps:$4 sm:$0xff]  }
 0x1a6   :  { %2851 = vmatprep.subr.bf16.mxu0 %v7093_v52  ;;  %2933 = vmatprep.subr.bf16.mxu1 %v7096_v53  ;;  %v7145_v52 = vld [vmem:[#allocation8 + $0x720] ss:$48 sps:$4 sm:$0xff]   ;;  %v7148_v53 = vld [vmem:[#allocation8 + $0x728] ss:$48 sps:$4 sm:$0xff]  }
 0x1a9   :  { %2852 = vmatpush1.bf16.msra.mxu0 %v7091_v54  ;;  %2934 = vmatpush1.bf16.msra.mxu1 %v7094_v55  ;;  %v7153_v54 = vld [vmem:[#allocation8 + $0x784] ss:$48 sps:$4 sm:$0xff]   ;;  %v7156_v55 = vld [vmem:[#allocation8 + $0x78c] ss:$48 sps:$4 sm:$0xff]  }
 0x1aa   :  { %2853 = vmatprep.subr.bf16.mxu0 %v7099_v56  ;;  %2935 = vmatprep.subr.bf16.mxu1 %v7102_v57  ;;  %v7151_v56 = vld [vmem:[#allocation8 + $0x780] ss:$48 sps:$4 sm:$0xff]   ;;  %v7154_v57 = vld [vmem:[#allocation8 + $0x788] ss:$48 sps:$4 sm:$0xff]  }
 0x1ad   :  { %2854 = vmatpush1.bf16.msra.mxu0 %v7097_v58  ;;  %2936 = vmatpush1.bf16.msra.mxu1 %v7100_v59  ;;  %v7159_v58 = vld [vmem:[#allocation8 + $0x7e4] ss:$48 sps:$4 sm:$0xff]   ;;  %v7162_v59 = vld [vmem:[#allocation8 + $0x7ec] ss:$48 sps:$4 sm:$0xff]  }
 0x1ae   :  { %2855 = vmatprep.subr.bf16.mxu0 %v7105_v60  ;;  %2937 = vmatprep.subr.bf16.mxu1 %v7108_v61  ;;  %v7157_v60 = vld [vmem:[#allocation8 + $0x7e0] ss:$48 sps:$4 sm:$0xff]   ;;  %v7160_v61 = vld [vmem:[#allocation8 + $0x7e8] ss:$48 sps:$4 sm:$0xff]  }
 0x1b1   :  { %2856 = vmatpush1.bf16.msra.mxu0 %v7103_v62  ;;  %2938 = vmatpush1.bf16.msra.mxu1 %v7106_v63  ;;  %v7165_v62 = vld [vmem:[#allocation8 + $0x844] ss:$48 sps:$4 sm:$0xff]   ;;  %v7168_v63 = vld [vmem:[#allocation8 + $0x84c] ss:$48 sps:$4 sm:$0xff]  }
 0x1b2   :  { %2857 = vmatprep.subr.bf16.mxu0 %v7111_v0  ;;  %2939 = vmatprep.subr.bf16.mxu1 %v7114_v1  ;;  %v7163_v0 = vld [vmem:[#allocation8 + $0x840] ss:$48 sps:$4 sm:$0xff]   ;;  %v7166_v1 = vld [vmem:[#allocation8 + $0x848] ss:$48 sps:$4 sm:$0xff]  }
 0x1b5   :  { %2858 = vmatpush1.bf16.msra.mxu0 %v7109_v2  ;;  %2940 = vmatpush1.bf16.msra.mxu1 %v7112_v3  ;;  %v7171_v2 = vld [vmem:[#allocation8 + $0x8a4] ss:$48 sps:$4 sm:$0xff]   ;;  %v7174_v3 = vld [vmem:[#allocation8 + $0x8ac] ss:$48 sps:$4 sm:$0xff]  }
 0x1b6   :  { %2859 = vmatprep.subr.bf16.mxu0 %v7117_v4  ;;  %2941 = vmatprep.subr.bf16.mxu1 %v7120_v5  ;;  %v7169_v4 = vld [vmem:[#allocation8 + $0x8a0] ss:$48 sps:$4 sm:$0xff]   ;;  %v7172_v5 = vld [vmem:[#allocation8 + $0x8a8] ss:$48 sps:$4 sm:$0xff]  }
 0x1b9   :  { %2860 = vmatpush1.bf16.msra.mxu0 %v7115_v6  ;;  %2942 = vmatpush1.bf16.msra.mxu1 %v7118_v7  ;;  %v7177_v6 = vld [vmem:[#allocation8 + $0x904] ss:$48 sps:$4 sm:$0xff]   ;;  %v7180_v7 = vld [vmem:[#allocation8 + $0x90c] ss:$48 sps:$4 sm:$0xff]  }
 0x1ba   :  { %2861 = vmatprep.subr.bf16.mxu0 %v7123_v8  ;;  %2943 = vmatprep.subr.bf16.mxu1 %v7126_v9  ;;  %v7175_v8 = vld [vmem:[#allocation8 + $0x900] ss:$48 sps:$4 sm:$0xff]   ;;  %v7178_v9 = vld [vmem:[#allocation8 + $0x908] ss:$48 sps:$4 sm:$0xff]  }
 0x1bd   :  { %2862 = vmatpush1.bf16.msra.mxu0 %v7121_v10  ;;  %2944 = vmatpush1.bf16.msra.mxu1 %v7124_v12  ;;  %v7183_v10 = vld [vmem:[#allocation8 + $0x964] ss:$48 sps:$4 sm:$0xff]   ;;  %v7186_v12 = vld [vmem:[#allocation8 + $0x96c] ss:$48 sps:$4 sm:$0xff]  }
 0x1be   :  { %2872 = vmatprep.subr.bf16.mxu0 %v7129_v13  ;;  %2954 = vmatprep.subr.bf16.mxu1 %v7132_v15  ;;  %v7181_v13 = vld [vmem:[#allocation8 + $0x960] ss:$48 sps:$4 sm:$0xff]   ;;  %v7184_v15 = vld [vmem:[#allocation8 + $0x968] ss:$48 sps:$4 sm:$0xff]  }
 0x253   :  { %v1862_v24 = vpop.f32.mrb[0].mxu0  ;;  %v8096_v25 = vpop.f32.mrb[0].mxu1 }
 0x254   :  { %v6555_v14 = vadd.f32 %v1862_v24, %v380_v21  ;;  %v1864_v26 = vpop.f32.mrb[1].mxu0  ;;  %v2028_v27 = vpop.f32.mrb[1].mxu1  ;;  %v7192_v21 = vld [vmem:[#allocation8 + $0x9cc] ss:$48 sps:$4 sm:$0xff]   ;;  %v7195_v24 = vld [vmem:[#allocation8 + $0xa24] ss:$48 sps:$4 sm:$0xff]  }
 0x255   :  { %v6556_v28 = vadd.f32 %v1864_v26, %v384_v22  ;;  %v6558_v29 = vadd.f32 %v2028_v27, %v392_v23  ;;  %v1866_v30 = vpop.f32.mrb[2].mxu0  ;;  %v2030_v31 = vpop.f32.mrb[2].mxu1  ;;  %v7187_v22 = vld [vmem:[#allocation8 + $0x9c0] ss:$48 sps:$4 sm:$0xff]   ;;  %v7190_v23 = vld [vmem:[#allocation8 + $0x9c8] ss:$48 sps:$4 sm:$0xff]  }
 0x256   :  { %v2033_v32 = vmax.f32 %v6555_v14, 0.0  ;;  %v1867_v33 = vpop.f32.mrb[3].mxu0  ;;  %v2031_v34 = vpop.f32.mrb[3].mxu1  ;;  %v7198_v14 = vld [vmem:[#allocation8 + $0xa2c] ss:$48 sps:$4 sm:$0xff]  }
 0x257   :  { %v2034_v35 = vmax.f32 %v6556_v28, 0.0  ;;  %v2036_v36 = vmax.f32 %v6558_v29, 0.0  ;;  %v7193_v26 = vld [vmem:[#allocation8 + $0xa20] ss:$48 sps:$4 sm:$0xff]   ;;  %v7196_v27 = vld [vmem:[#allocation8 + $0xa28] ss:$48 sps:$4 sm:$0xff]  }
 0x258   :  { %v2037_v40 = vpack.c.bf16 %v2033_v32, %v2033_v32  ;;  %v7201_v28 = vld [vmem:[#allocation8 + $0xa84] ss:$48 sps:$4 sm:$0xff]   ;;  %v7204_v29 = vld [vmem:[#allocation8 + $0xa8c] ss:$48 sps:$4 sm:$0xff]   ;;  %v7199_v30 = vld [vmem:[#allocation8 + $0xa80] ss:$48 sps:$4 sm:$0xff]  }
 0x259   :  { %v2038_v37 = vpack.c.bf16 %v2034_v35, %v2034_v35  ;;  %v2040_v43 = vpack.c.bf16 %v2036_v36, %v2036_v36  ;;  %v7202_v31 = vld [vmem:[#allocation8 + $0xa88] ss:$48 sps:$4 sm:$0xff]   ;;  %v8099_v32 = vsub.s32 2, %v8077_v17  ;;  %v7207_v33 = vld [vmem:[#allocation8 + $0xae4] ss:$48 sps:$4 sm:$0xff]  }
 0x25a   :  { %v7210_v34 = vld [vmem:[#allocation8 + $0xaec] ss:$48 sps:$4 sm:$0xff]   ;;  %v7205_v35 = vld [vmem:[#allocation8 + $0xae0] ss:$48 sps:$4 sm:$0xff]   ;;  %v7208_v36 = vld [vmem:[#allocation8 + $0xae8] ss:$48 sps:$4 sm:$0xff]  }
 0x25b   :  { %2863 = vmatprep.mubr.bf16.mxu0 %v2038_v37  ;;  %2945 = vmatprep.mubr.bf16.mxu1 %v2038_v37  ;;  %v388_v37 = vrot.slane %v8082_v19, %v8099_v32  ;;  %v7214_v17 = vld [vmem:[#allocation8 + $0xb48] ss:$48 sps:$4 sm:$0xff]   ;;  %v7225_v19 = vld [vmem:[#allocation8 + $0x14] ss:$48 sps:$4 sm:$0xff]  }
 0x25c   :  { %2864 = vmatmul.mubr.bf16.vlgmr.msra.gmra.mrb[4].mxu0 %v2037_v40  ;;  %2946 = vmatmul.mubr.bf16.vlgmr.msra.gmra.mrb[4].mxu1 %v2037_v40  ;;  %v7211_v40 = vld [vmem:[#allocation8 + $0xb40] ss:$48 sps:$4 sm:$0xff]  }
 0x25d   :  { %2873 = vmatpush1.bf16.msra.mxu0 %v7127_v38  ;;  %2955 = vmatpush1.bf16.msra.mxu1 %v7130_v39  ;;  %v7213_v38 = vld [vmem:[#allocation8 + $0xb44] ss:$48 sps:$4 sm:$0xff]   ;;  %v7216_v39 = vld [vmem:[#allocation8 + $0xb4c] ss:$48 sps:$4 sm:$0xff]  }
 0x25e   :  { %2904 = vmatprep.mubr.bf16.mxu0 %v2040_v43  ;;  %2986 = vmatprep.mubr.bf16.mxu1 %v2040_v43  ;;  %v7222_v43 = vld [vmem:[#allocation8 + $0xbac] ss:$48 sps:$4 sm:$0xff]  }
 0x25f   :  { %2874 = vmatprep.subr.bf16.mxu0 %v7135_v41  ;;  %2956 = vmatprep.subr.bf16.mxu1 %v7138_v42  ;;  %v6557_v41 = vadd.f32 %v8096_v25, %v388_v37  ;;  %v7219_v42 = vld [vmem:[#allocation8 + $0xba4] ss:$48 sps:$4 sm:$0xff]  }
 0x260   :  { %v7231_v25 = vld [vmem:[#allocation8 + $0x74] ss:$48 sps:$4 sm:$0xff]  }
 0x261   :  { %2875 = vmatpush1.bf16.msra.mxu0 %v7133_v44  ;;  %2957 = vmatpush1.bf16.msra.mxu1 %v7136_v45  ;;  %v7217_v44 = vld [vmem:[#allocation8 + $0xba0] ss:$48 sps:$4 sm:$0xff]   ;;  %v7220_v45 = vld [vmem:[#allocation8 + $0xba8] ss:$48 sps:$4 sm:$0xff]   ;;  %v7297_v37 = vld [vmem:[#allocation8 + $0x494] ss:$48 sps:$4 sm:$0xff]  }
 0x262   :  { %2876 = vmatprep.subr.bf16.mxu0 %v7141_v46  ;;  %2958 = vmatprep.subr.bf16.mxu1 %v7144_v47  ;;  %v2035_v46 = vmax.f32 %v6557_v41, 0.0  ;;  %v7228_v47 = vld [vmem:[#allocation8 + $0x1c] ss:$48 sps:$4 sm:$0xff]  }
 0x263   :  { %v7306_v41 = vld [vmem:[#allocation8 + $0x4fc] ss:$48 sps:$4 sm:$0xff]  }
 0x265   :  { %2877 = vmatpush1.bf16.msra.mxu0 %v7139_v48  ;;  %2959 = vmatpush1.bf16.msra.mxu1 %v7142_v49  ;;  %v7223_v48 = vld [vmem:[#allocation8 + $0x10] ss:$48 sps:$4 sm:$0xff]   ;;  %v7226_v49 = vld [vmem:[#allocation8 + $0x18] ss:$48 sps:$4 sm:$0xff]  }
 0x266   :  { %2878 = vmatprep.subr.bf16.mxu0 %v7147_v50  ;;  %2960 = vmatprep.subr.bf16.mxu1 %v7150_v51  ;;  %v2039_v50 = vpack.c.bf16 %v2035_v46, %v2035_v46  ;;  %v7234_v51 = vld [vmem:[#allocation8 + $0x7c] ss:$48 sps:$4 sm:$0xff]   ;;  %v7307_v46 = vld [vmem:[#allocation8 + $0x550] ss:$48 sps:$4 sm:$0xff]  }
 0x269   :  { %2879 = vmatpush1.bf16.msra.mxu0 %v7145_v52  ;;  %2961 = vmatpush1.bf16.msra.mxu1 %v7148_v53  ;;  %v7229_v52 = vld [vmem:[#allocation8 + $0x70] ss:$48 sps:$4 sm:$0xff]   ;;  %v7232_v53 = vld [vmem:[#allocation8 + $0x78] ss:$48 sps:$4 sm:$0xff]  }
 0x26a   :  { %2880 = vmatprep.subr.bf16.mxu0 %v7153_v54  ;;  %2962 = vmatprep.subr.bf16.mxu1 %v7156_v55  ;;  %v7237_v54 = vld [vmem:[#allocation8 + $0xd4] ss:$48 sps:$4 sm:$0xff]   ;;  %v7240_v55 = vld [vmem:[#allocation8 + $0xdc] ss:$48 sps:$4 sm:$0xff]  }
 0x26d   :  { %2881 = vmatpush1.bf16.msra.mxu0 %v7151_v56  ;;  %2963 = vmatpush1.bf16.msra.mxu1 %v7154_v57  ;;  %v7235_v56 = vld [vmem:[#allocation8 + $0xd0] ss:$48 sps:$4 sm:$0xff]   ;;  %v7238_v57 = vld [vmem:[#allocation8 + $0xd8] ss:$48 sps:$4 sm:$0xff]  }
 0x26e   :  { %2882 = vmatprep.subr.bf16.mxu0 %v7159_v58  ;;  %2964 = vmatprep.subr.bf16.mxu1 %v7162_v59  ;;  %v7243_v58 = vld [vmem:[#allocation8 + $0x134] ss:$48 sps:$4 sm:$0xff]   ;;  %v7246_v59 = vld [vmem:[#allocation8 + $0x13c] ss:$48 sps:$4 sm:$0xff]  }
 0x271   :  { %2883 = vmatpush1.bf16.msra.mxu0 %v7157_v60  ;;  %2965 = vmatpush1.bf16.msra.mxu1 %v7160_v61  ;;  %v7241_v60 = vld [vmem:[#allocation8 + $0x130] ss:$48 sps:$4 sm:$0xff]   ;;  %v7244_v61 = vld [vmem:[#allocation8 + $0x138] ss:$48 sps:$4 sm:$0xff]  }
 0x272   :  { %2884 = vmatprep.subr.bf16.mxu0 %v7165_v62  ;;  %2966 = vmatprep.subr.bf16.mxu1 %v7168_v63  ;;  %v7249_v62 = vld [vmem:[#allocation8 + $0x194] ss:$48 sps:$4 sm:$0xff]   ;;  %v7252_v63 = vld [vmem:[#allocation8 + $0x19c] ss:$48 sps:$4 sm:$0xff]  }
 0x275   :  { %2885 = vmatpush1.bf16.msra.mxu0 %v7163_v0  ;;  %2967 = vmatpush1.bf16.msra.mxu1 %v7166_v1  ;;  %v7247_v0 = vld [vmem:[#allocation8 + $0x190] ss:$48 sps:$4 sm:$0xff]   ;;  %v7250_v1 = vld [vmem:[#allocation8 + $0x198] ss:$48 sps:$4 sm:$0xff]  }
 0x276   :  { %2886 = vmatprep.subr.bf16.mxu0 %v7171_v2  ;;  %2968 = vmatprep.subr.bf16.mxu1 %v7174_v3  ;;  %v7255_v2 = vld [vmem:[#allocation8 + $0x1f4] ss:$48 sps:$4 sm:$0xff]   ;;  %v7258_v3 = vld [vmem:[#allocation8 + $0x1fc] ss:$48 sps:$4 sm:$0xff]  }
 0x279   :  { %2887 = vmatpush1.bf16.msra.mxu0 %v7169_v4  ;;  %2969 = vmatpush1.bf16.msra.mxu1 %v7172_v5  ;;  %v7253_v4 = vld [vmem:[#allocation8 + $0x1f0] ss:$48 sps:$4 sm:$0xff]   ;;  %v7256_v5 = vld [vmem:[#allocation8 + $0x1f8] ss:$48 sps:$4 sm:$0xff]  }
 0x27a   :  { %2888 = vmatprep.subr.bf16.mxu0 %v7177_v6  ;;  %2970 = vmatprep.subr.bf16.mxu1 %v7180_v7  ;;  %v7261_v6 = vld [vmem:[#allocation8 + $0x254] ss:$48 sps:$4 sm:$0xff]   ;;  %v7264_v7 = vld [vmem:[#allocation8 + $0x25c] ss:$48 sps:$4 sm:$0xff]  }
 0x27d   :  { %2889 = vmatpush1.bf16.msra.mxu0 %v7175_v8  ;;  %2971 = vmatpush1.bf16.msra.mxu1 %v7178_v9  ;;  %v7259_v8 = vld [vmem:[#allocation8 + $0x250] ss:$48 sps:$4 sm:$0xff]   ;;  %v7262_v9 = vld [vmem:[#allocation8 + $0x258] ss:$48 sps:$4 sm:$0xff]  }
 0x27e   :  { %2890 = vmatprep.subr.bf16.mxu0 %v7183_v10  ;;  %2972 = vmatprep.subr.bf16.mxu1 %v7186_v12  ;;  %v7267_v10 = vld [vmem:[#allocation8 + $0x2b4] ss:$48 sps:$4 sm:$0xff]   ;;  %v7270_v12 = vld [vmem:[#allocation8 + $0x2bc] ss:$48 sps:$4 sm:$0xff]  }
 0x281   :  { %2891 = vmatpush1.bf16.msra.mxu0 %v7181_v13  ;;  %2973 = vmatpush1.bf16.msra.mxu1 %v7184_v15  ;;  %v7265_v13 = vld [vmem:[#allocation8 + $0x2b0] ss:$48 sps:$4 sm:$0xff]   ;;  %v7268_v15 = vld [vmem:[#allocation8 + $0x2b8] ss:$48 sps:$4 sm:$0xff]  }
 0x282   :  { %2892 = vmatprep.subr.bf16.mxu0 %v7189_v16  ;;  %2974 = vmatprep.subr.bf16.mxu1 %v7192_v21  ;;  %v7273_v16 = vld [vmem:[#allocation8 + $0x314] ss:$48 sps:$4 sm:$0xff]   ;;  %v7276_v21 = vld [vmem:[#allocation8 + $0x31c] ss:$48 sps:$4 sm:$0xff]  }
 0x285   :  { %2893 = vmatpush1.bf16.msra.mxu0 %v7187_v22  ;;  %2975 = vmatpush1.bf16.msra.mxu1 %v7190_v23  ;;  %v7271_v22 = vld [vmem:[#allocation8 + $0x310] ss:$48 sps:$4 sm:$0xff]   ;;  %v7274_v23 = vld [vmem:[#allocation8 + $0x318] ss:$48 sps:$4 sm:$0xff]  }
 0x286   :  { %2894 = vmatprep.subr.bf16.mxu0 %v7195_v24  ;;  %2976 = vmatprep.subr.bf16.mxu1 %v7198_v14  ;;  %v7279_v24 = vld [vmem:[#allocation8 + $0x374] ss:$48 sps:$4 sm:$0xff]   ;;  %v7282_v14 = vld [vmem:[#allocation8 + $0x37c] ss:$48 sps:$4 sm:$0xff]  }
 0x289   :  { %2895 = vmatpush1.bf16.msra.mxu0 %v7193_v26  ;;  %2977 = vmatpush1.bf16.msra.mxu1 %v7196_v27  ;;  %v7277_v26 = vld [vmem:[#allocation8 + $0x370] ss:$48 sps:$4 sm:$0xff]   ;;  %v7280_v27 = vld [vmem:[#allocation8 + $0x378] ss:$48 sps:$4 sm:$0xff]  }
 0x28a   :  { %2896 = vmatprep.subr.bf16.mxu0 %v7201_v28  ;;  %2978 = vmatprep.subr.bf16.mxu1 %v7204_v29  ;;  %v7285_v28 = vld [vmem:[#allocation8 + $0x3d4] ss:$48 sps:$4 sm:$0xff]   ;;  %v7288_v29 = vld [vmem:[#allocation8 + $0x3dc] ss:$48 sps:$4 sm:$0xff]  }
 0x28d   :  { %2897 = vmatpush1.bf16.msra.mxu0 %v7199_v30  ;;  %2979 = vmatpush1.bf16.msra.mxu1 %v7202_v31  ;;  %v7283_v30 = vld [vmem:[#allocation8 + $0x3d0] ss:$48 sps:$4 sm:$0xff]   ;;  %v7286_v31 = vld [vmem:[#allocation8 + $0x3d8] ss:$48 sps:$4 sm:$0xff]  }
 0x28e   :  { %2898 = vmatprep.subr.bf16.mxu0 %v7207_v33  ;;  %2980 = vmatprep.subr.bf16.mxu1 %v7210_v34  ;;  %v7291_v33 = vld [vmem:[#allocation8 + $0x434] ss:$48 sps:$4 sm:$0xff]   ;;  %v7294_v34 = vld [vmem:[#allocation8 + $0x43c] ss:$48 sps:$4 sm:$0xff]  }
 0x291   :  { %2899 = vmatpush1.bf16.msra.mxu0 %v7205_v35  ;;  %2981 = vmatpush1.bf16.msra.mxu1 %v7208_v36  ;;  %v7289_v35 = vld [vmem:[#allocation8 + $0x430] ss:$48 sps:$4 sm:$0xff]   ;;  %v7292_v36 = vld [vmem:[#allocation8 + $0x438] ss:$48 sps:$4 sm:$0xff]  }
 0x292   :  { %2900 = vmatprep.subr.bf16.mxu0 %v7213_v38  ;;  %2982 = vmatprep.subr.bf16.mxu1 %v7216_v39  ;;  %v7300_v38 = vld [vmem:[#allocation8 + $0x49c] ss:$48 sps:$4 sm:$0xff]   ;;  %v7295_v39 = vld [vmem:[#allocation8 + $0x490] ss:$48 sps:$4 sm:$0xff]  }
 0x295   :  { %2901 = vmatpush1.bf16.msra.mxu0 %v7211_v40  ;;  %2983 = vmatpush1.bf16.msra.mxu1 %v7214_v17  ;;  %v7298_v40 = vld [vmem:[#allocation8 + $0x498] ss:$48 sps:$4 sm:$0xff]   ;;  %v7303_v17 = vld [vmem:[#allocation8 + $0x4f4] ss:$48 sps:$4 sm:$0xff]  }
 0x296   :  { %2902 = vmatprep.subr.bf16.mxu0 %v7219_v42  ;;  %2984 = vmatprep.subr.bf16.mxu1 %v7222_v43  ;;  %v7301_v42 = vld [vmem:[#allocation8 + $0x4f0] ss:$48 sps:$4 sm:$0xff]   ;;  %v7304_v43 = vld [vmem:[#allocation8 + $0x4f8] ss:$48 sps:$4 sm:$0xff]  }
 0x299   :  { %2903 = vmatpush1.bf16.msra.mxu0 %v7217_v44  ;;  %2985 = vmatpush1.bf16.msra.mxu1 %v7220_v45  ;;  %v7309_v44 = vld [vmem:[#allocation8 + $0x554] ss:$48 sps:$4 sm:$0xff]   ;;  %v7312_v45 = vld [vmem:[#allocation8 + $0x55c] ss:$48 sps:$4 sm:$0xff]  }
 0x29a   :  { %3793 = vmatprep.subr.bf16.mxu0 %v7225_v19  ;;  %3875 = vmatprep.subr.bf16.mxu1 %v7228_v47  ;;  %v7310_v19 = vld [vmem:[#allocation8 + $0x558] ss:$48 sps:$4 sm:$0xff]   ;;  %v7315_v47 = vld [vmem:[#allocation8 + $0x5b4] ss:$48 sps:$4 sm:$0xff]  }
 0x29c   :  { %2905 = vmatmul.mubr.bf16.vlgmr.msra.gmra.mrb[4].mxu0 %v2039_v50  ;;  %2987 = vmatmul.mubr.bf16.vlgmr.msra.gmra.mrb[4].mxu1 %v2039_v50  ;;  %v7316_v50 = vld [vmem:[#allocation8 + $0x5b8] ss:$48 sps:$4 sm:$0xff]  }
 0x29d   :  { %3794 = vmatpush1.bf16.msra.mxu0 %v7223_v48  ;;  %3876 = vmatpush1.bf16.msra.mxu1 %v7226_v49  ;;  %v7318_v48 = vld [vmem:[#allocation8 + $0x5bc] ss:$48 sps:$4 sm:$0xff]   ;;  %v7313_v49 = vld [vmem:[#allocation8 + $0x5b0] ss:$48 sps:$4 sm:$0xff]  }
 0x29e   :  { %3795 = vmatprep.subr.bf16.mxu0 %v7231_v25  ;;  %3877 = vmatprep.subr.bf16.mxu1 %v7234_v51  ;;  %v7321_v25 = vld [vmem:[#allocation8 + $0x614] ss:$48 sps:$4 sm:$0xff]   ;;  %v7324_v51 = vld [vmem:[#allocation8 + $0x61c] ss:$48 sps:$4 sm:$0xff]  }
 0x2a1   :  { %3796 = vmatpush1.bf16.msra.mxu0 %v7229_v52  ;;  %3878 = vmatpush1.bf16.msra.mxu1 %v7232_v53  ;;  %v8104_v52 = vld [vmem:[#allocation10] sm:$0xf] }
 0x2a2   :  { %3797 = vmatprep.subr.bf16.mxu0 %v7237_v54  ;;  %3879 = vmatprep.subr.bf16.mxu1 %v7240_v55  ;;  %v2174_v53 = vrot.slane %v8104_v52, %v8080_v18  ;;  %v2178_v54 = vrot.slane %v8104_v52, %v8085_v20  ;;  %v2186_v55 = vrot.slane %v8104_v52, %v8088_v11 }
 0x2a5   :  { %3798 = vmatpush1.bf16.msra.mxu0 %v7235_v56  ;;  %3880 = vmatpush1.bf16.msra.mxu1 %v7238_v57 }
 0x2a6   :  { %3799 = vmatprep.subr.bf16.mxu0 %v7243_v58  ;;  %3881 = vmatprep.subr.bf16.mxu1 %v7246_v59 }
 0x2a9   :  { %3800 = vmatpush1.bf16.msra.mxu0 %v7241_v60  ;;  %3882 = vmatpush1.bf16.msra.mxu1 %v7244_v61 }
 0x2aa   :  { %3801 = vmatprep.subr.bf16.mxu0 %v7249_v62  ;;  %3883 = vmatprep.subr.bf16.mxu1 %v7252_v63 }
 0x2ad   :  { %3802 = vmatpush1.bf16.msra.mxu0 %v7247_v0  ;;  %3884 = vmatpush1.bf16.msra.mxu1 %v7250_v1 }
 0x2ae   :  { %3803 = vmatprep.subr.bf16.mxu0 %v7255_v2  ;;  %3885 = vmatprep.subr.bf16.mxu1 %v7258_v3 }
 0x2b1   :  { %3804 = vmatpush1.bf16.msra.mxu0 %v7253_v4  ;;  %3886 = vmatpush1.bf16.msra.mxu1 %v7256_v5 }
 0x2b2   :  { %3805 = vmatprep.subr.bf16.mxu0 %v7261_v6  ;;  %3887 = vmatprep.subr.bf16.mxu1 %v7264_v7  ;;  %v7319_v7 = vld [vmem:[#allocation8 + $0x610] ss:$48 sps:$4 sm:$0xff]  }
 0x2b5   :  { %3806 = vmatpush1.bf16.msra.mxu0 %v7259_v8  ;;  %3888 = vmatpush1.bf16.msra.mxu1 %v7262_v9  ;;  %v7322_v8 = vld [vmem:[#allocation8 + $0x618] ss:$48 sps:$4 sm:$0xff]  }
 0x2b6   :  { %3807 = vmatprep.subr.bf16.mxu0 %v7267_v10  ;;  %3889 = vmatprep.subr.bf16.mxu1 %v7270_v12  ;;  %v7327_v10 = vld [vmem:[#allocation8 + $0x674] ss:$48 sps:$4 sm:$0xff]   ;;  %v7330_v12 = vld [vmem:[#allocation8 + $0x67c] ss:$48 sps:$4 sm:$0xff]  }
 0x2b9   :  { %3808 = vmatpush1.bf16.msra.mxu0 %v7265_v13  ;;  %3890 = vmatpush1.bf16.msra.mxu1 %v7268_v15  ;;  %v7325_v15 = vld [vmem:[#allocation8 + $0x670] ss:$48 sps:$4 sm:$0xff]  }
 0x2ba   :  { %3809 = vmatprep.subr.bf16.mxu0 %v7273_v16  ;;  %3891 = vmatprep.subr.bf16.mxu1 %v7276_v21  ;;  %v7328_v16 = vld [vmem:[#allocation8 + $0x678] ss:$48 sps:$4 sm:$0xff]   ;;  %v7333_v21 = vld [vmem:[#allocation8 + $0x6d4] ss:$48 sps:$4 sm:$0xff]  }
 0x2bd   :  { %3810 = vmatpush1.bf16.msra.mxu0 %v7271_v22  ;;  %3892 = vmatpush1.bf16.msra.mxu1 %v7274_v23  ;;  %v7336_v22 = vld [vmem:[#allocation8 + $0x6dc] ss:$48 sps:$4 sm:$0xff]   ;;  %v7331_v23 = vld [vmem:[#allocation8 + $0x6d0] ss:$48 sps:$4 sm:$0xff]  }
 0x2be   :  { %3811 = vmatprep.subr.bf16.mxu0 %v7279_v24  ;;  %3893 = vmatprep.subr.bf16.mxu1 %v7282_v14  ;;  %v7334_v24 = vld [vmem:[#allocation8 + $0x6d8] ss:$48 sps:$4 sm:$0xff]   ;;  %v7339_v14 = vld [vmem:[#allocation8 + $0x734] ss:$48 sps:$4 sm:$0xff]  }
 0x2c1   :  { %3812 = vmatpush1.bf16.msra.mxu0 %v7277_v26  ;;  %3894 = vmatpush1.bf16.msra.mxu1 %v7280_v27  ;;  %v7342_v26 = vld [vmem:[#allocation8 + $0x73c] ss:$48 sps:$4 sm:$0xff]   ;;  %v7337_v27 = vld [vmem:[#allocation8 + $0x730] ss:$48 sps:$4 sm:$0xff]  }
 0x2c2   :  { %3813 = vmatprep.subr.bf16.mxu0 %v7285_v28  ;;  %3895 = vmatprep.subr.bf16.mxu1 %v7288_v29  ;;  %v7340_v28 = vld [vmem:[#allocation8 + $0x738] ss:$48 sps:$4 sm:$0xff]   ;;  %v7345_v29 = vld [vmem:[#allocation8 + $0x794] ss:$48 sps:$4 sm:$0xff]  }
 0x2c5   :  { %3814 = vmatpush1.bf16.msra.mxu0 %v7283_v30  ;;  %3896 = vmatpush1.bf16.msra.mxu1 %v7286_v31  ;;  %v7348_v30 = vld [vmem:[#allocation8 + $0x79c] ss:$48 sps:$4 sm:$0xff]   ;;  %v7343_v31 = vld [vmem:[#allocation8 + $0x790] ss:$48 sps:$4 sm:$0xff]  }
 0x2c6   :  { %3815 = vmatprep.subr.bf16.mxu0 %v7291_v33  ;;  %3897 = vmatprep.subr.bf16.mxu1 %v7294_v34  ;;  %v7346_v33 = vld [vmem:[#allocation8 + $0x798] ss:$48 sps:$4 sm:$0xff]   ;;  %v7351_v34 = vld [vmem:[#allocation8 + $0x7f4] ss:$48 sps:$4 sm:$0xff]  }
 0x2c9   :  { %3816 = vmatpush1.bf16.msra.mxu0 %v7289_v35  ;;  %3898 = vmatpush1.bf16.msra.mxu1 %v7292_v36  ;;  %v7354_v35 = vld [vmem:[#allocation8 + $0x7fc] ss:$48 sps:$4 sm:$0xff]   ;;  %v7349_v36 = vld [vmem:[#allocation8 + $0x7f0] ss:$48 sps:$4 sm:$0xff]  }
 0x2ca   :  { %3817 = vmatprep.subr.bf16.mxu0 %v7297_v37  ;;  %3899 = vmatprep.subr.bf16.mxu1 %v7300_v38  ;;  %v7352_v37 = vld [vmem:[#allocation8 + $0x7f8] ss:$48 sps:$4 sm:$0xff]   ;;  %v7357_v38 = vld [vmem:[#allocation8 + $0x854] ss:$48 sps:$4 sm:$0xff]  }
 0x2cd   :  { %3818 = vmatpush1.bf16.msra.mxu0 %v7295_v39  ;;  %3900 = vmatpush1.bf16.msra.mxu1 %v7298_v40  ;;  %v7360_v39 = vld [vmem:[#allocation8 + $0x85c] ss:$48 sps:$4 sm:$0xff]   ;;  %v7355_v40 = vld [vmem:[#allocation8 + $0x850] ss:$48 sps:$4 sm:$0xff]  }
 0x2ce   :  { %3819 = vmatprep.subr.bf16.mxu0 %v7303_v17  ;;  %3901 = vmatprep.subr.bf16.mxu1 %v7306_v41  ;;  %v7358_v17 = vld [vmem:[#allocation8 + $0x858] ss:$48 sps:$4 sm:$0xff]   ;;  %v7363_v41 = vld [vmem:[#allocation8 + $0x8b4] ss:$48 sps:$4 sm:$0xff]  }
 0x2d1   :  { %3820 = vmatpush1.bf16.msra.mxu0 %v7301_v42  ;;  %3902 = vmatpush1.bf16.msra.mxu1 %v7304_v43  ;;  %v7366_v42 = vld [vmem:[#allocation8 + $0x8bc] ss:$48 sps:$4 sm:$0xff]   ;;  %v7361_v43 = vld [vmem:[#allocation8 + $0x8b0] ss:$48 sps:$4 sm:$0xff]  }
 0x2d2   :  { %3821 = vmatprep.subr.bf16.mxu0 %v7309_v44  ;;  %3903 = vmatprep.subr.bf16.mxu1 %v7312_v45  ;;  %v7364_v44 = vld [vmem:[#allocation8 + $0x8b8] ss:$48 sps:$4 sm:$0xff]   ;;  %v7369_v45 = vld [vmem:[#allocation8 + $0x914] ss:$48 sps:$4 sm:$0xff]  }
 0x2d5   :  { %3822 = vmatpush1.bf16.msra.mxu0 %v7307_v46  ;;  %3904 = vmatpush1.bf16.msra.mxu1 %v7310_v19  ;;  %v7372_v46 = vld [vmem:[#allocation8 + $0x91c] ss:$48 sps:$4 sm:$0xff]   ;;  %v7367_v19 = vld [vmem:[#allocation8 + $0x910] ss:$48 sps:$4 sm:$0xff]  }
 0x2d6   :  { %3823 = vmatprep.subr.bf16.mxu0 %v7315_v47  ;;  %3905 = vmatprep.subr.bf16.mxu1 %v7318_v48  ;;  %v7370_v47 = vld [vmem:[#allocation8 + $0x918] ss:$48 sps:$4 sm:$0xff]   ;;  %v7375_v48 = vld [vmem:[#allocation8 + $0x974] ss:$48 sps:$4 sm:$0xff]  }
 0x2d9   :  { %3824 = vmatpush1.bf16.msra.mxu0 %v7313_v49  ;;  %3906 = vmatpush1.bf16.msra.mxu1 %v7316_v50  ;;  %v7378_v49 = vld [vmem:[#allocation8 + $0x97c] ss:$48 sps:$4 sm:$0xff]   ;;  %v7373_v50 = vld [vmem:[#allocation8 + $0x970] ss:$48 sps:$4 sm:$0xff]  }
 0x2da   :  { %3834 = vmatprep.subr.bf16.mxu0 %v7321_v25  ;;  %3916 = vmatprep.subr.bf16.mxu1 %v7324_v51  ;;  %v7376_v25 = vld [vmem:[#allocation8 + $0x978] ss:$48 sps:$4 sm:$0xff]   ;;  %v7381_v51 = vld [vmem:[#allocation8 + $0x9d4] ss:$48 sps:$4 sm:$0xff]  }
 0x36f   :  { %v2906_v56 = vpop.f32.mrb[4].mxu0  ;;  %v8112_v57 = vpop.f32.mrb[4].mxu1 }
 0x370   :  { %v6559_v58 = vadd.f32 %v2906_v56, %v2174_v53  ;;  %v2908_v59 = vpop.f32.mrb[5].mxu0  ;;  %v2990_v60 = vpop.f32.mrb[5].mxu1  ;;  %v7384_v53 = vld [vmem:[#allocation8 + $0x9dc] ss:$48 sps:$4 sm:$0xff]   ;;  %v7387_v56 = vld [vmem:[#allocation8 + $0xa34] ss:$48 sps:$4 sm:$0xff]  }
 0x371   :  { %v6560_v61 = vadd.f32 %v2908_v59, %v2178_v54  ;;  %v6562_v62 = vadd.f32 %v2990_v60, %v2186_v55  ;;  %v2910_v63 = vpop.f32.mrb[6].mxu0  ;;  %v2992_v0 = vpop.f32.mrb[6].mxu1  ;;  %v7379_v54 = vld [vmem:[#allocation8 + $0x9d0] ss:$48 sps:$4 sm:$0xff]   ;;  %v7382_v55 = vld [vmem:[#allocation8 + $0x9d8] ss:$48 sps:$4 sm:$0xff]  }
 0x372   :  { %v2995_v1 = vmax.f32 %v6559_v58, 0.0  ;;  %v2911_v2 = vpop.f32.mrb[7].mxu0  ;;  %v2993_v3 = vpop.f32.mrb[7].mxu1  ;;  %v7390_v58 = vld [vmem:[#allocation8 + $0xa3c] ss:$48 sps:$4 sm:$0xff]  }
 0x373   :  { %v2996_v4 = vmax.f32 %v6560_v61, 0.0  ;;  %v2998_v5 = vmax.f32 %v6562_v62, 0.0  ;;  %v7385_v59 = vld [vmem:[#allocation8 + $0xa30] ss:$48 sps:$4 sm:$0xff]   ;;  %v7388_v60 = vld [vmem:[#allocation8 + $0xa38] ss:$48 sps:$4 sm:$0xff]  }
 0x374   :  { %v2999_v9 = vpack.c.bf16 %v2995_v1, %v2995_v1  ;;  %v7393_v61 = vld [vmem:[#allocation8 + $0xa94] ss:$48 sps:$4 sm:$0xff]   ;;  %v7396_v62 = vld [vmem:[#allocation8 + $0xa9c] ss:$48 sps:$4 sm:$0xff]   ;;  %v7391_v63 = vld [vmem:[#allocation8 + $0xa90] ss:$48 sps:$4 sm:$0xff]  }
 0x375   :  { %v3000_v6 = vpack.c.bf16 %v2996_v4, %v2996_v4  ;;  %v3002_v13 = vpack.c.bf16 %v2998_v5, %v2998_v5  ;;  %v7394_v0 = vld [vmem:[#allocation8 + $0xa98] ss:$48 sps:$4 sm:$0xff]   ;;  %v7399_v1 = vld [vmem:[#allocation8 + $0xaf4] ss:$48 sps:$4 sm:$0xff]   ;;  %v7402_v2 = vld [vmem:[#allocation8 + $0xafc] ss:$48 sps:$4 sm:$0xff]   ;;  %v2182_v5 = vrot.slane %v8104_v52, %v8099_v32 }
 0x376   :  { %v7397_v3 = vld [vmem:[#allocation8 + $0xaf0] ss:$48 sps:$4 sm:$0xff]   ;;  %v7400_v4 = vld [vmem:[#allocation8 + $0xaf8] ss:$48 sps:$4 sm:$0xff]   ;;  %v7417_v52 = vld [vmem:[#allocation8 + $0x24] ss:$48 sps:$4 sm:$0xff]  }
 0x377   :  { %3825 = vmatprep.mubr.bf16.mxu0 %v3000_v6  ;;  %3907 = vmatprep.mubr.bf16.mxu1 %v3000_v6  ;;  %v7405_v6 = vld [vmem:[#allocation8 + $0xb54] ss:$48 sps:$4 sm:$0xff]  }
 0x378   :  { %3826 = vmatmul.mubr.bf16.vlgmr.msra.gmra.mrb[8].mxu0 %v2999_v9  ;;  %3908 = vmatmul.mubr.bf16.vlgmr.msra.gmra.mrb[8].mxu1 %v2999_v9  ;;  %v7406_v9 = vld [vmem:[#allocation8 + $0xb58] ss:$48 sps:$4 sm:$0xff]  }
 0x379   :  { %3835 = vmatpush1.bf16.msra.mxu0 %v7319_v7  ;;  %3917 = vmatpush1.bf16.msra.mxu1 %v7322_v8  ;;  %v7408_v7 = vld [vmem:[#allocation8 + $0xb5c] ss:$48 sps:$4 sm:$0xff]   ;;  %v7403_v8 = vld [vmem:[#allocation8 + $0xb50] ss:$48 sps:$4 sm:$0xff]  }
 0x37a   :  { %3866 = vmatprep.mubr.bf16.mxu0 %v3002_v13  ;;  %3948 = vmatprep.mubr.bf16.mxu1 %v3002_v13  ;;  %v7414_v13 = vld [vmem:[#allocation8 + $0xbbc] ss:$48 sps:$4 sm:$0xff]  }
 0x37b   :  { %3836 = vmatprep.subr.bf16.mxu0 %v7327_v10  ;;  %3918 = vmatprep.subr.bf16.mxu1 %v7330_v12  ;;  %v6561_v10 = vadd.f32 %v8112_v57, %v2182_v5  ;;  %v7411_v12 = vld [vmem:[#allocation8 + $0xbb4] ss:$48 sps:$4 sm:$0xff]  }
 0x37c   :  { %v7423_v57 = vld [vmem:[#allocation8 + $0x84] ss:$48 sps:$4 sm:$0xff]  }
 0x37d   :  { %3837 = vmatpush1.bf16.msra.mxu0 %v7325_v15  ;;  %3919 = vmatpush1.bf16.msra.mxu1 %v7328_v16  ;;  %v7409_v15 = vld [vmem:[#allocation8 + $0xbb0] ss:$48 sps:$4 sm:$0xff]   ;;  %v7412_v16 = vld [vmem:[#allocation8 + $0xbb8] ss:$48 sps:$4 sm:$0xff]   ;;  %v7489_v5 = vld [vmem:[#allocation8 + $0x4a4] ss:$48 sps:$4 sm:$0xff]  }
 0x37e   :  { %3838 = vmatprep.subr.bf16.mxu0 %v7333_v21  ;;  %3920 = vmatprep.subr.bf16.mxu1 %v7336_v22  ;;  %v2997_v21 = vmax.f32 %v6561_v10, 0.0  ;;  %v7420_v22 = vld [vmem:[#allocation8 + $0x2c] ss:$48 sps:$4 sm:$0xff]  }
 0x37f   :  { %v7498_v10 = vld [vmem:[#allocation8 + $0x50c] ss:$48 sps:$4 sm:$0xff]  }
 0x381   :  { %3839 = vmatpush1.bf16.msra.mxu0 %v7331_v23  ;;  %3921 = vmatpush1.bf16.msra.mxu1 %v7334_v24  ;;  %v7415_v23 = vld [vmem:[#allocation8 + $0x20] ss:$48 sps:$4 sm:$0xff]   ;;  %v7418_v24 = vld [vmem:[#allocation8 + $0x28] ss:$48 sps:$4 sm:$0xff]  }
 0x382   :  { %3840 = vmatprep.subr.bf16.mxu0 %v7339_v14  ;;  %3922 = vmatprep.subr.bf16.mxu1 %v7342_v26  ;;  %v3001_v14 = vpack.c.bf16 %v2997_v21, %v2997_v21  ;;  %v7426_v26 = vld [vmem:[#allocation8 + $0x8c] ss:$48 sps:$4 sm:$0xff]   ;;  %v7499_v21 = vld [vmem:[#allocation8 + $0x560] ss:$48 sps:$4 sm:$0xff]  }
 0x385   :  { %3841 = vmatpush1.bf16.msra.mxu0 %v7337_v27  ;;  %3923 = vmatpush1.bf16.msra.mxu1 %v7340_v28  ;;  %v7421_v27 = vld [vmem:[#allocation8 + $0x80] ss:$48 sps:$4 sm:$0xff]   ;;  %v7424_v28 = vld [vmem:[#allocation8 + $0x88] ss:$48 sps:$4 sm:$0xff]  }
 0x386   :  { %3842 = vmatprep.subr.bf16.mxu0 %v7345_v29  ;;  %3924 = vmatprep.subr.bf16.mxu1 %v7348_v30  ;;  %v7429_v29 = vld [vmem:[#allocation8 + $0xe4] ss:$48 sps:$4 sm:$0xff]   ;;  %v7432_v30 = vld [vmem:[#allocation8 + $0xec] ss:$48 sps:$4 sm:$0xff]  }
 0x389   :  { %3843 = vmatpush1.bf16.msra.mxu0 %v7343_v31  ;;  %3925 = vmatpush1.bf16.msra.mxu1 %v7346_v33  ;;  %v7427_v31 = vld [vmem:[#allocation8 + $0xe0] ss:$48 sps:$4 sm:$0xff]   ;;  %v7430_v33 = vld [vmem:[#allocation8 + $0xe8] ss:$48 sps:$4 sm:$0xff]  }
 0x38a   :  { %3844 = vmatprep.subr.bf16.mxu0 %v7351_v34  ;;  %3926 = vmatprep.subr.bf16.mxu1 %v7354_v35  ;;  %v7435_v34 = vld [vmem:[#allocation8 + $0x144] ss:$48 sps:$4 sm:$0xff]   ;;  %v7438_v35 = vld [vmem:[#allocation8 + $0x14c] ss:$48 sps:$4 sm:$0xff]  }
 0x38d   :  { %3845 = vmatpush1.bf16.msra.mxu0 %v7349_v36  ;;  %3927 = vmatpush1.bf16.msra.mxu1 %v7352_v37  ;;  %v7433_v36 = vld [vmem:[#allocation8 + $0x140] ss:$48 sps:$4 sm:$0xff]   ;;  %v7436_v37 = vld [vmem:[#allocation8 + $0x148] ss:$48 sps:$4 sm:$0xff]  }
 0x38e   :  { %3846 = vmatprep.subr.bf16.mxu0 %v7357_v38  ;;  %3928 = vmatprep.subr.bf16.mxu1 %v7360_v39  ;;  %v7441_v38 = vld [vmem:[#allocation8 + $0x1a4] ss:$48 sps:$4 sm:$0xff]   ;;  %v7444_v39 = vld [vmem:[#allocation8 + $0x1ac] ss:$48 sps:$4 sm:$0xff]  }
 0x391   :  { %3847 = vmatpush1.bf16.msra.mxu0 %v7355_v40  ;;  %3929 = vmatpush1.bf16.msra.mxu1 %v7358_v17  ;;  %v7439_v40 = vld [vmem:[#allocation8 + $0x1a0] ss:$48 sps:$4 sm:$0xff]   ;;  %v7442_v17 = vld [vmem:[#allocation8 + $0x1a8] ss:$48 sps:$4 sm:$0xff]  }
 0x392   :  { %3848 = vmatprep.subr.bf16.mxu0 %v7363_v41  ;;  %3930 = vmatprep.subr.bf16.mxu1 %v7366_v42  ;;  %v7447_v41 = vld [vmem:[#allocation8 + $0x204] ss:$48 sps:$4 sm:$0xff]   ;;  %v7450_v42 = vld [vmem:[#allocation8 + $0x20c] ss:$48 sps:$4 sm:$0xff]  }
 0x395   :  { %3849 = vmatpush1.bf16.msra.mxu0 %v7361_v43  ;;  %3931 = vmatpush1.bf16.msra.mxu1 %v7364_v44  ;;  %v7445_v43 = vld [vmem:[#allocation8 + $0x200] ss:$48 sps:$4 sm:$0xff]   ;;  %v7448_v44 = vld [vmem:[#allocation8 + $0x208] ss:$48 sps:$4 sm:$0xff]  }
 0x396   :  { %3850 = vmatprep.subr.bf16.mxu0 %v7369_v45  ;;  %3932 = vmatprep.subr.bf16.mxu1 %v7372_v46  ;;  %v7453_v45 = vld [vmem:[#allocation8 + $0x264] ss:$48 sps:$4 sm:$0xff]   ;;  %v7456_v46 = vld [vmem:[#allocation8 + $0x26c] ss:$48 sps:$4 sm:$0xff]  }
 0x399   :  { %3851 = vmatpush1.bf16.msra.mxu0 %v7367_v19  ;;  %3933 = vmatpush1.bf16.msra.mxu1 %v7370_v47  ;;  %v7451_v19 = vld [vmem:[#allocation8 + $0x260] ss:$48 sps:$4 sm:$0xff]   ;;  %v7454_v47 = vld [vmem:[#allocation8 + $0x268] ss:$48 sps:$4 sm:$0xff]  }
 0x39a   :  { %3852 = vmatprep.subr.bf16.mxu0 %v7375_v48  ;;  %3934 = vmatprep.subr.bf16.mxu1 %v7378_v49  ;;  %v7459_v48 = vld [vmem:[#allocation8 + $0x2c4] ss:$48 sps:$4 sm:$0xff]   ;;  %v7462_v49 = vld [vmem:[#allocation8 + $0x2cc] ss:$48 sps:$4 sm:$0xff]  }
 0x39d   :  { %3853 = vmatpush1.bf16.msra.mxu0 %v7373_v50  ;;  %3935 = vmatpush1.bf16.msra.mxu1 %v7376_v25  ;;  %v7457_v50 = vld [vmem:[#allocation8 + $0x2c0] ss:$48 sps:$4 sm:$0xff]   ;;  %v7460_v25 = vld [vmem:[#allocation8 + $0x2c8] ss:$48 sps:$4 sm:$0xff]  }
 0x39e   :  { %3854 = vmatprep.subr.bf16.mxu0 %v7381_v51  ;;  %3936 = vmatprep.subr.bf16.mxu1 %v7384_v53  ;;  %v7465_v51 = vld [vmem:[#allocation8 + $0x324] ss:$48 sps:$4 sm:$0xff]   ;;  %v7468_v53 = vld [vmem:[#allocation8 + $0x32c] ss:$48 sps:$4 sm:$0xff]  }
 0x3a1   :  { %3855 = vmatpush1.bf16.msra.mxu0 %v7379_v54  ;;  %3937 = vmatpush1.bf16.msra.mxu1 %v7382_v55  ;;  %v7463_v54 = vld [vmem:[#allocation8 + $0x320] ss:$48 sps:$4 sm:$0xff]   ;;  %v7466_v55 = vld [vmem:[#allocation8 + $0x328] ss:$48 sps:$4 sm:$0xff]  }
 0x3a2   :  { %3856 = vmatprep.subr.bf16.mxu0 %v7387_v56  ;;  %3938 = vmatprep.subr.bf16.mxu1 %v7390_v58  ;;  %v7471_v56 = vld [vmem:[#allocation8 + $0x384] ss:$48 sps:$4 sm:$0xff]   ;;  %v7474_v58 = vld [vmem:[#allocation8 + $0x38c] ss:$48 sps:$4 sm:$0xff]  }
 0x3a5   :  { %3857 = vmatpush1.bf16.msra.mxu0 %v7385_v59  ;;  %3939 = vmatpush1.bf16.msra.mxu1 %v7388_v60  ;;  %v7469_v59 = vld [vmem:[#allocation8 + $0x380] ss:$48 sps:$4 sm:$0xff]   ;;  %v7472_v60 = vld [vmem:[#allocation8 + $0x388] ss:$48 sps:$4 sm:$0xff]  }
 0x3a6   :  { %3858 = vmatprep.subr.bf16.mxu0 %v7393_v61  ;;  %3940 = vmatprep.subr.bf16.mxu1 %v7396_v62  ;;  %v7477_v61 = vld [vmem:[#allocation8 + $0x3e4] ss:$48 sps:$4 sm:$0xff]   ;;  %v7480_v62 = vld [vmem:[#allocation8 + $0x3ec] ss:$48 sps:$4 sm:$0xff]  }
 0x3a9   :  { %3859 = vmatpush1.bf16.msra.mxu0 %v7391_v63  ;;  %3941 = vmatpush1.bf16.msra.mxu1 %v7394_v0  ;;  %v7475_v63 = vld [vmem:[#allocation8 + $0x3e0] ss:$48 sps:$4 sm:$0xff]   ;;  %v7478_v0 = vld [vmem:[#allocation8 + $0x3e8] ss:$48 sps:$4 sm:$0xff]  }
 0x3aa   :  { %3860 = vmatprep.subr.bf16.mxu0 %v7399_v1  ;;  %3942 = vmatprep.subr.bf16.mxu1 %v7402_v2  ;;  %v7483_v1 = vld [vmem:[#allocation8 + $0x444] ss:$48 sps:$4 sm:$0xff]   ;;  %v7486_v2 = vld [vmem:[#allocation8 + $0x44c] ss:$48 sps:$4 sm:$0xff]  }
 0x3ad   :  { %3861 = vmatpush1.bf16.msra.mxu0 %v7397_v3  ;;  %3943 = vmatpush1.bf16.msra.mxu1 %v7400_v4  ;;  %v7481_v3 = vld [vmem:[#allocation8 + $0x440] ss:$48 sps:$4 sm:$0xff]   ;;  %v7484_v4 = vld [vmem:[#allocation8 + $0x448] ss:$48 sps:$4 sm:$0xff]  }
 0x3ae   :  { %3862 = vmatprep.subr.bf16.mxu0 %v7405_v6  ;;  %3944 = vmatprep.subr.bf16.mxu1 %v7408_v7  ;;  %v7492_v6 = vld [vmem:[#allocation8 + $0x4ac] ss:$48 sps:$4 sm:$0xff]   ;;  %v7487_v7 = vld [vmem:[#allocation8 + $0x4a0] ss:$48 sps:$4 sm:$0xff]  }
 0x3b1   :  { %3863 = vmatpush1.bf16.msra.mxu0 %v7403_v8  ;;  %3945 = vmatpush1.bf16.msra.mxu1 %v7406_v9  ;;  %v7490_v8 = vld [vmem:[#allocation8 + $0x4a8] ss:$48 sps:$4 sm:$0xff]   ;;  %v7495_v9 = vld [vmem:[#allocation8 + $0x504] ss:$48 sps:$4 sm:$0xff]  }
 0x3b2   :  { %3864 = vmatprep.subr.bf16.mxu0 %v7411_v12  ;;  %3946 = vmatprep.subr.bf16.mxu1 %v7414_v13  ;;  %v7493_v12 = vld [vmem:[#allocation8 + $0x500] ss:$48 sps:$4 sm:$0xff]   ;;  %v7496_v13 = vld [vmem:[#allocation8 + $0x508] ss:$48 sps:$4 sm:$0xff]  }
 0x3b5   :  { %3865 = vmatpush1.bf16.msra.mxu0 %v7409_v15  ;;  %3947 = vmatpush1.bf16.msra.mxu1 %v7412_v16  ;;  %v7501_v15 = vld [vmem:[#allocation8 + $0x564] ss:$48 sps:$4 sm:$0xff]   ;;  %v7504_v16 = vld [vmem:[#allocation8 + $0x56c] ss:$48 sps:$4 sm:$0xff]  }
 0x3b6   :  { %4755 = vmatprep.subr.bf16.mxu0 %v7417_v52  ;;  %4837 = vmatprep.subr.bf16.mxu1 %v7420_v22  ;;  %v7502_v52 = vld [vmem:[#allocation8 + $0x568] ss:$48 sps:$4 sm:$0xff]   ;;  %v7507_v22 = vld [vmem:[#allocation8 + $0x5c4] ss:$48 sps:$4 sm:$0xff]  }
 0x3b8   :  { %3867 = vmatmul.mubr.bf16.vlgmr.msra.gmra.mrb[8].mxu0 %v3001_v14  ;;  %3949 = vmatmul.mubr.bf16.vlgmr.msra.gmra.mrb[8].mxu1 %v3001_v14  ;;  %v7508_v14 = vld [vmem:[#allocation8 + $0x5c8] ss:$48 sps:$4 sm:$0xff]  }
 0x3b9   :  { %4756 = vmatpush1.bf16.msra.mxu0 %v7415_v23  ;;  %4838 = vmatpush1.bf16.msra.mxu1 %v7418_v24  ;;  %v7510_v23 = vld [vmem:[#allocation8 + $0x5cc] ss:$48 sps:$4 sm:$0xff]   ;;  %v7505_v24 = vld [vmem:[#allocation8 + $0x5c0] ss:$48 sps:$4 sm:$0xff]  }
 0x3ba   :  { %4757 = vmatprep.subr.bf16.mxu0 %v7423_v57  ;;  %4839 = vmatprep.subr.bf16.mxu1 %v7426_v26  ;;  %v7513_v57 = vld [vmem:[#allocation8 + $0x624] ss:$48 sps:$4 sm:$0xff]   ;;  %v7516_v26 = vld [vmem:[#allocation8 + $0x62c] ss:$48 sps:$4 sm:$0xff]  }
 0x3bd   :  { %4758 = vmatpush1.bf16.msra.mxu0 %v7421_v27  ;;  %4840 = vmatpush1.bf16.msra.mxu1 %v7424_v28  ;;  %v8117_v27 = vld [vmem:[#allocation10 + $0x4] sm:$0xf] }
 0x3be   :  { %4759 = vmatprep.subr.bf16.mxu0 %v7429_v29  ;;  %4841 = vmatprep.subr.bf16.mxu1 %v7432_v30  ;;  %v3136_v28 = vrot.slane %v8117_v27, %v8080_v18  ;;  %v3140_v29 = vrot.slane %v8117_v27, %v8085_v20  ;;  %v3148_v30 = vrot.slane %v8117_v27, %v8088_v11 }
 0x3c1   :  { %4760 = vmatpush1.bf16.msra.mxu0 %v7427_v31  ;;  %4842 = vmatpush1.bf16.msra.mxu1 %v7430_v33 }
 0x3c2   :  { %4761 = vmatprep.subr.bf16.mxu0 %v7435_v34  ;;  %4843 = vmatprep.subr.bf16.mxu1 %v7438_v35 }
 0x3c5   :  { %4762 = vmatpush1.bf16.msra.mxu0 %v7433_v36  ;;  %4844 = vmatpush1.bf16.msra.mxu1 %v7436_v37 }
 0x3c6   :  { %4763 = vmatprep.subr.bf16.mxu0 %v7441_v38  ;;  %4845 = vmatprep.subr.bf16.mxu1 %v7444_v39 }
 0x3c9   :  { %4764 = vmatpush1.bf16.msra.mxu0 %v7439_v40  ;;  %4846 = vmatpush1.bf16.msra.mxu1 %v7442_v17 }
 0x3ca   :  { %4765 = vmatprep.subr.bf16.mxu0 %v7447_v41  ;;  %4847 = vmatprep.subr.bf16.mxu1 %v7450_v42 }
 0x3cd   :  { %4766 = vmatpush1.bf16.msra.mxu0 %v7445_v43  ;;  %4848 = vmatpush1.bf16.msra.mxu1 %v7448_v44 }
 0x3ce   :  { %4767 = vmatprep.subr.bf16.mxu0 %v7453_v45  ;;  %4849 = vmatprep.subr.bf16.mxu1 %v7456_v46  ;;  %v7511_v46 = vld [vmem:[#allocation8 + $0x620] ss:$48 sps:$4 sm:$0xff]  }
 0x3d1   :  { %4768 = vmatpush1.bf16.msra.mxu0 %v7451_v19  ;;  %4850 = vmatpush1.bf16.msra.mxu1 %v7454_v47  ;;  %v7514_v19 = vld [vmem:[#allocation8 + $0x628] ss:$48 sps:$4 sm:$0xff]  }
 0x3d2   :  { %4769 = vmatprep.subr.bf16.mxu0 %v7459_v48  ;;  %4851 = vmatprep.subr.bf16.mxu1 %v7462_v49  ;;  %v7519_v48 = vld [vmem:[#allocation8 + $0x684] ss:$48 sps:$4 sm:$0xff]   ;;  %v7522_v49 = vld [vmem:[#allocation8 + $0x68c] ss:$48 sps:$4 sm:$0xff]  }
 0x3d5   :  { %4770 = vmatpush1.bf16.msra.mxu0 %v7457_v50  ;;  %4852 = vmatpush1.bf16.msra.mxu1 %v7460_v25  ;;  %v7517_v25 = vld [vmem:[#allocation8 + $0x680] ss:$48 sps:$4 sm:$0xff]  }
 0x3d6   :  { %4771 = vmatprep.subr.bf16.mxu0 %v7465_v51  ;;  %4853 = vmatprep.subr.bf16.mxu1 %v7468_v53  ;;  %v7520_v51 = vld [vmem:[#allocation8 + $0x688] ss:$48 sps:$4 sm:$0xff]   ;;  %v7525_v53 = vld [vmem:[#allocation8 + $0x6e4] ss:$48 sps:$4 sm:$0xff]  }
 0x3d9   :  { %4772 = vmatpush1.bf16.msra.mxu0 %v7463_v54  ;;  %4854 = vmatpush1.bf16.msra.mxu1 %v7466_v55  ;;  %v7528_v54 = vld [vmem:[#allocation8 + $0x6ec] ss:$48 sps:$4 sm:$0xff]   ;;  %v7523_v55 = vld [vmem:[#allocation8 + $0x6e0] ss:$48 sps:$4 sm:$0xff]  }
 0x3da   :  { %4773 = vmatprep.subr.bf16.mxu0 %v7471_v56  ;;  %4855 = vmatprep.subr.bf16.mxu1 %v7474_v58  ;;  %v7526_v56 = vld [vmem:[#allocation8 + $0x6e8] ss:$48 sps:$4 sm:$0xff]   ;;  %v7531_v58 = vld [vmem:[#allocation8 + $0x744] ss:$48 sps:$4 sm:$0xff]  }
 0x3dd   :  { %4774 = vmatpush1.bf16.msra.mxu0 %v7469_v59  ;;  %4856 = vmatpush1.bf16.msra.mxu1 %v7472_v60  ;;  %v7534_v59 = vld [vmem:[#allocation8 + $0x74c] ss:$48 sps:$4 sm:$0xff]   ;;  %v7529_v60 = vld [vmem:[#allocation8 + $0x740] ss:$48 sps:$4 sm:$0xff]  }
 0x3de   :  { %4775 = vmatprep.subr.bf16.mxu0 %v7477_v61  ;;  %4857 = vmatprep.subr.bf16.mxu1 %v7480_v62  ;;  %v7532_v61 = vld [vmem:[#allocation8 + $0x748] ss:$48 sps:$4 sm:$0xff]   ;;  %v7537_v62 = vld [vmem:[#allocation8 + $0x7a4] ss:$48 sps:$4 sm:$0xff]  }
 0x3e1   :  { %4776 = vmatpush1.bf16.msra.mxu0 %v7475_v63  ;;  %4858 = vmatpush1.bf16.msra.mxu1 %v7478_v0  ;;  %v7540_v63 = vld [vmem:[#allocation8 + $0x7ac] ss:$48 sps:$4 sm:$0xff]   ;;  %v7535_v0 = vld [vmem:[#allocation8 + $0x7a0] ss:$48 sps:$4 sm:$0xff]  }
 0x3e2   :  { %4777 = vmatprep.subr.bf16.mxu0 %v7483_v1  ;;  %4859 = vmatprep.subr.bf16.mxu1 %v7486_v2  ;;  %v7538_v1 = vld [vmem:[#allocation8 + $0x7a8] ss:$48 sps:$4 sm:$0xff]   ;;  %v7543_v2 = vld [vmem:[#allocation8 + $0x804] ss:$48 sps:$4 sm:$0xff]  }
 0x3e5   :  { %4778 = vmatpush1.bf16.msra.mxu0 %v7481_v3  ;;  %4860 = vmatpush1.bf16.msra.mxu1 %v7484_v4  ;;  %v7546_v3 = vld [vmem:[#allocation8 + $0x80c] ss:$48 sps:$4 sm:$0xff]   ;;  %v7541_v4 = vld [vmem:[#allocation8 + $0x800] ss:$48 sps:$4 sm:$0xff]  }
 0x3e6   :  { %4779 = vmatprep.subr.bf16.mxu0 %v7489_v5  ;;  %4861 = vmatprep.subr.bf16.mxu1 %v7492_v6  ;;  %v7544_v5 = vld [vmem:[#allocation8 + $0x808] ss:$48 sps:$4 sm:$0xff]   ;;  %v7549_v6 = vld [vmem:[#allocation8 + $0x864] ss:$48 sps:$4 sm:$0xff]  }
 0x3e9   :  { %4780 = vmatpush1.bf16.msra.mxu0 %v7487_v7  ;;  %4862 = vmatpush1.bf16.msra.mxu1 %v7490_v8  ;;  %v7552_v7 = vld [vmem:[#allocation8 + $0x86c] ss:$48 sps:$4 sm:$0xff]   ;;  %v7547_v8 = vld [vmem:[#allocation8 + $0x860] ss:$48 sps:$4 sm:$0xff]  }
 0x3ea   :  { %4781 = vmatprep.subr.bf16.mxu0 %v7495_v9  ;;  %4863 = vmatprep.subr.bf16.mxu1 %v7498_v10  ;;  %v7550_v9 = vld [vmem:[#allocation8 + $0x868] ss:$48 sps:$4 sm:$0xff]   ;;  %v7555_v10 = vld [vmem:[#allocation8 + $0x8c4] ss:$48 sps:$4 sm:$0xff]  }
 0x3ed   :  { %4782 = vmatpush1.bf16.msra.mxu0 %v7493_v12  ;;  %4864 = vmatpush1.bf16.msra.mxu1 %v7496_v13  ;;  %v7558_v12 = vld [vmem:[#allocation8 + $0x8cc] ss:$48 sps:$4 sm:$0xff]   ;;  %v7553_v13 = vld [vmem:[#allocation8 + $0x8c0] ss:$48 sps:$4 sm:$0xff]  }
 0x3ee   :  { %4783 = vmatprep.subr.bf16.mxu0 %v7501_v15  ;;  %4865 = vmatprep.subr.bf16.mxu1 %v7504_v16  ;;  %v7556_v15 = vld [vmem:[#allocation8 + $0x8c8] ss:$48 sps:$4 sm:$0xff]   ;;  %v7561_v16 = vld [vmem:[#allocation8 + $0x924] ss:$48 sps:$4 sm:$0xff]  }
 0x3f1   :  { %4784 = vmatpush1.bf16.msra.mxu0 %v7499_v21  ;;  %4866 = vmatpush1.bf16.msra.mxu1 %v7502_v52  ;;  %v7564_v21 = vld [vmem:[#allocation8 + $0x92c] ss:$48 sps:$4 sm:$0xff]   ;;  %v7559_v52 = vld [vmem:[#allocation8 + $0x920] ss:$48 sps:$4 sm:$0xff]  }
 0x3f2   :  { %4785 = vmatprep.subr.bf16.mxu0 %v7507_v22  ;;  %4867 = vmatprep.subr.bf16.mxu1 %v7510_v23  ;;  %v7562_v22 = vld [vmem:[#allocation8 + $0x928] ss:$48 sps:$4 sm:$0xff]   ;;  %v7567_v23 = vld [vmem:[#allocation8 + $0x984] ss:$48 sps:$4 sm:$0xff]  }
 0x3f5   :  { %4786 = vmatpush1.bf16.msra.mxu0 %v7505_v24  ;;  %4868 = vmatpush1.bf16.msra.mxu1 %v7508_v14  ;;  %v7570_v24 = vld [vmem:[#allocation8 + $0x98c] ss:$48 sps:$4 sm:$0xff]   ;;  %v7565_v14 = vld [vmem:[#allocation8 + $0x980] ss:$48 sps:$4 sm:$0xff]  }
 0x3f6   :  { %4796 = vmatprep.subr.bf16.mxu0 %v7513_v57  ;;  %4878 = vmatprep.subr.bf16.mxu1 %v7516_v26  ;;  %v7568_v57 = vld [vmem:[#allocation8 + $0x988] ss:$48 sps:$4 sm:$0xff]   ;;  %v7573_v26 = vld [vmem:[#allocation8 + $0x9e4] ss:$48 sps:$4 sm:$0xff]  }
 0x48b   :  { %v3868_v31 = vpop.f32.mrb[8].mxu0  ;;  %v8125_v33 = vpop.f32.mrb[8].mxu1 }
 0x48c   :  { %v6563_v34 = vadd.f32 %v3868_v31, %v3136_v28  ;;  %v3870_v35 = vpop.f32.mrb[9].mxu0  ;;  %v3952_v36 = vpop.f32.mrb[9].mxu1  ;;  %v7576_v28 = vld [vmem:[#allocation8 + $0x9ec] ss:$48 sps:$4 sm:$0xff]   ;;  %v7579_v31 = vld [vmem:[#allocation8 + $0xa44] ss:$48 sps:$4 sm:$0xff]  }
 0x48d   :  { %v6564_v37 = vadd.f32 %v3870_v35, %v3140_v29  ;;  %v6566_v38 = vadd.f32 %v3952_v36, %v3148_v30  ;;  %v3872_v39 = vpop.f32.mrb[10].mxu0  ;;  %v3954_v40 = vpop.f32.mrb[10].mxu1  ;;  %v7571_v29 = vld [vmem:[#allocation8 + $0x9e0] ss:$48 sps:$4 sm:$0xff]   ;;  %v7574_v30 = vld [vmem:[#allocation8 + $0x9e8] ss:$48 sps:$4 sm:$0xff]  }
 0x48e   :  { %v3957_v17 = vmax.f32 %v6563_v34, 0.0  ;;  %v3873_v41 = vpop.f32.mrb[11].mxu0  ;;  %v3955_v42 = vpop.f32.mrb[11].mxu1  ;;  %v7582_v34 = vld [vmem:[#allocation8 + $0xa4c] ss:$48 sps:$4 sm:$0xff]  }
 0x48f   :  { %v3958_v43 = vmax.f32 %v6564_v37, 0.0  ;;  %v3960_v44 = vmax.f32 %v6566_v38, 0.0  ;;  %v7577_v35 = vld [vmem:[#allocation8 + $0xa40] ss:$48 sps:$4 sm:$0xff]   ;;  %v7580_v36 = vld [vmem:[#allocation8 + $0xa48] ss:$48 sps:$4 sm:$0xff]  }
 0x490   :  { %v3961_v47 = vpack.c.bf16 %v3957_v17, %v3957_v17  ;;  %v7585_v37 = vld [vmem:[#allocation8 + $0xaa4] ss:$48 sps:$4 sm:$0xff]   ;;  %v7588_v38 = vld [vmem:[#allocation8 + $0xaac] ss:$48 sps:$4 sm:$0xff]   ;;  %v7583_v39 = vld [vmem:[#allocation8 + $0xaa0] ss:$48 sps:$4 sm:$0xff]  }
 0x491   :  { %v3962_v45 = vpack.c.bf16 %v3958_v43, %v3958_v43  ;;  %v3964_v50 = vpack.c.bf16 %v3960_v44, %v3960_v44  ;;  %v7586_v40 = vld [vmem:[#allocation8 + $0xaa8] ss:$48 sps:$4 sm:$0xff]   ;;  %v7591_v17 = vld [vmem:[#allocation8 + $0xb04] ss:$48 sps:$4 sm:$0xff]   ;;  %v7594_v41 = vld [vmem:[#allocation8 + $0xb0c] ss:$48 sps:$4 sm:$0xff]   ;;  %v3144_v44 = vrot.slane %v8117_v27, %v8099_v32 }
 0x492   :  { %v7589_v42 = vld [vmem:[#allocation8 + $0xb00] ss:$48 sps:$4 sm:$0xff]   ;;  %v7592_v43 = vld [vmem:[#allocation8 + $0xb08] ss:$48 sps:$4 sm:$0xff]  }
 0x493   :  { %4787 = vmatprep.mubr.bf16.mxu0 %v3962_v45  ;;  %4869 = vmatprep.mubr.bf16.mxu1 %v3962_v45  ;;  %v7597_v45 = vld [vmem:[#allocation8 + $0xb64] ss:$48 sps:$4 sm:$0xff]   ;;  %v7609_v27 = vld [vmem:[#allocation11 + $0x4] ss:$12 sps:$4 sm:$0xff]  }
 0x494   :  { %4788 = vmatmul.mubr.bf16.vlgmr.msra.gmra.mrb[12].mxu0 %v3961_v47  ;;  %4870 = vmatmul.mubr.bf16.vlgmr.msra.gmra.mrb[12].mxu1 %v3961_v47  ;;  %v7598_v47 = vld [vmem:[#allocation8 + $0xb68] ss:$48 sps:$4 sm:$0xff]  }
 0x495   :  { %4797 = vmatpush1.bf16.msra.mxu0 %v7511_v46  ;;  %4879 = vmatpush1.bf16.msra.mxu1 %v7514_v19  ;;  %v7600_v46 = vld [vmem:[#allocation8 + $0xb6c] ss:$48 sps:$4 sm:$0xff]   ;;  %v7595_v19 = vld [vmem:[#allocation8 + $0xb60] ss:$48 sps:$4 sm:$0xff]  }
 0x496   :  { %4828 = vmatprep.mubr.bf16.mxu0 %v3964_v50  ;;  %4910 = vmatprep.mubr.bf16.mxu1 %v3964_v50  ;;  %v7606_v50 = vld [vmem:[#allocation8 + $0xbcc] ss:$48 sps:$4 sm:$0xff]  }
 0x497   :  { %4798 = vmatprep.subr.bf16.mxu0 %v7519_v48  ;;  %4880 = vmatprep.subr.bf16.mxu1 %v7522_v49  ;;  %v6565_v48 = vadd.f32 %v8125_v33, %v3144_v44  ;;  %v7603_v49 = vld [vmem:[#allocation8 + $0xbc4] ss:$48 sps:$4 sm:$0xff]   ;;  %v7673_v44 = vld [vmem:[#allocation11 + $0x184] ss:$12 sps:$4 sm:$0xff]  }
 0x498   :  { %v7612_v33 = vld [vmem:[#allocation11 + $0x1c] ss:$12 sps:$4 sm:$0xff]  }
 0x499   :  { %4799 = vmatpush1.bf16.msra.mxu0 %v7517_v25  ;;  %4881 = vmatpush1.bf16.msra.mxu1 %v7520_v51  ;;  %v7601_v25 = vld [vmem:[#allocation8 + $0xbc0] ss:$48 sps:$4 sm:$0xff]   ;;  %v7604_v51 = vld [vmem:[#allocation8 + $0xbc8] ss:$48 sps:$4 sm:$0xff]  }
 0x49a   :  { %4800 = vmatprep.subr.bf16.mxu0 %v7525_v53  ;;  %4882 = vmatprep.subr.bf16.mxu1 %v7528_v54  ;;  %v3959_v53 = vmax.f32 %v6565_v48, 0.0  ;;  %v7634_v54 = vld [vmem:[#allocation11 + $0xc8] ss:$12 sps:$4 sm:$0xff]  }
 0x49d   :  { %4801 = vmatpush1.bf16.msra.mxu0 %v7523_v55  ;;  %4883 = vmatpush1.bf16.msra.mxu1 %v7526_v56  ;;  %v7607_v55 = vld [vmem:[#allocation11] ss:$12 sps:$4 sm:$0xff]   ;;  %v7635_v56 = vld [vmem:[#allocation11 + $0x8] ss:$12 sps:$4 sm:$0xff]  }
 0x49e   :  { %4802 = vmatprep.subr.bf16.mxu0 %v7531_v58  ;;  %4884 = vmatprep.subr.bf16.mxu1 %v7534_v59  ;;  %v3963_v58 = vpack.c.bf16 %v3959_v53, %v3959_v53  ;;  %v7639_v59 = vld [vmem:[#allocation11 + $0xe0] ss:$12 sps:$4 sm:$0xff]  }
 0x4a1   :  { %4803 = vmatpush1.bf16.msra.mxu0 %v7529_v60  ;;  %4885 = vmatpush1.bf16.msra.mxu1 %v7532_v61  ;;  %v7610_v60 = vld [vmem:[#allocation11 + $0x18] ss:$12 sps:$4 sm:$0xff]   ;;  %v7640_v61 = vld [vmem:[#allocation11 + $0x20] ss:$12 sps:$4 sm:$0xff]  }
 0x4a2   :  { %4804 = vmatprep.subr.bf16.mxu0 %v7537_v62  ;;  %4886 = vmatprep.subr.bf16.mxu1 %v7540_v63  ;;  %v7615_v62 = vld [vmem:[#allocation11 + $0x34] ss:$12 sps:$4 sm:$0xff]   ;;  %v7644_v63 = vld [vmem:[#allocation11 + $0xf8] ss:$12 sps:$4 sm:$0xff]  }
 0x4a5   :  { %4805 = vmatpush1.bf16.msra.mxu0 %v7535_v0  ;;  %4887 = vmatpush1.bf16.msra.mxu1 %v7538_v1  ;;  %v7613_v0 = vld [vmem:[#allocation11 + $0x30] ss:$12 sps:$4 sm:$0xff]   ;;  %v7645_v1 = vld [vmem:[#allocation11 + $0x38] ss:$12 sps:$4 sm:$0xff]  }
 0x4a6   :  { %4806 = vmatprep.subr.bf16.mxu0 %v7543_v2  ;;  %4888 = vmatprep.subr.bf16.mxu1 %v7546_v3  ;;  %v7618_v2 = vld [vmem:[#allocation11 + $0x4c] ss:$12 sps:$4 sm:$0xff]   ;;  %v7649_v3 = vld [vmem:[#allocation11 + $0x110] ss:$12 sps:$4 sm:$0xff]  }
 0x4a9   :  { %4807 = vmatpush1.bf16.msra.mxu0 %v7541_v4  ;;  %4889 = vmatpush1.bf16.msra.mxu1 %v7544_v5  ;;  %v7616_v4 = vld [vmem:[#allocation11 + $0x48] ss:$12 sps:$4 sm:$0xff]   ;;  %v7650_v5 = vld [vmem:[#allocation11 + $0x50] ss:$12 sps:$4 sm:$0xff]  }
 0x4aa   :  { %4808 = vmatprep.subr.bf16.mxu0 %v7549_v6  ;;  %4890 = vmatprep.subr.bf16.mxu1 %v7552_v7  ;;  %v7621_v6 = vld [vmem:[#allocation11 + $0x64] ss:$12 sps:$4 sm:$0xff]   ;;  %v7654_v7 = vld [vmem:[#allocation11 + $0x128] ss:$12 sps:$4 sm:$0xff]  }
 0x4ad   :  { %4809 = vmatpush1.bf16.msra.mxu0 %v7547_v8  ;;  %4891 = vmatpush1.bf16.msra.mxu1 %v7550_v9  ;;  %v7619_v8 = vld [vmem:[#allocation11 + $0x60] ss:$12 sps:$4 sm:$0xff]   ;;  %v7655_v9 = vld [vmem:[#allocation11 + $0x68] ss:$12 sps:$4 sm:$0xff]  }
 0x4ae   :  { %4810 = vmatprep.subr.bf16.mxu0 %v7555_v10  ;;  %4892 = vmatprep.subr.bf16.mxu1 %v7558_v12  ;;  %v7624_v10 = vld [vmem:[#allocation11 + $0x7c] ss:$12 sps:$4 sm:$0xff]   ;;  %v7659_v12 = vld [vmem:[#allocation11 + $0x140] ss:$12 sps:$4 sm:$0xff]  }
 0x4b1   :  { %4811 = vmatpush1.bf16.msra.mxu0 %v7553_v13  ;;  %4893 = vmatpush1.bf16.msra.mxu1 %v7556_v15  ;;  %v7622_v13 = vld [vmem:[#allocation11 + $0x78] ss:$12 sps:$4 sm:$0xff]   ;;  %v7660_v15 = vld [vmem:[#allocation11 + $0x80] ss:$12 sps:$4 sm:$0xff]  }
 0x4b2   :  { %4812 = vmatprep.subr.bf16.mxu0 %v7561_v16  ;;  %4894 = vmatprep.subr.bf16.mxu1 %v7564_v21  ;;  %v7627_v16 = vld [vmem:[#allocation11 + $0x94] ss:$12 sps:$4 sm:$0xff]   ;;  %v7625_v21 = vld [vmem:[#allocation11 + $0x90] ss:$12 sps:$4 sm:$0xff]  }
 0x4b5   :  { %4813 = vmatpush1.bf16.msra.mxu0 %v7559_v52  ;;  %4895 = vmatpush1.bf16.msra.mxu1 %v7562_v22  ;;  %v7630_v52 = vld [vmem:[#allocation11 + $0xac] ss:$12 sps:$4 sm:$0xff]   ;;  %v7628_v22 = vld [vmem:[#allocation11 + $0xa8] ss:$12 sps:$4 sm:$0xff]  }
 0x4b6   :  { %4814 = vmatprep.subr.bf16.mxu0 %v7567_v23  ;;  %4896 = vmatprep.subr.bf16.mxu1 %v7570_v24  ;;  %v7633_v23 = vld [vmem:[#allocation11 + $0xc4] ss:$12 sps:$4 sm:$0xff]   ;;  %v7631_v24 = vld [vmem:[#allocation11 + $0xc0] ss:$12 sps:$4 sm:$0xff]  }
 0x4b9   :  { %4815 = vmatpush1.bf16.msra.mxu0 %v7565_v14  ;;  %4897 = vmatpush1.bf16.msra.mxu1 %v7568_v57  ;;  %v7638_v14 = vld [vmem:[#allocation11 + $0xdc] ss:$12 sps:$4 sm:$0xff]   ;;  %v7636_v57 = vld [vmem:[#allocation11 + $0xd8] ss:$12 sps:$4 sm:$0xff]  }
 0x4ba   :  { %4816 = vmatprep.subr.bf16.mxu0 %v7573_v26  ;;  %4898 = vmatprep.subr.bf16.mxu1 %v7576_v28  ;;  %v7643_v26 = vld [vmem:[#allocation11 + $0xf4] ss:$12 sps:$4 sm:$0xff]   ;;  %v7641_v28 = vld [vmem:[#allocation11 + $0xf0] ss:$12 sps:$4 sm:$0xff]  }
 0x4bd   :  { %4817 = vmatpush1.bf16.msra.mxu0 %v7571_v29  ;;  %4899 = vmatpush1.bf16.msra.mxu1 %v7574_v30  ;;  %v7648_v29 = vld [vmem:[#allocation11 + $0x10c] ss:$12 sps:$4 sm:$0xff]   ;;  %v7646_v30 = vld [vmem:[#allocation11 + $0x108] ss:$12 sps:$4 sm:$0xff]  }
 0x4be   :  { %4818 = vmatprep.subr.bf16.mxu0 %v7579_v31  ;;  %4900 = vmatprep.subr.bf16.mxu1 %v7582_v34  ;;  %v7653_v31 = vld [vmem:[#allocation11 + $0x124] ss:$12 sps:$4 sm:$0xff]   ;;  %v7651_v34 = vld [vmem:[#allocation11 + $0x120] ss:$12 sps:$4 sm:$0xff]  }
 0x4c1   :  { %4819 = vmatpush1.bf16.msra.mxu0 %v7577_v35  ;;  %4901 = vmatpush1.bf16.msra.mxu1 %v7580_v36  ;;  %v7658_v35 = vld [vmem:[#allocation11 + $0x13c] ss:$12 sps:$4 sm:$0xff]   ;;  %v7656_v36 = vld [vmem:[#allocation11 + $0x138] ss:$12 sps:$4 sm:$0xff]  }
 0x4c2   :  { %4820 = vmatprep.subr.bf16.mxu0 %v7585_v37  ;;  %4902 = vmatprep.subr.bf16.mxu1 %v7588_v38  ;;  %v7663_v37 = vld [vmem:[#allocation11 + $0x154] ss:$12 sps:$4 sm:$0xff]   ;;  %v7664_v38 = vld [vmem:[#allocation11 + $0x158] ss:$12 sps:$4 sm:$0xff]  }
 0x4c5   :  { %4821 = vmatpush1.bf16.msra.mxu0 %v7583_v39  ;;  %4903 = vmatpush1.bf16.msra.mxu1 %v7586_v40  ;;  %v7661_v39 = vld [vmem:[#allocation11 + $0x150] ss:$12 sps:$4 sm:$0xff]   ;;  %v7665_v40 = vld [vmem:[#allocation11 + $0x98] ss:$12 sps:$4 sm:$0xff]  }
 0x4c6   :  { %4822 = vmatprep.subr.bf16.mxu0 %v7591_v17  ;;  %4904 = vmatprep.subr.bf16.mxu1 %v7594_v41  ;;  %v7668_v17 = vld [vmem:[#allocation11 + $0x16c] ss:$12 sps:$4 sm:$0xff]   ;;  %v7669_v41 = vld [vmem:[#allocation11 + $0x170] ss:$12 sps:$4 sm:$0xff]  }
 0x4c9   :  { %4823 = vmatpush1.bf16.msra.mxu0 %v7589_v42  ;;  %4905 = vmatpush1.bf16.msra.mxu1 %v7592_v43  ;;  %v7666_v42 = vld [vmem:[#allocation11 + $0x168] ss:$12 sps:$4 sm:$0xff]   ;;  %v7670_v43 = vld [vmem:[#allocation11 + $0xb0] ss:$12 sps:$4 sm:$0xff]  }
 0x4ca   :  { %4824 = vmatprep.subr.bf16.mxu0 %v7597_v45  ;;  %4906 = vmatprep.subr.bf16.mxu1 %v7600_v46  ;;  %v7674_v45 = vld [vmem:[#allocation11 + $0x248] ss:$12 sps:$4 sm:$0xff]   ;;  %v8130_v46 = vld [vmem:[#allocation10 + $0x8] sm:$0xf] }
 0x4cb   :  { %v4110_v48 = vrot.slane %v8130_v46, %v8088_v11  ;;  %v7678_v11 = vld [vmem:[#allocation11 + $0x19c] ss:$12 sps:$4 sm:$0xff]  }
 0x4cd   :  { %4825 = vmatpush1.bf16.msra.mxu0 %v7595_v19  ;;  %4907 = vmatpush1.bf16.msra.mxu1 %v7598_v47  ;;  %v4098_v19 = vrot.slane %v8130_v46, %v8080_v18  ;;  %v4102_v47 = vrot.slane %v8130_v46, %v8085_v20 }
 0x4ce   :  { %4826 = vmatprep.subr.bf16.mxu0 %v7603_v49  ;;  %4908 = vmatprep.subr.bf16.mxu1 %v7606_v50 }
 0x4d1   :  { %4827 = vmatpush1.bf16.msra.mxu0 %v7601_v25  ;;  %4909 = vmatpush1.bf16.msra.mxu1 %v7604_v51 }
 0x4d2   :  { %5584 = vmatprep.subr.bf16.mxu0 %v7609_v27  ;;  %6511 = vmatprep.subr.bf16.mxu1 %v7634_v54 }
 0x4d4   :  { %4829 = vmatmul.mubr.bf16.vlgmr.msra.gmra.mrb[12].mxu0 %v3963_v58  ;;  %4911 = vmatmul.mubr.bf16.vlgmr.msra.gmra.mrb[12].mxu1 %v3963_v58 }
 0x4d5   :  { %5585 = vmatpush1.bf16.msra.mxu0 %v7607_v55  ;;  %6512 = vmatpush3.bf16.msra.mxu1 %v7635_v56 }
 0x4d6   :  { %5586 = vmatprep.subr.bf16.mxu0 %v7612_v33  ;;  %6513 = vmatprep.subr.bf16.mxu1 %v7639_v59 }
 0x4d9   :  { %5587 = vmatpush1.bf16.msra.mxu0 %v7610_v60  ;;  %6514 = vmatpush3.bf16.msra.mxu1 %v7640_v61 }
 0x4da   :  { %5588 = vmatprep.subr.bf16.mxu0 %v7615_v62  ;;  %6515 = vmatprep.subr.bf16.mxu1 %v7644_v63  ;;  %v7671_v63 = vld [vmem:[#allocation11 + $0x180] ss:$12 sps:$4 sm:$0xff]  }
 0x4dd   :  { %5589 = vmatpush1.bf16.msra.mxu0 %v7613_v0  ;;  %6516 = vmatpush3.bf16.msra.mxu1 %v7645_v1  ;;  %v7675_v0 = vld [vmem:[#allocation11 + $0x188] ss:$12 sps:$4 sm:$0xff]  }
 0x4de   :  { %5590 = vmatprep.subr.bf16.mxu0 %v7618_v2  ;;  %6517 = vmatprep.subr.bf16.mxu1 %v7649_v3  ;;  %v7679_v2 = vld [vmem:[#allocation11 + $0x260] ss:$12 sps:$4 sm:$0xff]  }
 0x4e1   :  { %5591 = vmatpush1.bf16.msra.mxu0 %v7616_v4  ;;  %6518 = vmatpush3.bf16.msra.mxu1 %v7650_v5  ;;  %v7676_v4 = vld [vmem:[#allocation11 + $0x198] ss:$12 sps:$4 sm:$0xff]   ;;  %v7680_v5 = vld [vmem:[#allocation11 + $0x1a0] ss:$12 sps:$4 sm:$0xff]  }
 0x4e2   :  { %5592 = vmatprep.subr.bf16.mxu0 %v7621_v6  ;;  %6519 = vmatprep.subr.bf16.mxu1 %v7654_v7  ;;  %v7683_v6 = vld [vmem:[#allocation11 + $0x1b4] ss:$12 sps:$4 sm:$0xff]   ;;  %v7684_v7 = vld [vmem:[#allocation11 + $0x278] ss:$12 sps:$4 sm:$0xff]  }
 0x4e5   :  { %5593 = vmatpush1.bf16.msra.mxu0 %v7619_v8  ;;  %6520 = vmatpush3.bf16.msra.mxu1 %v7655_v9  ;;  %v7681_v8 = vld [vmem:[#allocation11 + $0x1b0] ss:$12 sps:$4 sm:$0xff]   ;;  %v7685_v9 = vld [vmem:[#allocation11 + $0x1b8] ss:$12 sps:$4 sm:$0xff]  }
 0x4e6   :  { %5594 = vmatprep.subr.bf16.mxu0 %v7624_v10  ;;  %6521 = vmatprep.subr.bf16.mxu1 %v7659_v12  ;;  %v7688_v10 = vld [vmem:[#allocation11 + $0x1cc] ss:$12 sps:$4 sm:$0xff]   ;;  %v7689_v12 = vld [vmem:[#allocation11 + $0x290] ss:$12 sps:$4 sm:$0xff]  }
 0x4e9   :  { %5595 = vmatpush1.bf16.msra.mxu0 %v7622_v13  ;;  %6522 = vmatpush3.bf16.msra.mxu1 %v7660_v15  ;;  %v7686_v13 = vld [vmem:[#allocation11 + $0x1c8] ss:$12 sps:$4 sm:$0xff]   ;;  %v7690_v15 = vld [vmem:[#allocation11 + $0x1d0] ss:$12 sps:$4 sm:$0xff]  }
 0x4ea   :  { %5596 = vmatprep.subr.bf16.mxu0 %v7627_v16  ;;  %6523 = vmatprep.subr.bf16.mxu1 %v7664_v38  ;;  %v7693_v16 = vld [vmem:[#allocation11 + $0x1e4] ss:$12 sps:$4 sm:$0xff]  }
 0x4eb   :  { %v7710_v38 = vld [vmem:[#allocation11 + $0x230] ss:$12 sps:$4 sm:$0xff]  }
 0x4ed   :  { %5597 = vmatpush1.bf16.msra.mxu0 %v7625_v21  ;;  %6524 = vmatpush3.bf16.msra.mxu1 %v7665_v40  ;;  %v7694_v21 = vld [vmem:[#allocation11 + $0x2a8] ss:$12 sps:$4 sm:$0xff]   ;;  %v7713_v40 = vld [vmem:[#allocation11 + $0x244] ss:$12 sps:$4 sm:$0xff]  }
 0x4ee   :  { %5598 = vmatprep.subr.bf16.mxu0 %v7630_v52  ;;  %6525 = vmatprep.subr.bf16.mxu1 %v7669_v41  ;;  %v7691_v52 = vld [vmem:[#allocation11 + $0x1e0] ss:$12 sps:$4 sm:$0xff]  }
 0x4f1   :  { %5599 = vmatpush1.bf16.msra.mxu0 %v7628_v22  ;;  %6526 = vmatpush3.bf16.msra.mxu1 %v7670_v43  ;;  %v7695_v22 = vld [vmem:[#allocation11 + $0x1e8] ss:$12 sps:$4 sm:$0xff]   ;;  %v7714_v43 = vld [vmem:[#allocation11 + $0x258] ss:$12 sps:$4 sm:$0xff]  }
 0x4f2   :  { %5600 = vmatprep.subr.bf16.mxu0 %v7633_v23  ;;  %6533 = vmatprep.subr.bf16.mxu1 %v7674_v45  ;;  %v7698_v23 = vld [vmem:[#allocation11 + $0x1fc] ss:$12 sps:$4 sm:$0xff]  }
 0x4f3   :  { %v7717_v45 = vld [vmem:[#allocation11 + $0x270] ss:$12 sps:$4 sm:$0xff]  }
 0x4f5   :  { %5601 = vmatpush1.bf16.msra.mxu0 %v7631_v24  ;;  %v7699_v24 = vld [vmem:[#allocation11 + $0x2c0] ss:$12 sps:$4 sm:$0xff]  }
 0x4f6   :  { %5602 = vmatprep.subr.bf16.mxu0 %v7638_v14  ;;  %v7696_v14 = vld [vmem:[#allocation11 + $0x1f8] ss:$12 sps:$4 sm:$0xff]  }
 0x4f9   :  { %5603 = vmatpush1.bf16.msra.mxu0 %v7636_v57  ;;  %v7700_v57 = vld [vmem:[#allocation11 + $0x200] ss:$12 sps:$4 sm:$0xff]  }
 0x4fa   :  { %5604 = vmatprep.subr.bf16.mxu0 %v7643_v26  ;;  %v4106_v26 = vrot.slane %v8130_v46, %v8099_v32  ;;  %v7722_v46 = vld [vmem:[#allocation11 + $0x28c] ss:$12 sps:$4 sm:$0xff]  }
 0x4fd   :  { %5605 = vmatpush1.bf16.msra.mxu0 %v7641_v28  ;;  %v7703_v28 = vld [vmem:[#allocation11 + $0x214] ss:$12 sps:$4 sm:$0xff]  }
 0x4fe   :  { %5606 = vmatprep.subr.bf16.mxu0 %v7648_v29  ;;  %v7704_v29 = vld [vmem:[#allocation11 + $0x2d8] ss:$12 sps:$4 sm:$0xff]  }
 0x501   :  { %5607 = vmatpush1.bf16.msra.mxu0 %v7646_v30  ;;  %v7701_v30 = vld [vmem:[#allocation11 + $0x210] ss:$12 sps:$4 sm:$0xff]  }
 0x502   :  { %5608 = vmatprep.subr.bf16.mxu0 %v7653_v31  ;;  %v7705_v31 = vld [vmem:[#allocation11 + $0x218] ss:$12 sps:$4 sm:$0xff]  }
 0x505   :  { %5609 = vmatpush1.bf16.msra.mxu0 %v7651_v34 }
 0x506   :  { %5610 = vmatprep.subr.bf16.mxu0 %v7658_v35  ;;  %v7708_v35 = vld [vmem:[#allocation11 + $0x22c] ss:$12 sps:$4 sm:$0xff]  }
 0x509   :  { %5611 = vmatpush1.bf16.msra.mxu0 %v7656_v36  ;;  %v7709_v36 = vld [vmem:[#allocation11 + $0x2f0] ss:$12 sps:$4 sm:$0xff]  }
 0x50a   :  { %5612 = vmatprep.subr.bf16.mxu0 %v7663_v37  ;;  %v7706_v37 = vld [vmem:[#allocation11 + $0x228] ss:$12 sps:$4 sm:$0xff]  }
 0x50d   :  { %5613 = vmatpush1.bf16.msra.mxu0 %v7661_v39 }
 0x50e   :  { %5614 = vmatprep.subr.bf16.mxu0 %v7668_v17  ;;  %v7711_v17 = vld [vmem:[#allocation11 + $0x240] ss:$12 sps:$4 sm:$0xff]  }
 0x511   :  { %5615 = vmatpush1.bf16.msra.mxu0 %v7666_v42  ;;  %v7716_v42 = vld [vmem:[#allocation11 + $0x25c] ss:$12 sps:$4 sm:$0xff]  }
 0x512   :  { %5625 = vmatprep.subr.bf16.mxu0 %v7673_v44  ;;  %v7719_v44 = vld [vmem:[#allocation11 + $0x274] ss:$12 sps:$4 sm:$0xff]  }
 0x5a7   :  { %v4830_v49 = vpop.f32.mrb[12].mxu0  ;;  %v8138_v50 = vpop.f32.mrb[12].mxu1 }
 0x5a8   :  { %v6567_v25 = vadd.f32 %v4830_v49, %v4098_v19  ;;  %v4832_v51 = vpop.f32.mrb[13].mxu0  ;;  %v4914_v53 = vpop.f32.mrb[13].mxu1  ;;  %v6569_v34 = vadd.f32 %v8138_v50, %v4106_v26  ;;  %v7720_v19 = vld [vmem:[#allocation11 + $0x288] ss:$12 sps:$4 sm:$0xff]   ;;  %v7726_v50 = vld [vmem:[#allocation11 + $0x2b8] ss:$12 sps:$4 sm:$0xff]  }
 0x5a9   :  { %v6568_v27 = vadd.f32 %v4832_v51, %v4102_v47  ;;  %v6570_v54 = vadd.f32 %v4914_v53, %v4110_v48  ;;  %v4834_v55 = vpop.f32.mrb[14].mxu0  ;;  %v4916_v56 = vpop.f32.mrb[14].mxu1  ;;  %v7725_v47 = vld [vmem:[#allocation11 + $0x2a4] ss:$12 sps:$4 sm:$0xff]   ;;  %v7723_v48 = vld [vmem:[#allocation11 + $0x2a0] ss:$12 sps:$4 sm:$0xff]  }
 0x5aa   :  { %v4919_v58 = vmax.f32 %v6567_v25, 0.0  ;;  %v4835_v33 = vpop.f32.mrb[15].mxu0  ;;  %v4917_v59 = vpop.f32.mrb[15].mxu1  ;;  %v4921_v39 = vmax.f32 %v6569_v34, 0.0  ;;  %v7728_v49 = vld [vmem:[#allocation11 + $0x2bc] ss:$12 sps:$4 sm:$0xff]  }
 0x5ab   :  { %v4920_v60 = vmax.f32 %v6568_v27, 0.0  ;;  %v4922_v61 = vmax.f32 %v6570_v54, 0.0  ;;  %v7731_v25 = vld [vmem:[#allocation11 + $0x2d4] ss:$12 sps:$4 sm:$0xff]   ;;  %v7729_v51 = vld [vmem:[#allocation11 + $0x2d0] ss:$12 sps:$4 sm:$0xff]  }
 0x5ac   :  { %v4923_v1 = vpack.c.bf16 %v4919_v58, %v4919_v58  ;;  %v4925_v41 = vpack.c.bf16 %v4921_v39, %v4921_v39  ;;  %v7734_v53 = vld [vmem:[#allocation11 + $0x2ec] ss:$12 sps:$4 sm:$0xff]   ;;  %v7732_v27 = vld [vmem:[#allocation11 + $0x2e8] ss:$12 sps:$4 sm:$0xff]   ;;  %v5055_v59 = vld [vmem:[#allocation13] sm:$0x7] }
 0x5ad   :  { %v4924_v62 = vpack.c.bf16 %v4920_v60, %v4920_v60  ;;  %v4926_v3 = vpack.c.bf16 %v4922_v61, %v4922_v61  ;;  %v5068_v60 = vrot.slane %v5055_v59, %v8099_v32 }
 0x5af   :  { %5616 = vmatprep.mubr.bf16.mxu0 %v4924_v62  ;;  %5698 = vmatprep.mubr.bf16.mxu1 %v4924_v62 }
 0x5b0   :  { %5617 = vmatmul.mubr.bf16.vlgmr.msra.gmra.mrb[16].mxu0 %v4923_v1  ;;  %5699 = vmatmul.mubr.bf16.vlgmr.msra.gmra.mrb[16].mxu1 %v4923_v1 }
 0x5b1   :  { %5626 = vmatpush1.bf16.msra.mxu0 %v7671_v63  ;;  %6534 = vmatpush3.bf16.msra.mxu1 %v7675_v0 }
 0x5b2   :  { %5657 = vmatprep.mubr.bf16.mxu0 %v4926_v3  ;;  %5738 = vmatprep.mubr.bf16.mxu1 %v4926_v3  ;;  %v5060_v3 = vrot.slane %v5055_v59, %v8080_v18 }
 0x5b3   :  { %5627 = vmatprep.subr.bf16.mxu0 %v7678_v11  ;;  %6535 = vmatprep.subr.bf16.mxu1 %v7679_v2 }
 0x5b5   :  { %5628 = vmatpush1.bf16.msra.mxu0 %v7676_v4  ;;  %6536 = vmatpush3.bf16.msra.mxu1 %v7680_v5  ;;  %v5064_v4 = vrot.slane %v5055_v59, %v8085_v20 }
 0x5b6   :  { %5629 = vmatprep.subr.bf16.mxu0 %v7683_v6  ;;  %6537 = vmatprep.subr.bf16.mxu1 %v7684_v7 }
 0x5b9   :  { %5630 = vmatpush1.bf16.msra.mxu0 %v7681_v8  ;;  %6538 = vmatpush3.bf16.msra.mxu1 %v7685_v9 }
 0x5ba   :  { %5631 = vmatprep.subr.bf16.mxu0 %v7688_v10  ;;  %6539 = vmatprep.subr.bf16.mxu1 %v7689_v12 }
 0x5bd   :  { %5632 = vmatpush1.bf16.msra.mxu0 %v7686_v13  ;;  %6540 = vmatpush3.bf16.msra.mxu1 %v7690_v15 }
 0x5be   :  { %5633 = vmatprep.subr.bf16.mxu0 %v7693_v16  ;;  %6541 = vmatprep.subr.bf16.mxu1 %v7694_v21 }
 0x5c1   :  { %5634 = vmatpush1.bf16.msra.mxu0 %v7691_v52  ;;  %6542 = vmatpush3.bf16.msra.mxu1 %v7695_v22 }
 0x5c2   :  { %5635 = vmatprep.subr.bf16.mxu0 %v7698_v23  ;;  %6543 = vmatprep.subr.bf16.mxu1 %v7699_v24 }
 0x5c5   :  { %5636 = vmatpush1.bf16.msra.mxu0 %v7696_v14  ;;  %6544 = vmatpush3.bf16.msra.mxu1 %v7700_v57 }
 0x5c6   :  { %5637 = vmatprep.subr.bf16.mxu0 %v7703_v28  ;;  %6545 = vmatprep.subr.bf16.mxu1 %v7704_v29 }
 0x5c9   :  { %5638 = vmatpush1.bf16.msra.mxu0 %v7701_v30  ;;  %6546 = vmatpush3.bf16.msra.mxu1 %v7705_v31 }
 0x5ca   :  { %5639 = vmatprep.subr.bf16.mxu0 %v7708_v35  ;;  %6547 = vmatprep.subr.bf16.mxu1 %v7709_v36 }
 0x5cd   :  { %5640 = vmatpush1.bf16.msra.mxu0 %v7706_v37  ;;  %6548 = vmatpush3.bf16.msra.mxu1 %v7710_v38 }
 0x5ce   :  { %5641 = vmatprep.subr.bf16.mxu0 %v7713_v40 }
 0x5d0   :  { %5739 = vmatmul.mubr.bf16.vlgmr.msra.gmra.mrb[20].mxu1 %v4925_v41 }
 0x5d1   :  { %5642 = vmatpush1.bf16.msra.mxu0 %v7711_v17 }
 0x5d2   :  { %5643 = vmatprep.subr.bf16.mxu0 %v7716_v42 }
 0x5d5   :  { %5644 = vmatpush1.bf16.msra.mxu0 %v7714_v43 }
 0x5d6   :  { %5645 = vmatprep.subr.bf16.mxu0 %v7719_v44 }
 0x5d9   :  { %5646 = vmatpush1.bf16.msra.mxu0 %v7717_v45 }
 0x5da   :  { %5647 = vmatprep.subr.bf16.mxu0 %v7722_v46 }
 0x5dd   :  { %5648 = vmatpush1.bf16.msra.mxu0 %v7720_v19 }
 0x5de   :  { %5649 = vmatprep.subr.bf16.mxu0 %v7725_v47 }
 0x5e1   :  { %5650 = vmatpush1.bf16.msra.mxu0 %v7723_v48 }
 0x5e2   :  { %5651 = vmatprep.subr.bf16.mxu0 %v7728_v49 }
 0x5e5   :  { %5652 = vmatpush1.bf16.msra.mxu0 %v7726_v50 }
 0x5e6   :  { %5653 = vmatprep.subr.bf16.mxu0 %v7731_v25 }
 0x5e9   :  { %5654 = vmatpush1.bf16.msra.mxu0 %v7729_v51 }
 0x5ea   :  { %5655 = vmatprep.subr.bf16.mxu0 %v7734_v53 }
 0x5ed   :  { %5656 = vmatpush1.bf16.msra.mxu0 %v7732_v27 }
 0x5f0   :  { %5658 = vmatmul.mubr.bf16.vlgmr.msra.gmra.mrb[16].mxu0 %v4925_v41 }
 0x683   :  { %v6527_v54 = vpop.f32.mrb[16].mxu1 }
 0x684   :  { %v6528_v55 = vpop.f32.mrb[17].mxu1 }
 0x685   :  { %v6529_v56 = vadd.f32 %v6528_v55, %v6527_v54  ;;  %v6530_v58 = vpop.f32.mrb[18].mxu1 }
 0x686   :  { %v6531_v33 = vpop.f32.mrb[19].mxu1 }
 0x687   :  { %v5701_v63 = vadd.f32 %v6529_v56, %v5068_v60 }
 0x6a3   :  { %v6549_v61 = vpop.f32.mrb[20].mxu1 }
 0x6a4   :  { %v6550_v62 = vpop.f32.mrb[21].mxu1 }
 0x6a5   :  { %v6551_v0 = vadd.f32 %v6550_v62, %v6549_v61  ;;  %v6552_v1 = vpop.f32.mrb[22].mxu1 }
 0x6a6   :  { %v6553_v11 = vpop.f32.mrb[23].mxu1 }
 0x6a7   :  { %v5741_v2 = vadd.f32 %v6551_v0, %v5701_v63 }
 0x6a9   :  { %5748 = vst [vmem:[#allocation14 + $0x10] sm:$0xff] %v5741_v2 }
 0x6c3   :  { %v5659_v5 = vpop.f32.mrb[16].mxu0 }
 0x6c4   :  { %v6571_v6 = vadd.f32 %v5659_v5, %v5060_v3  ;;  %v5661_v7 = vpop.f32.mrb[17].mxu0 }
 0x6c5   :  { %v6572_v8 = vadd.f32 %v5661_v7, %v5064_v4  ;;  %v5663_v9 = vpop.f32.mrb[18].mxu0 }
 0x6c6   :  { %5746 = vst [vmem:[#allocation14] sm:$0xff] %v6571_v6  ;;  %v5664_v32 = vpop.f32.mrb[19].mxu0 }
 0x6c7   :  { %5747 = vst [vmem:[#allocation14 + $0x8] sm:$0xff] %v6572_v8 }
 0x6c8   :  { %7900 = shalt.err (!%p7897_p4)
}
 0x6c9   :  { %s7901_s15 = scalar_lea.hbm %s8165_s7, 384 }
 0x6ca   :  { %p7902_p5 = scmp.ne.s32.totalorder %s8165_s7, %s7901_s15  ;;  %p7905_p6 = scmp.lt.u32.totalorder %s7901_s15, %s8165_s7 }
 0x6cc   :  { %p7907_p7 = pnand %p7905_p6, %p7902_p5 }
 0x6ce   :  { %7910 = shalt.err (!%p7907_p7)
}
 0x6cf   :  { %5758 = dma.vmem_to_hbm [thread:$0]  %s5756_s13, 384, %s8165_s7, [#allocation4]  }
 0x6d0   :  { %7919 = dma.done.wait [#allocation4], 384  }
 0x6d1   :  { %7920 = vsyncadd [#allocation4], 4294966912 }
 0x6d2   :  { %5762 = vsyncpa [#allocation3], 1 }
 0x6d3   :  { %5763 = vsyncpa [#allocation6], 1 }
 0x6d4   :  { %5764 = vsyncpa [#allocation9], 1 }
 0x6d5   :  { %5765 = vsyncpa [#allocation12], 1 }
 0x6d6   :  { %5766 = vsyncpa [#allocation4], 1 }

</bundles_post_ra>
